<compile_context>
chip_gen: v6e
topology: v6e:2x2x1
jax: 0.10.0
libtpu: 0.0.40
codegen_flags: <defaults>
</compile_context>

<pallas_src>
import functools

import jax
import jax.numpy as jnp
from jax import lax
from jax.experimental import pallas as pl
from jax.experimental.pallas import tpu as pltpu


def xavier_uniform(key, shape, gain=1.0):
    fan_in, fan_out = shape[0], shape[1]
    bound = gain * (6.0 / (fan_in + fan_out)) ** 0.5
    return jax.random.uniform(key, shape, jnp.float32, -bound, bound)


def _round_up(x, m):
    return (x + m - 1) // m * m


def _pick_tile(n, candidates, min_blocks=1):
    # Prefer the largest candidate that still leaves `min_blocks` blocks on the
    # axis (keeps the parallel axis >= 2 blocks for v7x's two TensorCores).
    for c in candidates:
        if n % c == 0 and n // c >= min_blocks:
            return c
    for c in candidates:
        if n % c == 0:
            return c
    return n


# ---------------------------------------------------------------------------
# Kernel 1: row-tiled dense projection  o = (x @ w) * scale
# Used for the mic/dis feature projections (scale = 1 - node_dropout, the
# eval-mode drop_node) and for the hoisted NeuCF first-layer projections.
# ---------------------------------------------------------------------------
def _dense_kernel(x_ref, w_ref, o_ref, *, scale):
    y = jnp.dot(x_ref[...], w_ref[...], preferred_element_type=jnp.float32)
    o_ref[...] = y * scale


def dense_rows(x, w, scale=1.0):
    m, f = x.shape
    dout = w.shape[1]
    tmr = _pick_tile(m, (512, 256, 128, 64, 32, 16, 8))
    return pl.pallas_call(
        functools.partial(_dense_kernel, scale=scale),
        out_shape=jax.ShapeDtypeStruct((m, dout), jnp.float32),
        grid=(m // tmr,),
        in_specs=[pl.BlockSpec((tmr, f), lambda i: (i, 0)),
                  pl.BlockSpec((f, dout), lambda i: (0, 0))],
        out_specs=pl.BlockSpec((tmr, dout), lambda i: (i, 0)),
        compiler_params=pltpu.CompilerParams(
            dimension_semantics=("parallel",)),
    )(x, w)


# ---------------------------------------------------------------------------
# Kernel 2: one GRANDConv propagation step, tiled over (output node, neighbor):
#   x_new[v] = norm[v] * sum_u A[u, v] * norm[u] * x[u]
#   y_new[v] = y[v] + x_new[v]                       (fused running sum)
# A is pre-transposed in HBM (AT[v, u] = A[u, v]) and stored as int8 so the
# dominant HBM stream is halved; the int8 -> f32 upcast rides free VPU slack.
# Features stay f32; accumulation is f32 in a VMEM scratch.
# ---------------------------------------------------------------------------
def _prop_step_kernel(at_ref, nu_ref, nv_ref, x_ref, y_ref, xo_ref, yo_ref,
                      acc_ref):
    k = pl.program_id(1)

    @pl.when(k == 0)
    def _():
        acc_ref[...] = jnp.zeros_like(acc_ref)

    a = at_ref[...].astype(jnp.float32)            # int8 0/1 -> f32 (exact)
    z = x_ref[...] * nu_ref[...]                   # fold norm[u] into features
    acc_ref[...] += jnp.dot(a, z, preferred_element_type=jnp.float32)

    @pl.when(k == pl.num_programs(1) - 1)
    def _():
        x_new = acc_ref[...] * nv_ref[...]
        xo_ref[...] = x_new
        yo_ref[...] = y_ref[...] + x_new


def make_prop_step(n_pad, d_pad, tm, tk):
    node_spec = pl.BlockSpec((tm, d_pad), lambda i, k: (i, 0))
    return pl.pallas_call(
        _prop_step_kernel,
        out_shape=(jax.ShapeDtypeStruct((n_pad, d_pad), jnp.float32),
                   jax.ShapeDtypeStruct((n_pad, d_pad), jnp.float32)),
        grid=(n_pad // tm, n_pad // tk),
        in_specs=[pl.BlockSpec((tm, tk), lambda i, k: (i, k)),      # A^T tile
                  pl.BlockSpec((tk, 1), lambda i, k: (k, 0)),       # norm[u]
                  pl.BlockSpec((tm, 1), lambda i, k: (i, 0)),       # norm[v]
                  pl.BlockSpec((tk, d_pad), lambda i, k: (k, 0)),   # x[u]
                  node_spec],                                       # y[v]
        out_specs=(node_spec, node_spec),
        scratch_shapes=[pltpu.VMEM((tm, d_pad), jnp.float32)],
        compiler_params=pltpu.CompilerParams(
            dimension_semantics=("parallel", "arbitrary"),
            vmem_limit_bytes=32 * 1024 * 1024),
    )


def grand_conv(at_i8, norm_col, x0, order, tm, tk):
    n_pad, d_pad = x0.shape
    prop = make_prop_step(n_pad, d_pad, tm, tk)
    x = x0
    y = x0
    for _ in range(order):
        x, y = prop(at_i8, norm_col, norm_col, x, y)
    return y * (1.0 / (order + 1))


# ---------------------------------------------------------------------------
# Kernel 3: NeuCF scorer over the (mic, dis) cross product.  2-D grid, output
# is a lane-dense rating tile.
#   h1[i,j]     = relu(mic_p[i] + dis_p[j] + b1)        (first layer hoisted)
#   h2[i,j]     = relu(W2^T h1[i,j] + b2)
#   logit[i,j]  = waa . h2[i,j] + (mic[i] * wab) . dis[j] + ba
#   rating      = sigmoid(logit)
# The MLP is evaluated in a transposed orientation (hidden on sublanes, dis on
# lanes): each mic row yields a lane-dense (1, tn) row; rows are concatenated
# and stored with one unmasked (tile_m, tn) store.  The MF bilinear term is a
# single standard-orientation MXU matmul per tile.
# ---------------------------------------------------------------------------
def _neucf_kernel(mic_e_ref, dis_et_ref, mic_ptb_ref, dis_pt_ref, w2t_ref,
                  b2t_ref, waa_ref, wab_ref, ba_ref, o_ref):
    mic_ptb = mic_ptb_ref[0]            # (H1, tile_m)   mic @ W1a + b1, transposed
    dis_pt = dis_pt_ref[...]            # (H1, tn)       dis @ W1b, transposed
    w2t = w2t_ref[...]                  # (H2, H1)
    b2t = b2t_ref[...]                  # (H2, 1)
    waa = waa_ref[...]                  # (H2, 1)
    tile_m = mic_ptb.shape[1]

    # MF (matrix-factorization) bilinear term: one MXU matmul for the tile.
    mf = jnp.dot(mic_e_ref[...] * wab_ref[...], dis_et_ref[...],
                 preferred_element_type=jnp.float32)               # (tile_m, tn)

    # MLP term, one mic row at a time (small static unroll, tile_m <= 32).
    rows = []
    for r in range(tile_m):
        h1t = jnp.maximum(mic_ptb[:, r:r + 1] + dis_pt, 0.0)       # (H1, tn)
        h2t = jnp.maximum(
            jnp.dot(w2t, h1t, preferred_element_type=jnp.float32) + b2t,
            0.0)                                                   # (H2, tn)
        rows.append(jnp.sum(h2t * waa, axis=0, keepdims=True))     # (1, tn)
    mlp = jnp.concatenate(rows, axis=0)                            # (tile_m, tn)

    o_ref[...] = jax.nn.sigmoid(mlp + mf + ba_ref[...])


def neucf_forward(mic_e, dis_et, mic_ptb3, dis_pt, w2t, b2t, waa_col, wab_row,
                  ba, tile_m, tile_n):
    n_mic_p, d_pad = mic_e.shape
    n_dis_p = dis_et.shape[1]
    h1d = dis_pt.shape[0]
    h2d = w2t.shape[0]
    full = lambda a: pl.BlockSpec(a.shape, lambda i, j: (0, 0))
    return pl.pallas_call(
        _neucf_kernel,
        out_shape=jax.ShapeDtypeStruct((n_mic_p, n_dis_p), jnp.float32),
        grid=(n_mic_p // tile_m, n_dis_p // tile_n),
        in_specs=[pl.BlockSpec((tile_m, d_pad), lambda i, j: (i, 0)),
                  pl.BlockSpec((d_pad, tile_n), lambda i, j: (0, j)),
                  pl.BlockSpec((1, h1d, tile_m), lambda i, j: (i, 0, 0)),
                  pl.BlockSpec((h1d, tile_n), lambda i, j: (0, j)),
                  full(w2t), full(b2t), full(waa_col), full(wab_row), full(ba)],
        out_specs=pl.BlockSpec((tile_m, tile_n), lambda i, j: (i, j)),
        compiler_params=pltpu.CompilerParams(
            dimension_semantics=("parallel", "parallel")),
    )(mic_e, dis_et, mic_ptb3, dis_pt, w2t, b2t, waa_col, wab_row, ba)


# ---------------------------------------------------------------------------
# GRAND forward (inference / training=False branch).
# ---------------------------------------------------------------------------
@functools.partial(jax.jit, static_argnames=("K", "node_dropout"))
def grand_forward_eval(params, A, mic_feat, dis_feat, rel_matrix, K, node_dropout):
    n_mic = mic_feat.shape[0]
    n_dis = dis_feat.shape[0]
    n = n_mic + n_dis
    in_dim = params["W_mic"].shape[1]

    # Padded sizes: feature lanes to 128 (full-lane MXU / unmasked stores),
    # nodes to the propagation tile.  Padded rows / lanes are zero and stay zero.
    d_pad = _round_up(in_dim, 128)
    n_pad = _round_up(n, 128)
    tm = _pick_tile(n_pad, (2048, 1024, 512, 256, 128), min_blocks=2)
    tk = _pick_tile(n_pad, (512, 256, 128))

    scale = 1.0 - node_dropout                     # drop_node, eval mode

    # ---- projection (+ drop scaling), row-tiled; concat/pad in XLA ---------
    w_mic_p = jnp.pad(params["W_mic"], ((0, 0), (0, d_pad - in_dim)))
    w_dis_p = jnp.pad(params["W_dis"], ((0, 0), (0, d_pad - in_dim)))
    mic_rp = _round_up(n_mic, 8)
    dis_rp = _round_up(n_dis, 8)
    micX = dense_rows(jnp.pad(mic_feat, ((0, mic_rp - n_mic), (0, 0))),
                      w_mic_p, scale)
    disX = dense_rows(jnp.pad(dis_feat, ((0, dis_rp - n_dis), (0, 0))),
                      w_dis_p, scale)
    X = jnp.concatenate(
        [micX[:n_mic], disX[:n_dis],
         jnp.zeros((n_pad - n, d_pad), jnp.float32)], axis=0)

    # ---- GRANDConv: K tiled propagation steps ------------------------------
    # Reference normalization: norm = in_degrees^-0.5 (clamped to 1) on both
    # edge endpoints; one O(N^2) column-sum in XLA, then K tiled Pallas steps.
    a_pad = jnp.pad(A, ((0, n_pad - n), (0, n_pad - n)))
    deg = jnp.maximum(jnp.sum(a_pad, axis=0), 1.0)             # in-degrees
    norm_col = lax.rsqrt(deg).reshape(n_pad, 1)
    at_i8 = a_pad.T.astype(jnp.int8)                           # 0/1 exact, half bytes
    feat = grand_conv(at_i8, norm_col, X, K, tm, tk)

    # ---- NeuCF over all (mic, dis) pairs ------------------------------------
    # TODO(synk): test_feature_choose is not defined in the reference source;
    # assumed semantics: score every (mic, dis) pair, labels = rel_matrix.
    tile_m = 32                                                # static unroll bound
    tile_n = 128
    n_mic_pp = _round_up(n_mic, tile_m)
    n_dis_pp = _round_up(n_dis, tile_n)
    mic_e = jnp.pad(feat[0:n_mic], ((0, n_mic_pp - n_mic), (0, 0)))
    dis_e = jnp.pad(feat[n_mic:n], ((0, n_dis_pp - n_dis), (0, 0)))
    dis_et = dis_e.T                                           # (d_pad, n_dis_pp)

    # Hoisted first MLP layer (weights zero-padded to d_pad input lanes).
    h1d = params["W1a"].shape[1]
    w1a_p = jnp.pad(params["W1a"], ((0, d_pad - in_dim), (0, 0)))
    w1b_p = jnp.pad(params["W1b"], ((0, d_pad - in_dim), (0, 0)))
    mic_pb = dense_rows(mic_e, w1a_p) + params["b1"]           # (n_mic_pp, H1)
    # Layout plumbing in the wrapper: per-tile transposed blocks (1, H1, tile_m)
    # so the kernel never needs dynamic lane indexing or in-kernel reshapes.
    mic_ptb3 = mic_pb.reshape(n_mic_pp // tile_m, tile_m, h1d).transpose(0, 2, 1)
    dis_pt = dense_rows(dis_e, w1b_p).T                        # (H1, n_dis_pp)

    w2t = params["W2"].T                                       # (H2, H1)
    b2t = params["b2"].T                                       # (H2, 1)
    waa_col = params["Waa"]                                    # (H2, 1)
    wab_row = jnp.pad(params["Wab"].T, ((0, 0), (0, d_pad - in_dim)))  # (1, d_pad)

    rating_pad = neucf_forward(mic_e, dis_et, mic_ptb3, dis_pt, w2t, b2t,
                               waa_col, wab_row, params["ba"], tile_m, tile_n)
    rating = rating_pad[:n_mic, :n_dis].reshape(-1, 1)         # mic-major pairs
    labels = rel_matrix.reshape(-1, 1)
    return rating, labels


if __name__ == "__main__":
    key = jax.random.PRNGKey(0)
    n_mic, n_dis = 8, 8
    in_micfeat_size, in_disfeat_size = 16, 12
    in_dim = 32
    # NeuCF forward requires layers[0] == 2*in_dim and layers[1] == in_dim.
    layers = [64, 32, 16]
    K = 3                      # propagation order
    node_dropout = 0.1
    N = n_mic + n_dis

    keys = jax.random.split(key, 9)

    # Parameters (deterministic, synthetic, matching the module's shapes).
    W_mic = xavier_uniform(keys[0], (in_micfeat_size, in_dim), gain=1.414)
    W_dis = xavier_uniform(keys[1], (in_disfeat_size, in_dim), gain=1.414)
    W1 = xavier_uniform(keys[2], (layers[0], layers[1]))       # Linear(64,32)^T
    W2 = xavier_uniform(keys[3], (layers[1], layers[2]))       # Linear(32,16)^T
    Wa = xavier_uniform(keys[4], (layers[1] + layers[2], 1))   # Linear(48,1)^T
    params = dict(
        W_mic=W_mic, W_dis=W_dis,
        W1a=W1[:in_dim], W1b=W1[in_dim:],
        b1=jnp.zeros((1, layers[1]), jnp.float32),
        W2=W2, b2=jnp.zeros((1, layers[2]), jnp.float32),
        Waa=Wa[:layers[2]], Wab=Wa[layers[2]:],
        ba=jnp.zeros((1, 1), jnp.float32),
    )
    # NOTE: NeuCF's embedding tables are never used in its forward(), so they
    # are not materialized here.

    # Synthetic undirected graph over the n_mic + n_dis nodes (dense adjacency).
    upper = (jax.random.uniform(keys[5], (N, N)) < 0.3).astype(jnp.float32)
    upper = jnp.triu(upper, k=1)
    A = upper + upper.T

    mic_feat = jax.random.normal(keys[6], (n_mic, in_micfeat_size), jnp.float32)
    dis_feat = jax.random.normal(keys[7], (n_dis, in_disfeat_size), jnp.float32)
    rel_matrix = (jax.random.uniform(keys[8], (n_mic, n_dis)) < 0.5).astype(jnp.float32)

    rating, labels = grand_forward_eval(params, A, mic_feat, dis_feat, rel_matrix,
                                        K=K, node_dropout=node_dropout)
    rating = jax.block_until_ready(rating)
    labels = jax.block_until_ready(labels)
    assert rating.shape == (n_mic * n_dis, 1)
    assert labels.shape == (n_mic * n_dis, 1)
    assert bool(jnp.all(jnp.isfinite(rating)))
    print("KERNEL_OK")
</pallas_src>

<mosaic_0001>
module attributes {stable_mosaic.version = 11 : i64} {
  func.func @_dense_kernel(%arg0: i32, %arg1: memref<8x16xf32, #tpu.memory_space<vmem>>, %arg2: memref<16x128xf32, #tpu.memory_space<vmem>>, %arg3: memref<8x128xf32, #tpu.memory_space<vmem>>) attributes {dimension_semantics = [#tpu.dimension_semantics<parallel>], iteration_bounds = array<i64: 1>, scalar_prefetch = 0 : i64, scratch_operands = 0 : i64, tpu.core_type = #tpu.core_type<tc>, window_params = [{transform_indices = @transform_0, window_bounds = array<i64: 8, 16>}, {pipeline_mode = #tpu.pipeline_mode<synchronous>, transform_indices = @transform_1, window_bounds = array<i64: 16, 128>}, {transform_indices = @transform_2, window_bounds = array<i64: 8, 128>}]} {
    %c0 = arith.constant 0 : index
    %c0_0 = arith.constant 0 : index
    %0 = vector.load %arg1[%c0, %c0_0] : memref<8x16xf32, #tpu.memory_space<vmem>>, vector<8x16xf32>
    %c0_1 = arith.constant 0 : index
    %c0_2 = arith.constant 0 : index
    %1 = vector.load %arg2[%c0_1, %c0_2] : memref<16x128xf32, #tpu.memory_space<vmem>>, vector<16x128xf32>
    %cst = arith.constant dense<0.000000e+00> : vector<8x128xf32>
    %2 = tpu.matmul %0, %1, %cst {dimension_numbers = #tpu.dot_dimension_numbers<[1], [0], [0], [1], [0, 0, 1, 1], [], []>} : vector<8x16xf32>, vector<16x128xf32>, vector<8x128xf32> -> vector<8x128xf32>
    %cst_3 = arith.constant 0.899999976 : f32
    %3 = vector.broadcast %cst_3 : f32 to vector<8x128xf32>
    %4 = arith.mulf %2, %3 : vector<8x128xf32>
    %c0_4 = arith.constant 0 : index
    %c0_5 = arith.constant 0 : index
    %5 = vector.load %arg3[%c0_4, %c0_5] : memref<8x128xf32, #tpu.memory_space<vmem>>, vector<8x128xf32>
    tpu.vector_store %arg3[%c0_4, %c0_5], %4 {strides = array<i32>} : memref<8x128xf32, #tpu.memory_space<vmem>>, vector<8x128xf32>,
    return
  }
  func.func @transform_0(%arg0: i32) -> (i32, i32) {
    %c0_i32 = arith.constant 0 : i32
    %c0_i32_0 = arith.constant 0 : i32
    return %arg0, %c0_i32 : i32, i32
  }
  func.func @transform_1(%arg0: i32) -> (i32, i32) {
    %c0_i32 = arith.constant 0 : i32
    %c0_i32_0 = arith.constant 0 : i32
    %c0_i32_1 = arith.constant 0 : i32
    return %c0_i32, %c0_i32_0 : i32, i32
  }
  func.func @transform_2(%arg0: i32) -> (i32, i32) {
    %c0_i32 = arith.constant 0 : i32
    %c0_i32_0 = arith.constant 0 : i32
    return %arg0, %c0_i32 : i32, i32
  }
}

module attributes {stable_mosaic.version = 11 : i64} {
  func.func @_dense_kernel(%arg0: i32, %arg1: memref<8x12xf32, #tpu.memory_space<vmem>>, %arg2: memref<12x128xf32, #tpu.memory_space<vmem>>, %arg3: memref<8x128xf32, #tpu.memory_space<vmem>>) attributes {dimension_semantics = [#tpu.dimension_semantics<parallel>], iteration_bounds = array<i64: 1>, scalar_prefetch = 0 : i64, scratch_operands = 0 : i64, tpu.core_type = #tpu.core_type<tc>, window_params = [{transform_indices = @transform_0, window_bounds = array<i64: 8, 12>}, {pipeline_mode = #tpu.pipeline_mode<synchronous>, transform_indices = @transform_1, window_bounds = array<i64: 12, 128>}, {transform_indices = @transform_2, window_bounds = array<i64: 8, 128>}]} {
    %c0 = arith.constant 0 : index
    %c0_0 = arith.constant 0 : index
    %0 = vector.load %arg1[%c0, %c0_0] : memref<8x12xf32, #tpu.memory_space<vmem>>, vector<8x12xf32>
    %c0_1 = arith.constant 0 : index
    %c0_2 = arith.constant 0 : index
    %1 = vector.load %arg2[%c0_1, %c0_2] : memref<12x128xf32, #tpu.memory_space<vmem>>, vector<12x128xf32>
    %cst = arith.constant dense<0.000000e+00> : vector<8x128xf32>
    %2 = tpu.matmul %0, %1, %cst {dimension_numbers = #tpu.dot_dimension_numbers<[1], [0], [0], [1], [0, 0, 1, 1], [], []>} : vector<8x12xf32>, vector<12x128xf32>, vector<8x128xf32> -> vector<8x128xf32>
    %cst_3 = arith.constant 0.899999976 : f32
    %3 = vector.broadcast %cst_3 : f32 to vector<8x128xf32>
    %4 = arith.mulf %2, %3 : vector<8x128xf32>
    %c0_4 = arith.constant 0 : index
    %c0_5 = arith.constant 0 : index
    %5 = vector.load %arg3[%c0_4, %c0_5] : memref<8x128xf32, #tpu.memory_space<vmem>>, vector<8x128xf32>
    tpu.vector_store %arg3[%c0_4, %c0_5], %4 {strides = array<i32>} : memref<8x128xf32, #tpu.memory_space<vmem>>, vector<8x128xf32>,
    return
  }
  func.func @transform_0(%arg0: i32) -> (i32, i32) {
    %c0_i32 = arith.constant 0 : i32
    %c0_i32_0 = arith.constant 0 : i32
    return %arg0, %c0_i32 : i32, i32
  }
  func.func @transform_1(%arg0: i32) -> (i32, i32) {
    %c0_i32 = arith.constant 0 : i32
    %c0_i32_0 = arith.constant 0 : i32
    %c0_i32_1 = arith.constant 0 : i32
    return %c0_i32, %c0_i32_0 : i32, i32
  }
  func.func @transform_2(%arg0: i32) -> (i32, i32) {
    %c0_i32 = arith.constant 0 : i32
    %c0_i32_0 = arith.constant 0 : i32
    return %arg0, %c0_i32 : i32, i32
  }
}

module attributes {stable_mosaic.version = 11 : i64} {
  func.func @_prop_step_kernel(%arg0: i32, %arg1: i32, %arg2: memref<128x128xi8, #tpu.memory_space<vmem>>, %arg3: memref<128x1xf32, #tpu.memory_space<vmem>>, %arg4: memref<128x1xf32, #tpu.memory_space<vmem>>, %arg5: memref<128x128xf32, #tpu.memory_space<vmem>>, %arg6: memref<128x128xf32, #tpu.memory_space<vmem>>, %arg7: memref<128x128xf32, #tpu.memory_space<vmem>>, %arg8: memref<128x128xf32, #tpu.memory_space<vmem>>, %arg9: memref<128x128xf32, #tpu.memory_space<vmem>>) attributes {dimension_semantics = [#tpu.dimension_semantics<parallel>, #tpu.dimension_semantics<arbitrary>], iteration_bounds = array<i64: 1, 1>, scalar_prefetch = 0 : i64, scratch_operands = 1 : i64, tpu.core_type = #tpu.core_type<tc>, window_params = [{transform_indices = @transform_0, window_bounds = array<i64: 128, 128>}, {transform_indices = @transform_1, window_bounds = array<i64: 128, 1>}, {transform_indices = @transform_2, window_bounds = array<i64: 128, 1>}, {transform_indices = @transform_3, window_bounds = array<i64: 128, 128>}, {transform_indices = @transform_4, window_bounds = array<i64: 128, 128>}, {transform_indices = @transform_5, window_bounds = array<i64: 128, 128>}, {transform_indices = @transform_6, window_bounds = array<i64: 128, 128>}]} {
    %c0_i32 = arith.constant 0 : i32
    %0 = arith.cmpi eq, %arg1, %c0_i32 : i32
    %1 = arith.extui %0 : i1 to i32
    %c0_i32_0 = arith.constant 0 : i32
    %2 = arith.cmpi ne, %1, %c0_i32_0 : i32
    scf.if %2 {
      %cst_12 = arith.constant 0.000000e+00 : f32
      %16 = vector.broadcast %cst_12 : f32 to vector<128x128xf32>
      %c0_13 = arith.constant 0 : index
      %c0_14 = arith.constant 0 : index
      %17 = vector.load %arg9[%c0_13, %c0_14] : memref<128x128xf32, #tpu.memory_space<vmem>>, vector<128x128xf32>
      tpu.vector_store %arg9[%c0_13, %c0_14], %16 {strides = array<i32>} : memref<128x128xf32, #tpu.memory_space<vmem>>, vector<128x128xf32>,
    } else {
    }
    %c0 = arith.constant 0 : index
    %c0_1 = arith.constant 0 : index
    %3 = vector.load %arg2[%c0, %c0_1] : memref<128x128xi8, #tpu.memory_space<vmem>>, vector<128x128xi8>
    %4 = arith.sitofp %3 : vector<128x128xi8> to vector<128x128xf32>
    %c0_2 = arith.constant 0 : index
    %c0_3 = arith.constant 0 : index
    %5 = vector.load %arg5[%c0_2, %c0_3] : memref<128x128xf32, #tpu.memory_space<vmem>>, vector<128x128xf32>
    %c0_4 = arith.constant 0 : index
    %c0_5 = arith.constant 0 : index
    %6 = vector.load %arg3[%c0_4, %c0_5] : memref<128x1xf32, #tpu.memory_space<vmem>>, vector<128x1xf32>
    %7 = vector.broadcast %6 : vector<128x1xf32> to vector<128x128xf32>
    %8 = arith.mulf %5, %7 : vector<128x128xf32>
    %c0_6 = arith.constant 0 : index
    %c0_7 = arith.constant 0 : index
    %9 = vector.load %arg9[%c0_6, %c0_7] : memref<128x128xf32, #tpu.memory_space<vmem>>, vector<128x128xf32>
    %cst = arith.constant dense<0.000000e+00> : vector<128x128xf32>
    %10 = tpu.matmul %4, %8, %cst {dimension_numbers = #tpu.dot_dimension_numbers<[1], [0], [0], [1], [0, 0, 1, 1], [], []>} : vector<128x128xf32>, vector<128x128xf32>, vector<128x128xf32> -> vector<128x128xf32>
    %11 = arith.addf %9, %10 : vector<128x128xf32>
    %c0_8 = arith.constant 0 : index
    %c0_9 = arith.constant 0 : index
    %12 = vector.load %arg9[%c0_8, %c0_9] : memref<128x128xf32, #tpu.memory_space<vmem>>, vector<128x128xf32>
    tpu.vector_store %arg9[%c0_8, %c0_9], %11 {strides = array<i32>} : memref<128x128xf32, #tpu.memory_space<vmem>>, vector<128x128xf32>,
    %c0_i32_10 = arith.constant 0 : i32
    %13 = arith.cmpi eq, %arg1, %c0_i32_10 : i32
    %14 = arith.extui %13 : i1 to i32
    %c0_i32_11 = arith.constant 0 : i32
    %15 = arith.cmpi ne, %14, %c0_i32_11 : i32
    scf.if %15 {
      %c0_12 = arith.constant 0 : index
      %c0_13 = arith.constant 0 : index
      %16 = vector.load %arg9[%c0_12, %c0_13] : memref<128x128xf32, #tpu.memory_space<vmem>>, vector<128x128xf32>
      %c0_14 = arith.constant 0 : index
      %c0_15 = arith.constant 0 : index
      %17 = vector.load %arg4[%c0_14, %c0_15] : memref<128x1xf32, #tpu.memory_space<vmem>>, vector<128x1xf32>
      %18 = vector.broadcast %17 : vector<128x1xf32> to vector<128x128xf32>
      %19 = arith.mulf %16, %18 : vector<128x128xf32>
      %c0_16 = arith.constant 0 : index
      %c0_17 = arith.constant 0 : index
      %20 = vector.load %arg7[%c0_16, %c0_17] : memref<128x128xf32, #tpu.memory_space<vmem>>, vector<128x128xf32>
      tpu.vector_store %arg7[%c0_16, %c0_17], %19 {strides = array<i32>} : memref<128x128xf32, #tpu.memory_space<vmem>>, vector<128x128xf32>,
      %c0_18 = arith.constant 0 : index
      %c0_19 = arith.constant 0 : index
      %21 = vector.load %arg6[%c0_18, %c0_19] : memref<128x128xf32, #tpu.memory_space<vmem>>, vector<128x128xf32>
      %22 = arith.addf %21, %19 : vector<128x128xf32>
      %c0_20 = arith.constant 0 : index
      %c0_21 = arith.constant 0 : index
      %23 = vector.load %arg8[%c0_20, %c0_21] : memref<128x128xf32, #tpu.memory_space<vmem>>, vector<128x128xf32>
      tpu.vector_store %arg8[%c0_20, %c0_21], %22 {strides = array<i32>} : memref<128x128xf32, #tpu.memory_space<vmem>>, vector<128x128xf32>,
    } else {
    }
    return
  }
  func.func @transform_0(%arg0: i32, %arg1: i32) -> (i32, i32) {
    %c0_i32 = arith.constant 0 : i32
    return %arg0, %arg1 : i32, i32
  }
  func.func @transform_1(%arg0: i32, %arg1: i32) -> (i32, i32) {
    %c0_i32 = arith.constant 0 : i32
    %c0_i32_0 = arith.constant 0 : i32
    return %arg1, %c0_i32 : i32, i32
  }
  func.func @transform_2(%arg0: i32, %arg1: i32) -> (i32, i32) {
    %c0_i32 = arith.constant 0 : i32
    %c0_i32_0 = arith.constant 0 : i32
    return %arg0, %c0_i32 : i32, i32
  }
  func.func @transform_3(%arg0: i32, %arg1: i32) -> (i32, i32) {
    %c0_i32 = arith.constant 0 : i32
    %c0_i32_0 = arith.constant 0 : i32
    return %arg1, %c0_i32 : i32, i32
  }
  func.func @transform_4(%arg0: i32, %arg1: i32) -> (i32, i32) {
    %c0_i32 = arith.constant 0 : i32
    %c0_i32_0 = arith.constant 0 : i32
    return %arg0, %c0_i32 : i32, i32
  }
  func.func @transform_5(%arg0: i32, %arg1: i32) -> (i32, i32) {
    %c0_i32 = arith.constant 0 : i32
    %c0_i32_0 = arith.constant 0 : i32
    return %arg0, %c0_i32 : i32, i32
  }
  func.func @transform_6(%arg0: i32, %arg1: i32) -> (i32, i32) {
    %c0_i32 = arith.constant 0 : i32
    %c0_i32_0 = arith.constant 0 : i32
    return %arg0, %c0_i32 : i32, i32
  }
}

module attributes {stable_mosaic.version = 11 : i64} {
  func.func @_prop_step_kernel(%arg0: i32, %arg1: i32, %arg2: memref<128x128xi8, #tpu.memory_space<vmem>>, %arg3: memref<128x1xf32, #tpu.memory_space<vmem>>, %arg4: memref<128x1xf32, #tpu.memory_space<vmem>>, %arg5: memref<128x128xf32, #tpu.memory_space<vmem>>, %arg6: memref<128x128xf32, #tpu.memory_space<vmem>>, %arg7: memref<128x128xf32, #tpu.memory_space<vmem>>, %arg8: memref<128x128xf32, #tpu.memory_space<vmem>>, %arg9: memref<128x128xf32, #tpu.memory_space<vmem>>) attributes {dimension_semantics = [#tpu.dimension_semantics<parallel>, #tpu.dimension_semantics<arbitrary>], iteration_bounds = array<i64: 1, 1>, scalar_prefetch = 0 : i64, scratch_operands = 1 : i64, tpu.core_type = #tpu.core_type<tc>, window_params = [{transform_indices = @transform_0, window_bounds = array<i64: 128, 128>}, {transform_indices = @transform_1, window_bounds = array<i64: 128, 1>}, {transform_indices = @transform_2, window_bounds = array<i64: 128, 1>}, {transform_indices = @transform_3, window_bounds = array<i64: 128, 128>}, {transform_indices = @transform_4, window_bounds = array<i64: 128, 128>}, {transform_indices = @transform_5, window_bounds = array<i64: 128, 128>}, {transform_indices = @transform_6, window_bounds = array<i64: 128, 128>}]} {
    %c0_i32 = arith.constant 0 : i32
    %0 = arith.cmpi eq, %arg1, %c0_i32 : i32
    %1 = arith.extui %0 : i1 to i32
    %c0_i32_0 = arith.constant 0 : i32
    %2 = arith.cmpi ne, %1, %c0_i32_0 : i32
    scf.if %2 {
      %cst_12 = arith.constant 0.000000e+00 : f32
      %16 = vector.broadcast %cst_12 : f32 to vector<128x128xf32>
      %c0_13 = arith.constant 0 : index
      %c0_14 = arith.constant 0 : index
      %17 = vector.load %arg9[%c0_13, %c0_14] : memref<128x128xf32, #tpu.memory_space<vmem>>, vector<128x128xf32>
      tpu.vector_store %arg9[%c0_13, %c0_14], %16 {strides = array<i32>} : memref<128x128xf32, #tpu.memory_space<vmem>>, vector<128x128xf32>,
    } else {
    }
    %c0 = arith.constant 0 : index
    %c0_1 = arith.constant 0 : index
    %3 = vector.load %arg2[%c0, %c0_1] : memref<128x128xi8, #tpu.memory_space<vmem>>, vector<128x128xi8>
    %4 = arith.sitofp %3 : vector<128x128xi8> to vector<128x128xf32>
    %c0_2 = arith.constant 0 : index
    %c0_3 = arith.constant 0 : index
    %5 = vector.load %arg5[%c0_2, %c0_3] : memref<128x128xf32, #tpu.memory_space<vmem>>, vector<128x128xf32>
    %c0_4 = arith.constant 0 : index
    %c0_5 = arith.constant 0 : index
    %6 = vector.load %arg3[%c0_4, %c0_5] : memref<128x1xf32, #tpu.memory_space<vmem>>, vector<128x1xf32>
    %7 = vector.broadcast %6 : vector<128x1xf32> to vector<128x128xf32>
    %8 = arith.mulf %5, %7 : vector<128x128xf32>
    %c0_6 = arith.constant 0 : index
    %c0_7 = arith.constant 0 : index
    %9 = vector.load %arg9[%c0_6, %c0_7] : memref<128x128xf32, #tpu.memory_space<vmem>>, vector<128x128xf32>
    %cst = arith.constant dense<0.000000e+00> : vector<128x128xf32>
    %10 = tpu.matmul %4, %8, %cst {dimension_numbers = #tpu.dot_dimension_numbers<[1], [0], [0], [1], [0, 0, 1, 1], [], []>} : vector<128x128xf32>, vector<128x128xf32>, vector<128x128xf32> -> vector<128x128xf32>
    %11 = arith.addf %9, %10 : vector<128x128xf32>
    %c0_8 = arith.constant 0 : index
    %c0_9 = arith.constant 0 : index
    %12 = vector.load %arg9[%c0_8, %c0_9] : memref<128x128xf32, #tpu.memory_space<vmem>>, vector<128x128xf32>
    tpu.vector_store %arg9[%c0_8, %c0_9], %11 {strides = array<i32>} : memref<128x128xf32, #tpu.memory_space<vmem>>, vector<128x128xf32>,
    %c0_i32_10 = arith.constant 0 : i32
    %13 = arith.cmpi eq, %arg1, %c0_i32_10 : i32
    %14 = arith.extui %13 : i1 to i32
    %c0_i32_11 = arith.constant 0 : i32
    %15 = arith.cmpi ne, %14, %c0_i32_11 : i32
    scf.if %15 {
      %c0_12 = arith.constant 0 : index
      %c0_13 = arith.constant 0 : index
      %16 = vector.load %arg9[%c0_12, %c0_13] : memref<128x128xf32, #tpu.memory_space<vmem>>, vector<128x128xf32>
      %c0_14 = arith.constant 0 : index
      %c0_15 = arith.constant 0 : index
      %17 = vector.load %arg4[%c0_14, %c0_15] : memref<128x1xf32, #tpu.memory_space<vmem>>, vector<128x1xf32>
      %18 = vector.broadcast %17 : vector<128x1xf32> to vector<128x128xf32>
      %19 = arith.mulf %16, %18 : vector<128x128xf32>
      %c0_16 = arith.constant 0 : index
      %c0_17 = arith.constant 0 : index
      %20 = vector.load %arg7[%c0_16, %c0_17] : memref<128x128xf32, #tpu.memory_space<vmem>>, vector<128x128xf32>
      tpu.vector_store %arg7[%c0_16, %c0_17], %19 {strides = array<i32>} : memref<128x128xf32, #tpu.memory_space<vmem>>, vector<128x128xf32>,
      %c0_18 = arith.constant 0 : index
      %c0_19 = arith.constant 0 : index
      %21 = vector.load %arg6[%c0_18, %c0_19] : memref<128x128xf32, #tpu.memory_space<vmem>>, vector<128x128xf32>
      %22 = arith.addf %21, %19 : vector<128x128xf32>
      %c0_20 = arith.constant 0 : index
      %c0_21 = arith.constant 0 : index
      %23 = vector.load %arg8[%c0_20, %c0_21] : memref<128x128xf32, #tpu.memory_space<vmem>>, vector<128x128xf32>
      tpu.vector_store %arg8[%c0_20, %c0_21], %22 {strides = array<i32>} : memref<128x128xf32, #tpu.memory_space<vmem>>, vector<128x128xf32>,
    } else {
    }
    return
  }
  func.func @transform_0(%arg0: i32, %arg1: i32) -> (i32, i32) {
    %c0_i32 = arith.constant 0 : i32
    return %arg0, %arg1 : i32, i32
  }
  func.func @transform_1(%arg0: i32, %arg1: i32) -> (i32, i32) {
    %c0_i32 = arith.constant 0 : i32
    %c0_i32_0 = arith.constant 0 : i32
    return %arg1, %c0_i32 : i32, i32
  }
  func.func @transform_2(%arg0: i32, %arg1: i32) -> (i32, i32) {
    %c0_i32 = arith.constant 0 : i32
    %c0_i32_0 = arith.constant 0 : i32
    return %arg0, %c0_i32 : i32, i32
  }
  func.func @transform_3(%arg0: i32, %arg1: i32) -> (i32, i32) {
    %c0_i32 = arith.constant 0 : i32
    %c0_i32_0 = arith.constant 0 : i32
    return %arg1, %c0_i32 : i32, i32
  }
  func.func @transform_4(%arg0: i32, %arg1: i32) -> (i32, i32) {
    %c0_i32 = arith.constant 0 : i32
    %c0_i32_0 = arith.constant 0 : i32
    return %arg0, %c0_i32 : i32, i32
  }
  func.func @transform_5(%arg0: i32, %arg1: i32) -> (i32, i32) {
    %c0_i32 = arith.constant 0 : i32
    %c0_i32_0 = arith.constant 0 : i32
    return %arg0, %c0_i32 : i32, i32
  }
  func.func @transform_6(%arg0: i32, %arg1: i32) -> (i32, i32) {
    %c0_i32 = arith.constant 0 : i32
    %c0_i32_0 = arith.constant 0 : i32
    return %arg0, %c0_i32 : i32, i32
  }
}

module attributes {stable_mosaic.version = 11 : i64} {
  func.func @_dense_kernel(%arg0: i32, %arg1: memref<128x128xf32, #tpu.memory_space<vmem>>, %arg2: memref<128x32xf32, #tpu.memory_space<vmem>>, %arg3: memref<128x32xf32, #tpu.memory_space<vmem>>) attributes {dimension_semantics = [#tpu.dimension_semantics<parallel>], iteration_bounds = array<i64: 1>, scalar_prefetch = 0 : i64, scratch_operands = 0 : i64, tpu.core_type = #tpu.core_type<tc>, window_params = [{transform_indices = @transform_0, window_bounds = array<i64: 128, 128>}, {pipeline_mode = #tpu.pipeline_mode<synchronous>, transform_indices = @transform_1, window_bounds = array<i64: 128, 32>}, {transform_indices = @transform_2, window_bounds = array<i64: 128, 32>}]} {
    %c0 = arith.constant 0 : index
    %c0_0 = arith.constant 0 : index
    %0 = vector.load %arg1[%c0, %c0_0] : memref<128x128xf32, #tpu.memory_space<vmem>>, vector<128x128xf32>
    %c0_1 = arith.constant 0 : index
    %c0_2 = arith.constant 0 : index
    %1 = vector.load %arg2[%c0_1, %c0_2] : memref<128x32xf32, #tpu.memory_space<vmem>>, vector<128x32xf32>
    %cst = arith.constant dense<0.000000e+00> : vector<128x32xf32>
    %2 = tpu.matmul %0, %1, %cst {dimension_numbers = #tpu.dot_dimension_numbers<[1], [0], [0], [1], [0, 0, 1, 1], [], []>} : vector<128x128xf32>, vector<128x32xf32>, vector<128x32xf32> -> vector<128x32xf32>
    %cst_3 = arith.constant 1.000000e+00 : f32
    %3 = vector.broadcast %cst_3 : f32 to vector<128x32xf32>
    %4 = arith.mulf %2, %3 : vector<128x32xf32>
    %c0_4 = arith.constant 0 : index
    %c0_5 = arith.constant 0 : index
    %5 = vector.load %arg3[%c0_4, %c0_5] : memref<128x32xf32, #tpu.memory_space<vmem>>, vector<128x32xf32>
    tpu.vector_store %arg3[%c0_4, %c0_5], %4 {strides = array<i32>} : memref<128x32xf32, #tpu.memory_space<vmem>>, vector<128x32xf32>,
    return
  }
  func.func @transform_0(%arg0: i32) -> (i32, i32) {
    %c0_i32 = arith.constant 0 : i32
    %c0_i32_0 = arith.constant 0 : i32
    return %arg0, %c0_i32 : i32, i32
  }
  func.func @transform_1(%arg0: i32) -> (i32, i32) {
    %c0_i32 = arith.constant 0 : i32
    %c0_i32_0 = arith.constant 0 : i32
    %c0_i32_1 = arith.constant 0 : i32
    return %c0_i32, %c0_i32_0 : i32, i32
  }
  func.func @transform_2(%arg0: i32) -> (i32, i32) {
    %c0_i32 = arith.constant 0 : i32
    %c0_i32_0 = arith.constant 0 : i32
    return %arg0, %c0_i32 : i32, i32
  }
}

module attributes {stable_mosaic.version = 11 : i64} {
  func.func @_dense_kernel(%arg0: i32, %arg1: memref<32x128xf32, #tpu.memory_space<vmem>>, %arg2: memref<128x32xf32, #tpu.memory_space<vmem>>, %arg3: memref<32x32xf32, #tpu.memory_space<vmem>>) attributes {dimension_semantics = [#tpu.dimension_semantics<parallel>], iteration_bounds = array<i64: 1>, scalar_prefetch = 0 : i64, scratch_operands = 0 : i64, tpu.core_type = #tpu.core_type<tc>, window_params = [{transform_indices = @transform_0, window_bounds = array<i64: 32, 128>}, {pipeline_mode = #tpu.pipeline_mode<synchronous>, transform_indices = @transform_1, window_bounds = array<i64: 128, 32>}, {transform_indices = @transform_2, window_bounds = array<i64: 32, 32>}]} {
    %c0 = arith.constant 0 : index
    %c0_0 = arith.constant 0 : index
    %0 = vector.load %arg1[%c0, %c0_0] : memref<32x128xf32, #tpu.memory_space<vmem>>, vector<32x128xf32>
    %c0_1 = arith.constant 0 : index
    %c0_2 = arith.constant 0 : index
    %1 = vector.load %arg2[%c0_1, %c0_2] : memref<128x32xf32, #tpu.memory_space<vmem>>, vector<128x32xf32>
    %cst = arith.constant dense<0.000000e+00> : vector<32x32xf32>
    %2 = tpu.matmul %0, %1, %cst {dimension_numbers = #tpu.dot_dimension_numbers<[1], [0], [0], [1], [0, 0, 1, 1], [], []>} : vector<32x128xf32>, vector<128x32xf32>, vector<32x32xf32> -> vector<32x32xf32>
    %cst_3 = arith.constant 1.000000e+00 : f32
    %3 = vector.broadcast %cst_3 : f32 to vector<32x32xf32>
    %4 = arith.mulf %2, %3 : vector<32x32xf32>
    %c0_4 = arith.constant 0 : index
    %c0_5 = arith.constant 0 : index
    %5 = vector.load %arg3[%c0_4, %c0_5] : memref<32x32xf32, #tpu.memory_space<vmem>>, vector<32x32xf32>
    tpu.vector_store %arg3[%c0_4, %c0_5], %4 {strides = array<i32>} : memref<32x32xf32, #tpu.memory_space<vmem>>, vector<32x32xf32>,
    return
  }
  func.func @transform_0(%arg0: i32) -> (i32, i32) {
    %c0_i32 = arith.constant 0 : i32
    %c0_i32_0 = arith.constant 0 : i32
    return %arg0, %c0_i32 : i32, i32
  }
  func.func @transform_1(%arg0: i32) -> (i32, i32) {
    %c0_i32 = arith.constant 0 : i32
    %c0_i32_0 = arith.constant 0 : i32
    %c0_i32_1 = arith.constant 0 : i32
    return %c0_i32, %c0_i32_0 : i32, i32
  }
  func.func @transform_2(%arg0: i32) -> (i32, i32) {
    %c0_i32 = arith.constant 0 : i32
    %c0_i32_0 = arith.constant 0 : i32
    return %arg0, %c0_i32 : i32, i32
  }
}

module attributes {stable_mosaic.version = 11 : i64} {
  func.func @_neucf_kernel(%arg0: i32, %arg1: i32, %arg2: memref<32x128xf32, #tpu.memory_space<vmem>>, %arg3: memref<128x128xf32, #tpu.memory_space<vmem>>, %arg4: memref<1x32x32xf32, #tpu.memory_space<vmem>>, %arg5: memref<32x128xf32, #tpu.memory_space<vmem>>, %arg6: memref<16x32xf32, #tpu.memory_space<vmem>>, %arg7: memref<16x1xf32, #tpu.memory_space<vmem>>, %arg8: memref<16x1xf32, #tpu.memory_space<vmem>>, %arg9: memref<1x128xf32, #tpu.memory_space<vmem>>, %arg10: memref<1x1xf32, #tpu.memory_space<vmem>>, %arg11: memref<32x128xf32, #tpu.memory_space<vmem>>) attributes {dimension_semantics = [#tpu.dimension_semantics<parallel>, #tpu.dimension_semantics<parallel>], iteration_bounds = array<i64: 1, 1>, scalar_prefetch = 0 : i64, scratch_operands = 0 : i64, tpu.core_type = #tpu.core_type<tc>, window_params = [{transform_indices = @transform_0, window_bounds = array<i64: 32, 128>}, {transform_indices = @transform_1, window_bounds = array<i64: 128, 128>}, {transform_indices = @transform_2, window_bounds = array<i64: 1, 32, 32>}, {transform_indices = @transform_3, window_bounds = array<i64: 32, 128>}, {pipeline_mode = #tpu.pipeline_mode<synchronous>, transform_indices = @transform_4, window_bounds = array<i64: 16, 32>}, {pipeline_mode = #tpu.pipeline_mode<synchronous>, transform_indices = @transform_5, window_bounds = array<i64: 16, 1>}, {pipeline_mode = #tpu.pipeline_mode<synchronous>, transform_indices = @transform_6, window_bounds = array<i64: 16, 1>}, {pipeline_mode = #tpu.pipeline_mode<synchronous>, transform_indices = @transform_7, window_bounds = array<i64: 1, 128>}, {pipeline_mode = #tpu.pipeline_mode<synchronous>, transform_indices = @transform_8, window_bounds = array<i64: 1, 1>}, {transform_indices = @transform_9, window_bounds = array<i64: 32, 128>}]} {
    %c0 = arith.constant 0 : index
    %c0_0 = arith.constant 0 : index
    %c0_1 = arith.constant 0 : index
    %0 = vector.load %arg4[%c0, %c0_0, %c0_1] : memref<1x32x32xf32, #tpu.memory_space<vmem>>, vector<1x32x32xf32>
    %1 = vector.shape_cast %0 : vector<1x32x32xf32> to vector<32x32xf32>
    %c0_2 = arith.constant 0 : index
    %c0_3 = arith.constant 0 : index
    %2 = vector.load %arg5[%c0_2, %c0_3] : memref<32x128xf32, #tpu.memory_space<vmem>>, vector<32x128xf32>
    %c0_4 = arith.constant 0 : index
    %c0_5 = arith.constant 0 : index
    %3 = vector.load %arg6[%c0_4, %c0_5] : memref<16x32xf32, #tpu.memory_space<vmem>>, vector<16x32xf32>
    %c0_6 = arith.constant 0 : index
    %c0_7 = arith.constant 0 : index
    %4 = vector.load %arg7[%c0_6, %c0_7] : memref<16x1xf32, #tpu.memory_space<vmem>>, vector<16x1xf32>
    %c0_8 = arith.constant 0 : index
    %c0_9 = arith.constant 0 : index
    %5 = vector.load %arg8[%c0_8, %c0_9] : memref<16x1xf32, #tpu.memory_space<vmem>>, vector<16x1xf32>
    %c0_10 = arith.constant 0 : index
    %c0_11 = arith.constant 0 : index
    %6 = vector.load %arg2[%c0_10, %c0_11] : memref<32x128xf32, #tpu.memory_space<vmem>>, vector<32x128xf32>
    %c0_12 = arith.constant 0 : index
    %c0_13 = arith.constant 0 : index
    %7 = vector.load %arg9[%c0_12, %c0_13] : memref<1x128xf32, #tpu.memory_space<vmem>>, vector<1x128xf32>
    %8 = vector.broadcast %7 : vector<1x128xf32> to vector<32x128xf32>
    %9 = arith.mulf %6, %8 : vector<32x128xf32>
    %c0_14 = arith.constant 0 : index
    %c0_15 = arith.constant 0 : index
    %10 = vector.load %arg3[%c0_14, %c0_15] : memref<128x128xf32, #tpu.memory_space<vmem>>, vector<128x128xf32>
    %cst = arith.constant dense<0.000000e+00> : vector<32x128xf32>
    %11 = tpu.matmul %9, %10, %cst {dimension_numbers = #tpu.dot_dimension_numbers<[1], [0], [0], [1], [0, 0, 1, 1], [], []>} : vector<32x128xf32>, vector<128x128xf32>, vector<32x128xf32> -> vector<32x128xf32>
    %12 = vector.extract_strided_slice %1 {offsets = [0, 0], sizes = [32, 1], strides = [1, 1]} : vector<32x32xf32> to vector<32x1xf32>
    %13 = vector.broadcast %12 : vector<32x1xf32> to vector<32x128xf32>
    %14 = arith.addf %13, %2 : vector<32x128xf32>
    %cst_16 = arith.constant 0.000000e+00 : f32
    %15 = vector.broadcast %cst_16 : f32 to vector<32x128xf32>
    %16 = arith.maximumf %14, %15 : vector<32x128xf32>
    %cst_17 = arith.constant dense<0.000000e+00> : vector<16x128xf32>
    %17 = tpu.matmul %3, %16, %cst_17 {dimension_numbers = #tpu.dot_dimension_numbers<[1], [0], [0], [1], [0, 0, 1, 1], [], []>} : vector<16x32xf32>, vector<32x128xf32>, vector<16x128xf32> -> vector<16x128xf32>
    %18 = vector.broadcast %4 : vector<16x1xf32> to vector<16x128xf32>
    %19 = arith.addf %17, %18 : vector<16x128xf32>
    %cst_18 = arith.constant 0.000000e+00 : f32
    %20 = vector.broadcast %cst_18 : f32 to vector<16x128xf32>
    %21 = arith.maximumf %19, %20 : vector<16x128xf32>
    %22 = vector.broadcast %5 : vector<16x1xf32> to vector<16x128xf32>
    %23 = arith.mulf %21, %22 : vector<16x128xf32>
    %cst_19 = arith.constant dense<0.000000e+00> : vector<128xf32>
    %24 = vector.multi_reduction <add>, %23, %cst_19 [0] : vector<16x128xf32> to vector<128xf32>
    %25 = vector.shape_cast %24 : vector<128xf32> to vector<1x128xf32>
    %26 = vector.extract_strided_slice %1 {offsets = [0, 1], sizes = [32, 1], strides = [1, 1]} : vector<32x32xf32> to vector<32x1xf32>
    %27 = vector.broadcast %26 : vector<32x1xf32> to vector<32x128xf32>
    %28 = arith.addf %27, %2 : vector<32x128xf32>
    %cst_20 = arith.constant 0.000000e+00 : f32
    %29 = vector.broadcast %cst_20 : f32 to vector<32x128xf32>
    %30 = arith.maximumf %28, %29 : vector<32x128xf32>
    %cst_21 = arith.constant dense<0.000000e+00> : vector<16x128xf32>
    %31 = tpu.matmul %3, %30, %cst_21 {dimension_numbers = #tpu.dot_dimension_numbers<[1], [0], [0], [1], [0, 0, 1, 1], [], []>} : vector<16x32xf32>, vector<32x128xf32>, vector<16x128xf32> -> vector<16x128xf32>
    %32 = vector.broadcast %4 : vector<16x1xf32> to vector<16x128xf32>
    %33 = arith.addf %31, %32 : vector<16x128xf32>
    %cst_22 = arith.constant 0.000000e+00 : f32
    %34 = vector.broadcast %cst_22 : f32 to vector<16x128xf32>
    %35 = arith.maximumf %33, %34 : vector<16x128xf32>
    %36 = vector.broadcast %5 : vector<16x1xf32> to vector<16x128xf32>
    %37 = arith.mulf %35, %36 : vector<16x128xf32>
    %cst_23 = arith.constant dense<0.000000e+00> : vector<128xf32>
    %38 = vector.multi_reduction <add>, %37, %cst_23 [0] : vector<16x128xf32> to vector<128xf32>
    %39 = vector.shape_cast %38 : vector<128xf32> to vector<1x128xf32>
    %40 = vector.extract_strided_slice %1 {offsets = [0, 2], sizes = [32, 1], strides = [1, 1]} : vector<32x32xf32> to vector<32x1xf32>
    %41 = vector.broadcast %40 : vector<32x1xf32> to vector<32x128xf32>
    %42 = arith.addf %41, %2 : vector<32x128xf32>
    %cst_24 = arith.constant 0.000000e+00 : f32
    %43 = vector.broadcast %cst_24 : f32 to vector<32x128xf32>
    %44 = arith.maximumf %42, %43 : vector<32x128xf32>
    %cst_25 = arith.constant dense<0.000000e+00> : vector<16x128xf32>
    %45 = tpu.matmul %3, %44, %cst_25 {dimension_numbers = #tpu.dot_dimension_numbers<[1], [0], [0], [1], [0, 0, 1, 1], [], []>} : vector<16x32xf32>, vector<32x128xf32>, vector<16x128xf32> -> vector<16x128xf32>
    %46 = vector.broadcast %4 : vector<16x1xf32> to vector<16x128xf32>
    %47 = arith.addf %45, %46 : vector<16x128xf32>
    %cst_26 = arith.constant 0.000000e+00 : f32
    %48 = vector.broadcast %cst_26 : f32 to vector<16x128xf32>
    %49 = arith.maximumf %47, %48 : vector<16x128xf32>
    %50 = vector.broadcast %5 : vector<16x1xf32> to vector<16x128xf32>
    %51 = arith.mulf %49, %50 : vector<16x128xf32>
    %cst_27 = arith.constant dense<0.000000e+00> : vector<128xf32>
    %52 = vector.multi_reduction <add>, %51, %cst_27 [0] : vector<16x128xf32> to vector<128xf32>
    %53 = vector.shape_cast %52 : vector<128xf32> to vector<1x128xf32>
    %54 = vector.extract_strided_slice %1 {offsets = [0, 3], sizes = [32, 1], strides = [1, 1]} : vector<32x32xf32> to vector<32x1xf32>
    %55 = vector.broadcast %54 : vector<32x1xf32> to vector<32x128xf32>
    %56 = arith.addf %55, %2 : vector<32x128xf32>
    %cst_28 = arith.constant 0.000000e+00 : f32
    %57 = vector.broadcast %cst_28 : f32 to vector<32x128xf32>
    %58 = arith.maximumf %56, %57 : vector<32x128xf32>
    %cst_29 = arith.constant dense<0.000000e+00> : vector<16x128xf32>
    %59 = tpu.matmul %3, %58, %cst_29 {dimension_numbers = #tpu.dot_dimension_numbers<[1], [0], [0], [1], [0, 0, 1, 1], [], []>} : vector<16x32xf32>, vector<32x128xf32>, vector<16x128xf32> -> vector<16x128xf32>
    %60 = vector.broadcast %4 : vector<16x1xf32> to vector<16x128xf32>
    %61 = arith.addf %59, %60 : vector<16x128xf32>
    %cst_30 = arith.constant 0.000000e+00 : f32
    %62 = vector.broadcast %cst_30 : f32 to vector<16x128xf32>
    %63 = arith.maximumf %61, %62 : vector<16x128xf32>
    %64 = vector.broadcast %5 : vector<16x1xf32> to vector<16x128xf32>
    %65 = arith.mulf %63, %64 : vector<16x128xf32>
    %cst_31 = arith.constant dense<0.000000e+00> : vector<128xf32>
    %66 = vector.multi_reduction <add>, %65, %cst_31 [0] : vector<16x128xf32> to vector<128xf32>
    %67 = vector.shape_cast %66 : vector<128xf32> to vector<1x128xf32>
    %68 = vector.extract_strided_slice %1 {offsets = [0, 4], sizes = [32, 1], strides = [1, 1]} : vector<32x32xf32> to vector<32x1xf32>
    %69 = vector.broadcast %68 : vector<32x1xf32> to vector<32x128xf32>
    %70 = arith.addf %69, %2 : vector<32x128xf32>
    %cst_32 = arith.constant 0.000000e+00 : f32
    %71 = vector.broadcast %cst_32 : f32 to vector<32x128xf32>
    %72 = arith.maximumf %70, %71 : vector<32x128xf32>
    %cst_33 = arith.constant dense<0.000000e+00> : vector<16x128xf32>
    %73 = tpu.matmul %3, %72, %cst_33 {dimension_numbers = #tpu.dot_dimension_numbers<[1], [0], [0], [1], [0, 0, 1, 1], [], []>} : vector<16x32xf32>, vector<32x128xf32>, vector<16x128xf32> -> vector<16x128xf32>
    %74 = vector.broadcast %4 : vector<16x1xf32> to vector<16x128xf32>
    %75 = arith.addf %73, %74 : vector<16x128xf32>
    %cst_34 = arith.constant 0.000000e+00 : f32
    %76 = vector.broadcast %cst_34 : f32 to vector<16x128xf32>
    %77 = arith.maximumf %75, %76 : vector<16x128xf32>
    %78 = vector.broadcast %5 : vector<16x1xf32> to vector<16x128xf32>
    %79 = arith.mulf %77, %78 : vector<16x128xf32>
    %cst_35 = arith.constant dense<0.000000e+00> : vector<128xf32>
    %80 = vector.multi_reduction <add>, %79, %cst_35 [0] : vector<16x128xf32> to vector<128xf32>
    %81 = vector.shape_cast %80 : vector<128xf32> to vector<1x128xf32>
    %82 = vector.extract_strided_slice %1 {offsets = [0, 5], sizes = [32, 1], strides = [1, 1]} : vector<32x32xf32> to vector<32x1xf32>
    %83 = vector.broadcast %82 : vector<32x1xf32> to vector<32x128xf32>
    %84 = arith.addf %83, %2 : vector<32x128xf32>
    %cst_36 = arith.constant 0.000000e+00 : f32
    %85 = vector.broadcast %cst_36 : f32 to vector<32x128xf32>
    %86 = arith.maximumf %84, %85 : vector<32x128xf32>
    %cst_37 = arith.constant dense<0.000000e+00> : vector<16x128xf32>
    %87 = tpu.matmul %3, %86, %cst_37 {dimension_numbers = #tpu.dot_dimension_numbers<[1], [0], [0], [1], [0, 0, 1, 1], [], []>} : vector<16x32xf32>, vector<32x128xf32>, vector<16x128xf32> -> vector<16x128xf32>
    %88 = vector.broadcast %4 : vector<16x1xf32> to vector<16x128xf32>
    %89 = arith.addf %87, %88 : vector<16x128xf32>
    %cst_38 = arith.constant 0.000000e+00 : f32
    %90 = vector.broadcast %cst_38 : f32 to vector<16x128xf32>
    %91 = arith.maximumf %89, %90 : vector<16x128xf32>
    %92 = vector.broadcast %5 : vector<16x1xf32> to vector<16x128xf32>
    %93 = arith.mulf %91, %92 : vector<16x128xf32>
    %cst_39 = arith.constant dense<0.000000e+00> : vector<128xf32>
    %94 = vector.multi_reduction <add>, %93, %cst_39 [0] : vector<16x128xf32> to vector<128xf32>
    %95 = vector.shape_cast %94 : vector<128xf32> to vector<1x128xf32>
    %96 = vector.extract_strided_slice %1 {offsets = [0, 6], sizes = [32, 1], strides = [1, 1]} : vector<32x32xf32> to vector<32x1xf32>
    %97 = vector.broadcast %96 : vector<32x1xf32> to vector<32x128xf32>
    %98 = arith.addf %97, %2 : vector<32x128xf32>
    %cst_40 = arith.constant 0.000000e+00 : f32
    %99 = vector.broadcast %cst_40 : f32 to vector<32x128xf32>
    %100 = arith.maximumf %98, %99 : vector<32x128xf32>
    %cst_41 = arith.constant dense<0.000000e+00> : vector<16x128xf32>
    %101 = tpu.matmul %3, %100, %cst_41 {dimension_numbers = #tpu.dot_dimension_numbers<[1], [0], [0], [1], [0, 0, 1, 1], [], []>} : vector<16x32xf32>, vector<32x128xf32>, vector<16x128xf32> -> vector<16x128xf32>
    %102 = vector.broadcast %4 : vector<16x1xf32> to vector<16x128xf32>
    %103 = arith.addf %101, %102 : vector<16x128xf32>
    %cst_42 = arith.constant 0.000000e+00 : f32
    %104 = vector.broadcast %cst_42 : f32 to vector<16x128xf32>
    %105 = arith.maximumf %103, %104 : vector<16x128xf32>
    %106 = vector.broadcast %5 : vector<16x1xf32> to vector<16x128xf32>
    %107 = arith.mulf %105, %106 : vector<16x128xf32>
    %cst_43 = arith.constant dense<0.000000e+00> : vector<128xf32>
    %108 = vector.multi_reduction <add>, %107, %cst_43 [0] : vector<16x128xf32> to vector<128xf32>
    %109 = vector.shape_cast %108 : vector<128xf32> to vector<1x128xf32>
    %110 = vector.extract_strided_slice %1 {offsets = [0, 7], sizes = [32, 1], strides = [1, 1]} : vector<32x32xf32> to vector<32x1xf32>
    %111 = vector.broadcast %110 : vector<32x1xf32> to vector<32x128xf32>
    %112 = arith.addf %111, %2 : vector<32x128xf32>
    %cst_44 = arith.constant 0.000000e+00 : f32
    %113 = vector.broadcast %cst_44 : f32 to vector<32x128xf32>
    %114 = arith.maximumf %112, %113 : vector<32x128xf32>
    %cst_45 = arith.constant dense<0.000000e+00> : vector<16x128xf32>
    %115 = tpu.matmul %3, %114, %cst_45 {dimension_numbers = #tpu.dot_dimension_numbers<[1], [0], [0], [1], [0, 0, 1, 1], [], []>} : vector<16x32xf32>, vector<32x128xf32>, vector<16x128xf32> -> vector<16x128xf32>
    %116 = vector.broadcast %4 : vector<16x1xf32> to vector<16x128xf32>
    %117 = arith.addf %115, %116 : vector<16x128xf32>
    %cst_46 = arith.constant 0.000000e+00 : f32
    %118 = vector.broadcast %cst_46 : f32 to vector<16x128xf32>
    %119 = arith.maximumf %117, %118 : vector<16x128xf32>
    %120 = vector.broadcast %5 : vector<16x1xf32> to vector<16x128xf32>
    %121 = arith.mulf %119, %120 : vector<16x128xf32>
    %cst_47 = arith.constant dense<0.000000e+00> : vector<128xf32>
    %122 = vector.multi_reduction <add>, %121, %cst_47 [0] : vector<16x128xf32> to vector<128xf32>
    %123 = vector.shape_cast %122 : vector<128xf32> to vector<1x128xf32>
    %124 = vector.extract_strided_slice %1 {offsets = [0, 8], sizes = [32, 1], strides = [1, 1]} : vector<32x32xf32> to vector<32x1xf32>
    %125 = vector.broadcast %124 : vector<32x1xf32> to vector<32x128xf32>
    %126 = arith.addf %125, %2 : vector<32x128xf32>
    %cst_48 = arith.constant 0.000000e+00 : f32
    %127 = vector.broadcast %cst_48 : f32 to vector<32x128xf32>
    %128 = arith.maximumf %126, %127 : vector<32x128xf32>
    %cst_49 = arith.constant dense<0.000000e+00> : vector<16x128xf32>
    %129 = tpu.matmul %3, %128, %cst_49 {dimension_numbers = #tpu.dot_dimension_numbers<[1], [0], [0], [1], [0, 0, 1, 1], [], []>} : vector<16x32xf32>, vector<32x128xf32>, vector<16x128xf32> -> vector<16x128xf32>
    %130 = vector.broadcast %4 : vector<16x1xf32> to vector<16x128xf32>
    %131 = arith.addf %129, %130 : vector<16x128xf32>
    %cst_50 = arith.constant 0.000000e+00 : f32
    %132 = vector.broadcast %cst_50 : f32 to vector<16x128xf32>
    %133 = arith.maximumf %131, %132 : vector<16x128xf32>
    %134 = vector.broadcast %5 : vector<16x1xf32> to vector<16x128xf32>
    %135 = arith.mulf %133, %134 : vector<16x128xf32>
    %cst_51 = arith.constant dense<0.000000e+00> : vector<128xf32>
    %136 = vector.multi_reduction <add>, %135, %cst_51 [0] : vector<16x128xf32> to vector<128xf32>
    %137 = vector.shape_cast %136 : vector<128xf32> to vector<1x128xf32>
    %138 = vector.extract_strided_slice %1 {offsets = [0, 9], sizes = [32, 1], strides = [1, 1]} : vector<32x32xf32> to vector<32x1xf32>
    %139 = vector.broadcast %138 : vector<32x1xf32> to vector<32x128xf32>
    %140 = arith.addf %139, %2 : vector<32x128xf32>
    %cst_52 = arith.constant 0.000000e+00 : f32
    %141 = vector.broadcast %cst_52 : f32 to vector<32x128xf32>
    %142 = arith.maximumf %140, %141 : vector<32x128xf32>
    %cst_53 = arith.constant dense<0.000000e+00> : vector<16x128xf32>
    %143 = tpu.matmul %3, %142, %cst_53 {dimension_numbers = #tpu.dot_dimension_numbers<[1], [0], [0], [1], [0, 0, 1, 1], [], []>} : vector<16x32xf32>, vector<32x128xf32>, vector<16x128xf32> -> vector<16x128xf32>
    %144 = vector.broadcast %4 : vector<16x1xf32> to vector<16x128xf32>
    %145 = arith.addf %143, %144 : vector<16x128xf32>
    %cst_54 = arith.constant 0.000000e+00 : f32
    %146 = vector.broadcast %cst_54 : f32 to vector<16x128xf32>
    %147 = arith.maximumf %145, %146 : vector<16x128xf32>
    %148 = vector.broadcast %5 : vector<16x1xf32> to vector<16x128xf32>
    %149 = arith.mulf %147, %148 : vector<16x128xf32>
    %cst_55 = arith.constant dense<0.000000e+00> : vector<128xf32>
    %150 = vector.multi_reduction <add>, %149, %cst_55 [0] : vector<16x128xf32> to vector<128xf32>
    %151 = vector.shape_cast %150 : vector<128xf32> to vector<1x128xf32>
    %152 = vector.extract_strided_slice %1 {offsets = [0, 10], sizes = [32, 1], strides = [1, 1]} : vector<32x32xf32> to vector<32x1xf32>
    %153 = vector.broadcast %152 : vector<32x1xf32> to vector<32x128xf32>
    %154 = arith.addf %153, %2 : vector<32x128xf32>
    %cst_56 = arith.constant 0.000000e+00 : f32
    %155 = vector.broadcast %cst_56 : f32 to vector<32x128xf32>
    %156 = arith.maximumf %154, %155 : vector<32x128xf32>
    %cst_57 = arith.constant dense<0.000000e+00> : vector<16x128xf32>
    %157 = tpu.matmul %3, %156, %cst_57 {dimension_numbers = #tpu.dot_dimension_numbers<[1], [0], [0], [1], [0, 0, 1, 1], [], []>} : vector<16x32xf32>, vector<32x128xf32>, vector<16x128xf32> -> vector<16x128xf32>
    %158 = vector.broadcast %4 : vector<16x1xf32> to vector<16x128xf32>
    %159 = arith.addf %157, %158 : vector<16x128xf32>
    %cst_58 = arith.constant 0.000000e+00 : f32
    %160 = vector.broadcast %cst_58 : f32 to vector<16x128xf32>
    %161 = arith.maximumf %159, %160 : vector<16x128xf32>
    %162 = vector.broadcast %5 : vector<16x1xf32> to vector<16x128xf32>
    %163 = arith.mulf %161, %162 : vector<16x128xf32>
    %cst_59 = arith.constant dense<0.000000e+00> : vector<128xf32>
    %164 = vector.multi_reduction <add>, %163, %cst_59 [0] : vector<16x128xf32> to vector<128xf32>
    %165 = vector.shape_cast %164 : vector<128xf32> to vector<1x128xf32>
    %166 = vector.extract_strided_slice %1 {offsets = [0, 11], sizes = [32, 1], strides = [1, 1]} : vector<32x32xf32> to vector<32x1xf32>
    %167 = vector.broadcast %166 : vector<32x1xf32> to vector<32x128xf32>
    %168 = arith.addf %167, %2 : vector<32x128xf32>
    %cst_60 = arith.constant 0.000000e+00 : f32
    %169 = vector.broadcast %cst_60 : f32 to vector<32x128xf32>
    %170 = arith.maximumf %168, %169 : vector<32x128xf32>
    %cst_61 = arith.constant dense<0.000000e+00> : vector<16x128xf32>
    %171 = tpu.matmul %3, %170, %cst_61 {dimension_numbers = #tpu.dot_dimension_numbers<[1], [0], [0], [1], [0, 0, 1, 1], [], []>} : vector<16x32xf32>, vector<32x128xf32>, vector<16x128xf32> -> vector<16x128xf32>
    %172 = vector.broadcast %4 : vector<16x1xf32> to vector<16x128xf32>
    %173 = arith.addf %171, %172 : vector<16x128xf32>
    %cst_62 = arith.constant 0.000000e+00 : f32
    %174 = vector.broadcast %cst_62 : f32 to vector<16x128xf32>
    %175 = arith.maximumf %173, %174 : vector<16x128xf32>
    %176 = vector.broadcast %5 : vector<16x1xf32> to vector<16x128xf32>
    %177 = arith.mulf %175, %176 : vector<16x128xf32>
    %cst_63 = arith.constant dense<0.000000e+00> : vector<128xf32>
    %178 = vector.multi_reduction <add>, %177, %cst_63 [0] : vector<16x128xf32> to vector<128xf32>
    %179 = vector.shape_cast %178 : vector<128xf32> to vector<1x128xf32>
    %180 = vector.extract_strided_slice %1 {offsets = [0, 12], sizes = [32, 1], strides = [1, 1]} : vector<32x32xf32> to vector<32x1xf32>
    %181 = vector.broadcast %180 : vector<32x1xf32> to vector<32x128xf32>
    %182 = arith.addf %181, %2 : vector<32x128xf32>
    %cst_64 = arith.constant 0.000000e+00 : f32
    %183 = vector.broadcast %cst_64 : f32 to vector<32x128xf32>
    %184 = arith.maximumf %182, %183 : vector<32x128xf32>
    %cst_65 = arith.constant dense<0.000000e+00> : vector<16x128xf32>
    %185 = tpu.matmul %3, %184, %cst_65 {dimension_numbers = #tpu.dot_dimension_numbers<[1], [0], [0], [1], [0, 0, 1, 1], [], []>} : vector<16x32xf32>, vector<32x128xf32>, vector<16x128xf32> -> vector<16x128xf32>
    %186 = vector.broadcast %4 : vector<16x1xf32> to vector<16x128xf32>
    %187 = arith.addf %185, %186 : vector<16x128xf32>
    %cst_66 = arith.constant 0.000000e+00 : f32
    %188 = vector.broadcast %cst_66 : f32 to vector<16x128xf32>
    %189 = arith.maximumf %187, %188 : vector<16x128xf32>
    %190 = vector.broadcast %5 : vector<16x1xf32> to vector<16x128xf32>
    %191 = arith.mulf %189, %190 : vector<16x128xf32>
    %cst_67 = arith.constant dense<0.000000e+00> : vector<128xf32>
    %192 = vector.multi_reduction <add>, %191, %cst_67 [0] : vector<16x128xf32> to vector<128xf32>
    %193 = vector.shape_cast %192 : vector<128xf32> to vector<1x128xf32>
    %194 = vector.extract_strided_slice %1 {offsets = [0, 13], sizes = [32, 1], strides = [1, 1]} : vector<32x32xf32> to vector<32x1xf32>
    %195 = vector.broadcast %194 : vector<32x1xf32> to vector<32x128xf32>
    %196 = arith.addf %195, %2 : vector<32x128xf32>
    %cst_68 = arith.constant 0.000000e+00 : f32
    %197 = vector.broadcast %cst_68 : f32 to vector<32x128xf32>
    %198 = arith.maximumf %196, %197 : vector<32x128xf32>
    %cst_69 = arith.constant dense<0.000000e+00> : vector<16x128xf32>
    %199 = tpu.matmul %3, %198, %cst_69 {dimension_numbers = #tpu.dot_dimension_numbers<[1], [0], [0], [1], [0, 0, 1, 1], [], []>} : vector<16x32xf32>, vector<32x128xf32>, vector<16x128xf32> -> vector<16x128xf32>
    %200 = vector.broadcast %4 : vector<16x1xf32> to vector<16x128xf32>
    %201 = arith.addf %199, %200 : vector<16x128xf32>
    %cst_70 = arith.constant 0.000000e+00 : f32
    %202 = vector.broadcast %cst_70 : f32 to vector<16x128xf32>
    %203 = arith.maximumf %201, %202 : vector<16x128xf32>
    %204 = vector.broadcast %5 : vector<16x1xf32> to vector<16x128xf32>
    %205 = arith.mulf %203, %204 : vector<16x128xf32>
    %cst_71 = arith.constant dense<0.000000e+00> : vector<128xf32>
    %206 = vector.multi_reduction <add>, %205, %cst_71 [0] : vector<16x128xf32> to vector<128xf32>
    %207 = vector.shape_cast %206 : vector<128xf32> to vector<1x128xf32>
    %208 = vector.extract_strided_slice %1 {offsets = [0, 14], sizes = [32, 1], strides = [1, 1]} : vector<32x32xf32> to vector<32x1xf32>
    %209 = vector.broadcast %208 : vector<32x1xf32> to vector<32x128xf32>
    %210 = arith.addf %209, %2 : vector<32x128xf32>
    %cst_72 = arith.constant 0.000000e+00 : f32
    %211 = vector.broadcast %cst_72 : f32 to vector<32x128xf32>
    %212 = arith.maximumf %210, %211 : vector<32x128xf32>
    %cst_73 = arith.constant dense<0.000000e+00> : vector<16x128xf32>
    %213 = tpu.matmul %3, %212, %cst_73 {dimension_numbers = #tpu.dot_dimension_numbers<[1], [0], [0], [1], [0, 0, 1, 1], [], []>} : vector<16x32xf32>, vector<32x128xf32>, vector<16x128xf32> -> vector<16x128xf32>
    %214 = vector.broadcast %4 : vector<16x1xf32> to vector<16x128xf32>
    %215 = arith.addf %213, %214 : vector<16x128xf32>
    %cst_74 = arith.constant 0.000000e+00 : f32
    %216 = vector.broadcast %cst_74 : f32 to vector<16x128xf32>
    %217 = arith.maximumf %215, %216 : vector<16x128xf32>
    %218 = vector.broadcast %5 : vector<16x1xf32> to vector<16x128xf32>
    %219 = arith.mulf %217, %218 : vector<16x128xf32>
    %cst_75 = arith.constant dense<0.000000e+00> : vector<128xf32>
    %220 = vector.multi_reduction <add>, %219, %cst_75 [0] : vector<16x128xf32> to vector<128xf32>
    %221 = vector.shape_cast %220 : vector<128xf32> to vector<1x128xf32>
    %222 = vector.extract_strided_slice %1 {offsets = [0, 15], sizes = [32, 1], strides = [1, 1]} : vector<32x32xf32> to vector<32x1xf32>
    %223 = vector.broadcast %222 : vector<32x1xf32> to vector<32x128xf32>
    %224 = arith.addf %223, %2 : vector<32x128xf32>
    %cst_76 = arith.constant 0.000000e+00 : f32
    %225 = vector.broadcast %cst_76 : f32 to vector<32x128xf32>
    %226 = arith.maximumf %224, %225 : vector<32x128xf32>
    %cst_77 = arith.constant dense<0.000000e+00> : vector<16x128xf32>
    %227 = tpu.matmul %3, %226, %cst_77 {dimension_numbers = #tpu.dot_dimension_numbers<[1], [0], [0], [1], [0, 0, 1, 1], [], []>} : vector<16x32xf32>, vector<32x128xf32>, vector<16x128xf32> -> vector<16x128xf32>
    %228 = vector.broadcast %4 : vector<16x1xf32> to vector<16x128xf32>
    %229 = arith.addf %227, %228 : vector<16x128xf32>
    %cst_78 = arith.constant 0.000000e+00 : f32
    %230 = vector.broadcast %cst_78 : f32 to vector<16x128xf32>
    %231 = arith.maximumf %229, %230 : vector<16x128xf32>
    %232 = vector.broadcast %5 : vector<16x1xf32> to vector<16x128xf32>
    %233 = arith.mulf %231, %232 : vector<16x128xf32>
    %cst_79 = arith.constant dense<0.000000e+00> : vector<128xf32>
    %234 = vector.multi_reduction <add>, %233, %cst_79 [0] : vector<16x128xf32> to vector<128xf32>
    %235 = vector.shape_cast %234 : vector<128xf32> to vector<1x128xf32>
    %236 = vector.extract_strided_slice %1 {offsets = [0, 16], sizes = [32, 1], strides = [1, 1]} : vector<32x32xf32> to vector<32x1xf32>
    %237 = vector.broadcast %236 : vector<32x1xf32> to vector<32x128xf32>
    %238 = arith.addf %237, %2 : vector<32x128xf32>
    %cst_80 = arith.constant 0.000000e+00 : f32
    %239 = vector.broadcast %cst_80 : f32 to vector<32x128xf32>
    %240 = arith.maximumf %238, %239 : vector<32x128xf32>
    %cst_81 = arith.constant dense<0.000000e+00> : vector<16x128xf32>
    %241 = tpu.matmul %3, %240, %cst_81 {dimension_numbers = #tpu.dot_dimension_numbers<[1], [0], [0], [1], [0, 0, 1, 1], [], []>} : vector<16x32xf32>, vector<32x128xf32>, vector<16x128xf32> -> vector<16x128xf32>
    %242 = vector.broadcast %4 : vector<16x1xf32> to vector<16x128xf32>
    %243 = arith.addf %241, %242 : vector<16x128xf32>
    %cst_82 = arith.constant 0.000000e+00 : f32
    %244 = vector.broadcast %cst_82 : f32 to vector<16x128xf32>
    %245 = arith.maximumf %243, %244 : vector<16x128xf32>
    %246 = vector.broadcast %5 : vector<16x1xf32> to vector<16x128xf32>
    %247 = arith.mulf %245, %246 : vector<16x128xf32>
    %cst_83 = arith.constant dense<0.000000e+00> : vector<128xf32>
    %248 = vector.multi_reduction <add>, %247, %cst_83 [0] : vector<16x128xf32> to vector<128xf32>
    %249 = vector.shape_cast %248 : vector<128xf32> to vector<1x128xf32>
    %250 = vector.extract_strided_slice %1 {offsets = [0, 17], sizes = [32, 1], strides = [1, 1]} : vector<32x32xf32> to vector<32x1xf32>
    %251 = vector.broadcast %250 : vector<32x1xf32> to vector<32x128xf32>
    %252 = arith.addf %251, %2 : vector<32x128xf32>
    %cst_84 = arith.constant 0.000000e+00 : f32
    %253 = vector.broadcast %cst_84 : f32 to vector<32x128xf32>
    %254 = arith.maximumf %252, %253 : vector<32x128xf32>
    %cst_85 = arith.constant dense<0.000000e+00> : vector<16x128xf32>
    %255 = tpu.matmul %3, %254, %cst_85 {dimension_numbers = #tpu.dot_dimension_numbers<[1], [0], [0], [1], [0, 0, 1, 1], [], []>} : vector<16x32xf32>, vector<32x128xf32>, vector<16x128xf32> -> vector<16x128xf32>
    %256 = vector.broadcast %4 : vector<16x1xf32> to vector<16x128xf32>
    %257 = arith.addf %255, %256 : vector<16x128xf32>
    %cst_86 = arith.constant 0.000000e+00 : f32
    %258 = vector.broadcast %cst_86 : f32 to vector<16x128xf32>
    %259 = arith.maximumf %257, %258 : vector<16x128xf32>
    %260 = vector.broadcast %5 : vector<16x1xf32> to vector<16x128xf32>
    %261 = arith.mulf %259, %260 : vector<16x128xf32>
    %cst_87 = arith.constant dense<0.000000e+00> : vector<128xf32>
    %262 = vector.multi_reduction <add>, %261, %cst_87 [0] : vector<16x128xf32> to vector<128xf32>
    %263 = vector.shape_cast %262 : vector<128xf32> to vector<1x128xf32>
    %264 = vector.extract_strided_slice %1 {offsets = [0, 18], sizes = [32, 1], strides = [1, 1]} : vector<32x32xf32> to vector<32x1xf32>
    %265 = vector.broadcast %264 : vector<32x1xf32> to vector<32x128xf32>
    %266 = arith.addf %265, %2 : vector<32x128xf32>
    %cst_88 = arith.constant 0.000000e+00 : f32
    %267 = vector.broadcast %cst_88 : f32 to vector<32x128xf32>
    %268 = arith.maximumf %266, %267 : vector<32x128xf32>
    %cst_89 = arith.constant dense<0.000000e+00> : vector<16x128xf32>
    %269 = tpu.matmul %3, %268, %cst_89 {dimension_numbers = #tpu.dot_dimension_numbers<[1], [0], [0], [1], [0, 0, 1, 1], [], []>} : vector<16x32xf32>, vector<32x128xf32>, vector<16x128xf32> -> vector<16x128xf32>
    %270 = vector.broadcast %4 : vector<16x1xf32> to vector<16x128xf32>
    %271 = arith.addf %269, %270 : vector<16x128xf32>
    %cst_90 = arith.constant 0.000000e+00 : f32
    %272 = vector.broadcast %cst_90 : f32 to vector<16x128xf32>
    %273 = arith.maximumf %271, %272 : vector<16x128xf32>
    %274 = vector.broadcast %5 : vector<16x1xf32> to vector<16x128xf32>
    %275 = arith.mulf %273, %274 : vector<16x128xf32>
    %cst_91 = arith.constant dense<0.000000e+00> : vector<128xf32>
    %276 = vector.multi_reduction <add>, %275, %cst_91 [0] : vector<16x128xf32> to vector<128xf32>
    %277 = vector.shape_cast %276 : vector<128xf32> to vector<1x128xf32>
    %278 = vector.extract_strided_slice %1 {offsets = [0, 19], sizes = [32, 1], strides = [1, 1]} : vector<32x32xf32> to vector<32x1xf32>
    %279 = vector.broadcast %278 : vector<32x1xf32> to vector<32x128xf32>
    %280 = arith.addf %279, %2 : vector<32x128xf32>
    %cst_92 = arith.constant 0.000000e+00 : f32
    %281 = vector.broadcast %cst_92 : f32 to vector<32x128xf32>
    %282 = arith.maximumf %280, %281 : vector<32x128xf32>
    %cst_93 = arith.constant dense<0.000000e+00> : vector<16x128xf32>
    %283 = tpu.matmul %3, %282, %cst_93 {dimension_numbers = #tpu.dot_dimension_numbers<[1], [0], [0], [1], [0, 0, 1, 1], [], []>} : vector<16x32xf32>, vector<32x128xf32>, vector<16x128xf32> -> vector<16x128xf32>
    %284 = vector.broadcast %4 : vector<16x1xf32> to vector<16x128xf32>
    %285 = arith.addf %283, %284 : vector<16x128xf32>
    %cst_94 = arith.constant 0.000000e+00 : f32
    %286 = vector.broadcast %cst_94 : f32 to vector<16x128xf32>
    %287 = arith.maximumf %285, %286 : vector<16x128xf32>
    %288 = vector.broadcast %5 : vector<16x1xf32> to vector<16x128xf32>
    %289 = arith.mulf %287, %288 : vector<16x128xf32>
    %cst_95 = arith.constant dense<0.000000e+00> : vector<128xf32>
    %290 = vector.multi_reduction <add>, %289, %cst_95 [0] : vector<16x128xf32> to vector<128xf32>
    %291 = vector.shape_cast %290 : vector<128xf32> to vector<1x128xf32>
    %292 = vector.extract_strided_slice %1 {offsets = [0, 20], sizes = [32, 1], strides = [1, 1]} : vector<32x32xf32> to vector<32x1xf32>
    %293 = vector.broadcast %292 : vector<32x1xf32> to vector<32x128xf32>
    %294 = arith.addf %293, %2 : vector<32x128xf32>
    %cst_96 = arith.constant 0.000000e+00 : f32
    %295 = vector.broadcast %cst_96 : f32 to vector<32x128xf32>
    %296 = arith.maximumf %294, %295 : vector<32x128xf32>
    %cst_97 = arith.constant dense<0.000000e+00> : vector<16x128xf32>
    %297 = tpu.matmul %3, %296, %cst_97 {dimension_numbers = #tpu.dot_dimension_numbers<[1], [0], [0], [1], [0, 0, 1, 1], [], []>} : vector<16x32xf32>, vector<32x128xf32>, vector<16x128xf32> -> vector<16x128xf32>
    %298 = vector.broadcast %4 : vector<16x1xf32> to vector<16x128xf32>
    %299 = arith.addf %297, %298 : vector<16x128xf32>
    %cst_98 = arith.constant 0.000000e+00 : f32
    %300 = vector.broadcast %cst_98 : f32 to vector<16x128xf32>
    %301 = arith.maximumf %299, %300 : vector<16x128xf32>
    %302 = vector.broadcast %5 : vector<16x1xf32> to vector<16x128xf32>
    %303 = arith.mulf %301, %302 : vector<16x128xf32>
    %cst_99 = arith.constant dense<0.000000e+00> : vector<128xf32>
    %304 = vector.multi_reduction <add>, %303, %cst_99 [0] : vector<16x128xf32> to vector<128xf32>
    %305 = vector.shape_cast %304 : vector<128xf32> to vector<1x128xf32>
    %306 = vector.extract_strided_slice %1 {offsets = [0, 21], sizes = [32, 1], strides = [1, 1]} : vector<32x32xf32> to vector<32x1xf32>
    %307 = vector.broadcast %306 : vector<32x1xf32> to vector<32x128xf32>
    %308 = arith.addf %307, %2 : vector<32x128xf32>
    %cst_100 = arith.constant 0.000000e+00 : f32
    %309 = vector.broadcast %cst_100 : f32 to vector<32x128xf32>
    %310 = arith.maximumf %308, %309 : vector<32x128xf32>
    %cst_101 = arith.constant dense<0.000000e+00> : vector<16x128xf32>
    %311 = tpu.matmul %3, %310, %cst_101 {dimension_numbers = #tpu.dot_dimension_numbers<[1], [0], [0], [1], [0, 0, 1, 1], [], []>} : vector<16x32xf32>, vector<32x128xf32>, vector<16x128xf32> -> vector<16x128xf32>
    %312 = vector.broadcast %4 : vector<16x1xf32> to vector<16x128xf32>
    %313 = arith.addf %311, %312 : vector<16x128xf32>
    %cst_102 = arith.constant 0.000000e+00 : f32
    %314 = vector.broadcast %cst_102 : f32 to vector<16x128xf32>
    %315 = arith.maximumf %313, %314 : vector<16x128xf32>
    %316 = vector.broadcast %5 : vector<16x1xf32> to vector<16x128xf32>
    %317 = arith.mulf %315, %316 : vector<16x128xf32>
    %cst_103 = arith.constant dense<0.000000e+00> : vector<128xf32>
    %318 = vector.multi_reduction <add>, %317, %cst_103 [0] : vector<16x128xf32> to vector<128xf32>
    %319 = vector.shape_cast %318 : vector<128xf32> to vector<1x128xf32>
    %320 = vector.extract_strided_slice %1 {offsets = [0, 22], sizes = [32, 1], strides = [1, 1]} : vector<32x32xf32> to vector<32x1xf32>
    %321 = vector.broadcast %320 : vector<32x1xf32> to vector<32x128xf32>
    %322 = arith.addf %321, %2 : vector<32x128xf32>
    %cst_104 = arith.constant 0.000000e+00 : f32
    %323 = vector.broadcast %cst_104 : f32 to vector<32x128xf32>
    %324 = arith.maximumf %322, %323 : vector<32x128xf32>
    %cst_105 = arith.constant dense<0.000000e+00> : vector<16x128xf32>
    %325 = tpu.matmul %3, %324, %cst_105 {dimension_numbers = #tpu.dot_dimension_numbers<[1], [0], [0], [1], [0, 0, 1, 1], [], []>} : vector<16x32xf32>, vector<32x128xf32>, vector<16x128xf32> -> vector<16x128xf32>
    %326 = vector.broadcast %4 : vector<16x1xf32> to vector<16x128xf32>
    %327 = arith.addf %325, %326 : vector<16x128xf32>
    %cst_106 = arith.constant 0.000000e+00 : f32
    %328 = vector.broadcast %cst_106 : f32 to vector<16x128xf32>
    %329 = arith.maximumf %327, %328 : vector<16x128xf32>
    %330 = vector.broadcast %5 : vector<16x1xf32> to vector<16x128xf32>
    %331 = arith.mulf %329, %330 : vector<16x128xf32>
    %cst_107 = arith.constant dense<0.000000e+00> : vector<128xf32>
    %332 = vector.multi_reduction <add>, %331, %cst_107 [0] : vector<16x128xf32> to vector<128xf32>
    %333 = vector.shape_cast %332 : vector<128xf32> to vector<1x128xf32>
    %334 = vector.extract_strided_slice %1 {offsets = [0, 23], sizes = [32, 1], strides = [1, 1]} : vector<32x32xf32> to vector<32x1xf32>
    %335 = vector.broadcast %334 : vector<32x1xf32> to vector<32x128xf32>
    %336 = arith.addf %335, %2 : vector<32x128xf32>
    %cst_108 = arith.constant 0.000000e+00 : f32
    %337 = vector.broadcast %cst_108 : f32 to vector<32x128xf32>
    %338 = arith.maximumf %336, %337 : vector<32x128xf32>
    %cst_109 = arith.constant dense<0.000000e+00> : vector<16x128xf32>
    %339 = tpu.matmul %3, %338, %cst_109 {dimension_numbers = #tpu.dot_dimension_numbers<[1], [0], [0], [1], [0, 0, 1, 1], [], []>} : vector<16x32xf32>, vector<32x128xf32>, vector<16x128xf32> -> vector<16x128xf32>
    %340 = vector.broadcast %4 : vector<16x1xf32> to vector<16x128xf32>
    %341 = arith.addf %339, %340 : vector<16x128xf32>
    %cst_110 = arith.constant 0.000000e+00 : f32
    %342 = vector.broadcast %cst_110 : f32 to vector<16x128xf32>
    %343 = arith.maximumf %341, %342 : vector<16x128xf32>
    %344 = vector.broadcast %5 : vector<16x1xf32> to vector<16x128xf32>
    %345 = arith.mulf %343, %344 : vector<16x128xf32>
    %cst_111 = arith.constant dense<0.000000e+00> : vector<128xf32>
    %346 = vector.multi_reduction <add>, %345, %cst_111 [0] : vector<16x128xf32> to vector<128xf32>
    %347 = vector.shape_cast %346 : vector<128xf32> to vector<1x128xf32>
    %348 = vector.extract_strided_slice %1 {offsets = [0, 24], sizes = [32, 1], strides = [1, 1]} : vector<32x32xf32> to vector<32x1xf32>
    %349 = vector.broadcast %348 : vector<32x1xf32> to vector<32x128xf32>
    %350 = arith.addf %349, %2 : vector<32x128xf32>
    %cst_112 = arith.constant 0.000000e+00 : f32
    %351 = vector.broadcast %cst_112 : f32 to vector<32x128xf32>
    %352 = arith.maximumf %350, %351 : vector<32x128xf32>
    %cst_113 = arith.constant dense<0.000000e+00> : vector<16x128xf32>
    %353 = tpu.matmul %3, %352, %cst_113 {dimension_numbers = #tpu.dot_dimension_numbers<[1], [0], [0], [1], [0, 0, 1, 1], [], []>} : vector<16x32xf32>, vector<32x128xf32>, vector<16x128xf32> -> vector<16x128xf32>
    %354 = vector.broadcast %4 : vector<16x1xf32> to vector<16x128xf32>
    %355 = arith.addf %353, %354 : vector<16x128xf32>
    %cst_114 = arith.constant 0.000000e+00 : f32
    %356 = vector.broadcast %cst_114 : f32 to vector<16x128xf32>
    %357 = arith.maximumf %355, %356 : vector<16x128xf32>
    %358 = vector.broadcast %5 : vector<16x1xf32> to vector<16x128xf32>
    %359 = arith.mulf %357, %358 : vector<16x128xf32>
    %cst_115 = arith.constant dense<0.000000e+00> : vector<128xf32>
    %360 = vector.multi_reduction <add>, %359, %cst_115 [0] : vector<16x128xf32> to vector<128xf32>
    %361 = vector.shape_cast %360 : vector<128xf32> to vector<1x128xf32>
    %362 = vector.extract_strided_slice %1 {offsets = [0, 25], sizes = [32, 1], strides = [1, 1]} : vector<32x32xf32> to vector<32x1xf32>
    %363 = vector.broadcast %362 : vector<32x1xf32> to vector<32x128xf32>
    %364 = arith.addf %363, %2 : vector<32x128xf32>
    %cst_116 = arith.constant 0.000000e+00 : f32
    %365 = vector.broadcast %cst_116 : f32 to vector<32x128xf32>
    %366 = arith.maximumf %364, %365 : vector<32x128xf32>
    %cst_117 = arith.constant dense<0.000000e+00> : vector<16x128xf32>
    %367 = tpu.matmul %3, %366, %cst_117 {dimension_numbers = #tpu.dot_dimension_numbers<[1], [0], [0], [1], [0, 0, 1, 1], [], []>} : vector<16x32xf32>, vector<32x128xf32>, vector<16x128xf32> -> vector<16x128xf32>
    %368 = vector.broadcast %4 : vector<16x1xf32> to vector<16x128xf32>
    %369 = arith.addf %367, %368 : vector<16x128xf32>
    %cst_118 = arith.constant 0.000000e+00 : f32
    %370 = vector.broadcast %cst_118 : f32 to vector<16x128xf32>
    %371 = arith.maximumf %369, %370 : vector<16x128xf32>
    %372 = vector.broadcast %5 : vector<16x1xf32> to vector<16x128xf32>
    %373 = arith.mulf %371, %372 : vector<16x128xf32>
    %cst_119 = arith.constant dense<0.000000e+00> : vector<128xf32>
    %374 = vector.multi_reduction <add>, %373, %cst_119 [0] : vector<16x128xf32> to vector<128xf32>
    %375 = vector.shape_cast %374 : vector<128xf32> to vector<1x128xf32>
    %376 = vector.extract_strided_slice %1 {offsets = [0, 26], sizes = [32, 1], strides = [1, 1]} : vector<32x32xf32> to vector<32x1xf32>
    %377 = vector.broadcast %376 : vector<32x1xf32> to vector<32x128xf32>
    %378 = arith.addf %377, %2 : vector<32x128xf32>
    %cst_120 = arith.constant 0.000000e+00 : f32
    %379 = vector.broadcast %cst_120 : f32 to vector<32x128xf32>
    %380 = arith.maximumf %378, %379 : vector<32x128xf32>
    %cst_121 = arith.constant dense<0.000000e+00> : vector<16x128xf32>
    %381 = tpu.matmul %3, %380, %cst_121 {dimension_numbers = #tpu.dot_dimension_numbers<[1], [0], [0], [1], [0, 0, 1, 1], [], []>} : vector<16x32xf32>, vector<32x128xf32>, vector<16x128xf32> -> vector<16x128xf32>
    %382 = vector.broadcast %4 : vector<16x1xf32> to vector<16x128xf32>
    %383 = arith.addf %381, %382 : vector<16x128xf32>
    %cst_122 = arith.constant 0.000000e+00 : f32
    %384 = vector.broadcast %cst_122 : f32 to vector<16x128xf32>
    %385 = arith.maximumf %383, %384 : vector<16x128xf32>
    %386 = vector.broadcast %5 : vector<16x1xf32> to vector<16x128xf32>
    %387 = arith.mulf %385, %386 : vector<16x128xf32>
    %cst_123 = arith.constant dense<0.000000e+00> : vector<128xf32>
    %388 = vector.multi_reduction <add>, %387, %cst_123 [0] : vector<16x128xf32> to vector<128xf32>
    %389 = vector.shape_cast %388 : vector<128xf32> to vector<1x128xf32>
    %390 = vector.extract_strided_slice %1 {offsets = [0, 27], sizes = [32, 1], strides = [1, 1]} : vector<32x32xf32> to vector<32x1xf32>
    %391 = vector.broadcast %390 : vector<32x1xf32> to vector<32x128xf32>
    %392 = arith.addf %391, %2 : vector<32x128xf32>
    %cst_124 = arith.constant 0.000000e+00 : f32
    %393 = vector.broadcast %cst_124 : f32 to vector<32x128xf32>
    %394 = arith.maximumf %392, %393 : vector<32x128xf32>
    %cst_125 = arith.constant dense<0.000000e+00> : vector<16x128xf32>
    %395 = tpu.matmul %3, %394, %cst_125 {dimension_numbers = #tpu.dot_dimension_numbers<[1], [0], [0], [1], [0, 0, 1, 1], [], []>} : vector<16x32xf32>, vector<32x128xf32>, vector<16x128xf32> -> vector<16x128xf32>
    %396 = vector.broadcast %4 : vector<16x1xf32> to vector<16x128xf32>
    %397 = arith.addf %395, %396 : vector<16x128xf32>
    %cst_126 = arith.constant 0.000000e+00 : f32
    %398 = vector.broadcast %cst_126 : f32 to vector<16x128xf32>
    %399 = arith.maximumf %397, %398 : vector<16x128xf32>
    %400 = vector.broadcast %5 : vector<16x1xf32> to vector<16x128xf32>
    %401 = arith.mulf %399, %400 : vector<16x128xf32>
    %cst_127 = arith.constant dense<0.000000e+00> : vector<128xf32>
    %402 = vector.multi_reduction <add>, %401, %cst_127 [0] : vector<16x128xf32> to vector<128xf32>
    %403 = vector.shape_cast %402 : vector<128xf32> to vector<1x128xf32>
    %404 = vector.extract_strided_slice %1 {offsets = [0, 28], sizes = [32, 1], strides = [1, 1]} : vector<32x32xf32> to vector<32x1xf32>
    %405 = vector.broadcast %404 : vector<32x1xf32> to vector<32x128xf32>
    %406 = arith.addf %405, %2 : vector<32x128xf32>
    %cst_128 = arith.constant 0.000000e+00 : f32
    %407 = vector.broadcast %cst_128 : f32 to vector<32x128xf32>
    %408 = arith.maximumf %406, %407 : vector<32x128xf32>
    %cst_129 = arith.constant dense<0.000000e+00> : vector<16x128xf32>
    %409 = tpu.matmul %3, %408, %cst_129 {dimension_numbers = #tpu.dot_dimension_numbers<[1], [0], [0], [1], [0, 0, 1, 1], [], []>} : vector<16x32xf32>, vector<32x128xf32>, vector<16x128xf32> -> vector<16x128xf32>
    %410 = vector.broadcast %4 : vector<16x1xf32> to vector<16x128xf32>
    %411 = arith.addf %409, %410 : vector<16x128xf32>
    %cst_130 = arith.constant 0.000000e+00 : f32
    %412 = vector.broadcast %cst_130 : f32 to vector<16x128xf32>
    %413 = arith.maximumf %411, %412 : vector<16x128xf32>
    %414 = vector.broadcast %5 : vector<16x1xf32> to vector<16x128xf32>
    %415 = arith.mulf %413, %414 : vector<16x128xf32>
    %cst_131 = arith.constant dense<0.000000e+00> : vector<128xf32>
    %416 = vector.multi_reduction <add>, %415, %cst_131 [0] : vector<16x128xf32> to vector<128xf32>
    %417 = vector.shape_cast %416 : vector<128xf32> to vector<1x128xf32>
    %418 = vector.extract_strided_slice %1 {offsets = [0, 29], sizes = [32, 1], strides = [1, 1]} : vector<32x32xf32> to vector<32x1xf32>
    %419 = vector.broadcast %418 : vector<32x1xf32> to vector<32x128xf32>
    %420 = arith.addf %419, %2 : vector<32x128xf32>
    %cst_132 = arith.constant 0.000000e+00 : f32
    %421 = vector.broadcast %cst_132 : f32 to vector<32x128xf32>
    %422 = arith.maximumf %420, %421 : vector<32x128xf32>
    %cst_133 = arith.constant dense<0.000000e+00> : vector<16x128xf32>
    %423 = tpu.matmul %3, %422, %cst_133 {dimension_numbers = #tpu.dot_dimension_numbers<[1], [0], [0], [1], [0, 0, 1, 1], [], []>} : vector<16x32xf32>, vector<32x128xf32>, vector<16x128xf32> -> vector<16x128xf32>
    %424 = vector.broadcast %4 : vector<16x1xf32> to vector<16x128xf32>
    %425 = arith.addf %423, %424 : vector<16x128xf32>
    %cst_134 = arith.constant 0.000000e+00 : f32
    %426 = vector.broadcast %cst_134 : f32 to vector<16x128xf32>
    %427 = arith.maximumf %425, %426 : vector<16x128xf32>
    %428 = vector.broadcast %5 : vector<16x1xf32> to vector<16x128xf32>
    %429 = arith.mulf %427, %428 : vector<16x128xf32>
    %cst_135 = arith.constant dense<0.000000e+00> : vector<128xf32>
    %430 = vector.multi_reduction <add>, %429, %cst_135 [0] : vector<16x128xf32> to vector<128xf32>
    %431 = vector.shape_cast %430 : vector<128xf32> to vector<1x128xf32>
    %432 = vector.extract_strided_slice %1 {offsets = [0, 30], sizes = [32, 1], strides = [1, 1]} : vector<32x32xf32> to vector<32x1xf32>
    %433 = vector.broadcast %432 : vector<32x1xf32> to vector<32x128xf32>
    %434 = arith.addf %433, %2 : vector<32x128xf32>
    %cst_136 = arith.constant 0.000000e+00 : f32
    %435 = vector.broadcast %cst_136 : f32 to vector<32x128xf32>
    %436 = arith.maximumf %434, %435 : vector<32x128xf32>
    %cst_137 = arith.constant dense<0.000000e+00> : vector<16x128xf32>
    %437 = tpu.matmul %3, %436, %cst_137 {dimension_numbers = #tpu.dot_dimension_numbers<[1], [0], [0], [1], [0, 0, 1, 1], [], []>} : vector<16x32xf32>, vector<32x128xf32>, vector<16x128xf32> -> vector<16x128xf32>
    %438 = vector.broadcast %4 : vector<16x1xf32> to vector<16x128xf32>
    %439 = arith.addf %437, %438 : vector<16x128xf32>
    %cst_138 = arith.constant 0.000000e+00 : f32
    %440 = vector.broadcast %cst_138 : f32 to vector<16x128xf32>
    %441 = arith.maximumf %439, %440 : vector<16x128xf32>
    %442 = vector.broadcast %5 : vector<16x1xf32> to vector<16x128xf32>
    %443 = arith.mulf %441, %442 : vector<16x128xf32>
    %cst_139 = arith.constant dense<0.000000e+00> : vector<128xf32>
    %444 = vector.multi_reduction <add>, %443, %cst_139 [0] : vector<16x128xf32> to vector<128xf32>
    %445 = vector.shape_cast %444 : vector<128xf32> to vector<1x128xf32>
    %446 = vector.extract_strided_slice %1 {offsets = [0, 31], sizes = [32, 1], strides = [1, 1]} : vector<32x32xf32> to vector<32x1xf32>
    %447 = vector.broadcast %446 : vector<32x1xf32> to vector<32x128xf32>
    %448 = arith.addf %447, %2 : vector<32x128xf32>
    %cst_140 = arith.constant 0.000000e+00 : f32
    %449 = vector.broadcast %cst_140 : f32 to vector<32x128xf32>
    %450 = arith.maximumf %448, %449 : vector<32x128xf32>
    %cst_141 = arith.constant dense<0.000000e+00> : vector<16x128xf32>
    %451 = tpu.matmul %3, %450, %cst_141 {dimension_numbers = #tpu.dot_dimension_numbers<[1], [0], [0], [1], [0, 0, 1, 1], [], []>} : vector<16x32xf32>, vector<32x128xf32>, vector<16x128xf32> -> vector<16x128xf32>
    %452 = vector.broadcast %4 : vector<16x1xf32> to vector<16x128xf32>
    %453 = arith.addf %451, %452 : vector<16x128xf32>
    %cst_142 = arith.constant 0.000000e+00 : f32
    %454 = vector.broadcast %cst_142 : f32 to vector<16x128xf32>
    %455 = arith.maximumf %453, %454 : vector<16x128xf32>
    %456 = vector.broadcast %5 : vector<16x1xf32> to vector<16x128xf32>
    %457 = arith.mulf %455, %456 : vector<16x128xf32>
    %cst_143 = arith.constant dense<0.000000e+00> : vector<128xf32>
    %458 = vector.multi_reduction <add>, %457, %cst_143 [0] : vector<16x128xf32> to vector<128xf32>
    %459 = vector.shape_cast %458 : vector<128xf32> to vector<1x128xf32>
    %460 = tpu.concatenate %25, %39, %53, %67, %81, %95, %109, %123, %137, %151, %165, %179, %193, %207, %221, %235 in 0 : vector<1x128xf32>, vector<1x128xf32>, vector<1x128xf32>, vector<1x128xf32>, vector<1x128xf32>, vector<1x128xf32>, vector<1x128xf32>, vector<1x128xf32>, vector<1x128xf32>, vector<1x128xf32>, vector<1x128xf32>, vector<1x128xf32>, vector<1x128xf32>, vector<1x128xf32>, vector<1x128xf32>, vector<1x128xf32> -> vector<16x128xf32>
    %461 = tpu.concatenate %249, %263, %277, %291, %305, %319, %333, %347, %361, %375, %389, %403, %417, %431, %445, %459 in 0 : vector<1x128xf32>, vector<1x128xf32>, vector<1x128xf32>, vector<1x128xf32>, vector<1x128xf32>, vector<1x128xf32>, vector<1x128xf32>, vector<1x128xf32>, vector<1x128xf32>, vector<1x128xf32>, vector<1x128xf32>, vector<1x128xf32>, vector<1x128xf32>, vector<1x128xf32>, vector<1x128xf32>, vector<1x128xf32> -> vector<16x128xf32>
    %462 = tpu.concatenate %460, %461 in 0 : vector<16x128xf32>, vector<16x128xf32> -> vector<32x128xf32>
    %463 = arith.addf %462, %11 : vector<32x128xf32>
    %c0_144 = arith.constant 0 : index
    %c0_145 = arith.constant 0 : index
    %464 = vector.load %arg10[%c0_144, %c0_145] : memref<1x1xf32, #tpu.memory_space<vmem>>, vector<1x1xf32>
    %465 = vector.broadcast %464 : vector<1x1xf32> to vector<32x128xf32>
    %466 = arith.addf %463, %465 : vector<32x128xf32>
    %467 = arith.negf %466 : vector<32x128xf32>
    %468 = math.exp %467 : vector<32x128xf32>
    %cst_146 = arith.constant 1.000000e+00 : f32
    %469 = vector.broadcast %cst_146 : f32 to vector<32x128xf32>
    %470 = arith.addf %469, %468 : vector<32x128xf32>
    %471 = arith.divf %469, %470 : vector<32x128xf32>
    %c0_147 = arith.constant 0 : index
    %c0_148 = arith.constant 0 : index
    %472 = vector.load %arg11[%c0_147, %c0_148] : memref<32x128xf32, #tpu.memory_space<vmem>>, vector<32x128xf32>
    tpu.vector_store %arg11[%c0_147, %c0_148], %471 {strides = array<i32>} : memref<32x128xf32, #tpu.memory_space<vmem>>, vector<32x128xf32>,
    return
  }
  func.func @transform_0(%arg0: i32, %arg1: i32) -> (i32, i32) {
    %c0_i32 = arith.constant 0 : i32
    %c0_i32_0 = arith.constant 0 : i32
    return %arg0, %c0_i32 : i32, i32
  }
  func.func @transform_1(%arg0: i32, %arg1: i32) -> (i32, i32) {
    %c0_i32 = arith.constant 0 : i32
    %c0_i32_0 = arith.constant 0 : i32
    return %c0_i32, %arg1 : i32, i32
  }
  func.func @transform_2(%arg0: i32, %arg1: i32) -> (i32, i32, i32) {
    %c0_i32 = arith.constant 0 : i32
    %c0_i32_0 = arith.constant 0 : i32
    %c0_i32_1 = arith.constant 0 : i32
    return %arg0, %c0_i32, %c0_i32_0 : i32, i32, i32
  }
  func.func @transform_3(%arg0: i32, %arg1: i32) -> (i32, i32) {
    %c0_i32 = arith.constant 0 : i32
    %c0_i32_0 = arith.constant 0 : i32
    return %c0_i32, %arg1 : i32, i32
  }
  func.func @transform_4(%arg0: i32, %arg1: i32) -> (i32, i32) {
    %c0_i32 = arith.constant 0 : i32
    %c0_i32_0 = arith.constant 0 : i32
    %c0_i32_1 = arith.constant 0 : i32
    return %c0_i32, %c0_i32_0 : i32, i32
  }
  func.func @transform_5(%arg0: i32, %arg1: i32) -> (i32, i32) {
    %c0_i32 = arith.constant 0 : i32
    %c0_i32_0 = arith.constant 0 : i32
    %c0_i32_1 = arith.constant 0 : i32
    return %c0_i32, %c0_i32_0 : i32, i32
  }
  func.func @transform_6(%arg0: i32, %arg1: i32) -> (i32, i32) {
    %c0_i32 = arith.constant 0 : i32
    %c0_i32_0 = arith.constant 0 : i32
    %c0_i32_1 = arith.constant 0 : i32
    return %c0_i32, %c0_i32_0 : i32, i32
  }
  func.func @transform_7(%arg0: i32, %arg1: i32) -> (i32, i32) {
    %c0_i32 = arith.constant 0 : i32
    %c0_i32_0 = arith.constant 0 : i32
    %c0_i32_1 = arith.constant 0 : i32
    return %c0_i32, %c0_i32_0 : i32, i32
  }
  func.func @transform_8(%arg0: i32, %arg1: i32) -> (i32, i32) {
    %c0_i32 = arith.constant 0 : i32
    %c0_i32_0 = arith.constant 0 : i32
    %c0_i32_1 = arith.constant 0 : i32
    return %c0_i32, %c0_i32_0 : i32, i32
  }
  func.func @transform_9(%arg0: i32, %arg1: i32) -> (i32, i32) {
    %c0_i32 = arith.constant 0 : i32
    return %arg0, %arg1 : i32, i32
  }
}

</mosaic_0001>

<bundles_post_ra>
// kernel: grand_forward_eval.9
= control target key start
LH: loop header
LB: loop body
LE: loop exit
PB: predicated region body
PF: predicated region fallthrough
CT: control target
= control target key end

     0   :  { %vm18_vm0 = vcmask 1043456   ;;  %v112_v0 = vmov 0.0   ;;  %vm113_vm1 = vmmov 0   ;;  %vm14_vm2 = vcmask 97280   ;;  %s141_s1 = inlined_call_operand.vmem [shape: f32[12,128], index: 1, kind: input, shape index: {}]   ;;  %s142_s0 = inlined_call_operand.vmem [shape: f32[8,12], index: 0, kind: input, shape index: {}]   ;;  %s143_s2 = inlined_call_operand.vmem [shape: f32[8,128], index: 2, kind: output, shape index: {}]  }
   0x1   :  { %103 = vmatprep.subr.mxu0 %v112_v0  ;;  %v13_v1 = vld [vmem:[%s141_s1 + $0x8] sm:$0xf]  ;;  %v12_v2 = vld [vmem:[%s141_s1] sm:$0xff]  ;;  %107 = vmatprep.mubr.msk.f32.mxu0 %vm113_vm1, %v112_v0 }
   0x2   :  { %104 = vmatpush3.msk.msra.mxu0 %vm18_vm0, %v13_v1  ;;  %v11_v3 = vld [vmem:[%s142_s0] sm:$0xff] }
   0x3   :  { %105 = vmatprep.subr.mxu0 %v112_v0 }
   0x4   :  { %106 = vmatpush3.msra.mxu0 %v12_v2 }
   0x5   :  { %108 = vmatmul.mubr.msk.f32.vlgmr.msra.gmra.mxu0 %vm14_vm2, %v11_v3 }
  0xc5   :  { %v88_v4 = vpop.f32.mrf.mxu0 }
  0xc6   :  { %v92_v5 = vmul.f32 0.9, %v88_v4 }
  0xc7   :  { %v109_v6 = vpop.f32.mrf.mxu0 }
  0xc8   :  { %93 = vst [vmem:[%s143_s2] sm:$0xff] %v92_v5 }

// kernel: grand_forward_eval.8
= control target key start
LH: loop header
LB: loop body
LE: loop exit
PB: predicated region body
PF: predicated region fallthrough
CT: control target
= control target key end

     0   :  { %v107_v0 = vmov 0.0   ;;  %vm108_vm0 = vmmov 0   ;;  %vm14_vm1 = vcmask 130048   ;;  %s136_s1 = inlined_call_operand.vmem [shape: f32[16,128], index: 1, kind: input, shape index: {}]   ;;  %s137_s0 = inlined_call_operand.vmem [shape: f32[8,16], index: 0, kind: input, shape index: {}]   ;;  %s138_s2 = inlined_call_operand.vmem [shape: f32[8,128], index: 2, kind: output, shape index: {}]  }
   0x1   :  { %98 = vmatprep.subr.mxu0 %v107_v0  ;;  %v13_v1 = vld [vmem:[%s136_s1 + $0x8] sm:$0xff]  ;;  %v12_v2 = vld [vmem:[%s136_s1] sm:$0xff]  ;;  %102 = vmatprep.mubr.msk.f32.mxu0 %vm108_vm0, %v107_v0 }
   0x2   :  { %99 = vmatpush3.msra.mxu0 %v13_v1  ;;  %v11_v3 = vld [vmem:[%s137_s0] sm:$0xff] }
   0x3   :  { %100 = vmatprep.subr.mxu0 %v107_v0 }
   0x4   :  { %101 = vmatpush3.msra.mxu0 %v12_v2 }
   0x5   :  { %103 = vmatmul.mubr.msk.f32.vlgmr.msra.gmra.mxu0 %vm14_vm1, %v11_v3 }
  0xc5   :  { %v84_v4 = vpop.f32.mrf.mxu0 }
  0xc6   :  { %v88_v5 = vmul.f32 0.9, %v84_v4 }
  0xc7   :  { %v104_v6 = vpop.f32.mrf.mxu0 }
  0xc8   :  { %89 = vst [vmem:[%s138_s2] sm:$0xff] %v88_v5 }

// kernel: grand_forward_eval.10
= control target key start
LH: loop header
LB: loop body
LE: loop exit
PB: predicated region body
PF: predicated region fallthrough
CT: control target
= control target key end

     0   :  { %v725_v0 = vmov 0   ;;  %s1085_s1 = inlined_call_operand.vmem [shape: f32[128,1], index: 1, kind: input, shape index: {}, may-alias: {1,2}]   ;;  %s1086_s0 = inlined_call_operand.vmem [shape: s8[128,128], index: 0, kind: input, shape index: {}]   ;;  %s1087_s2 = inlined_call_operand.vmem [shape: f32[128,1], index: 2, kind: input, shape index: {}, may-alias: {1,2}]   ;;  %s1088_s3 = inlined_call_operand.vmem [shape: f32[128,128], index: 3, kind: input, shape index: {}, may-alias: {3,4}]   ;;  %s1089_s4 = inlined_call_operand.vmem [shape: f32[128,128], index: 4, kind: input, shape index: {}, may-alias: {3,4}]   ;;  %s1090_s5 = inlined_call_operand.vmem [shape: f32[128,128], index: 5, kind: output, shape index: {0}]   ;;  %s1091_s6 = inlined_call_operand.vmem [shape: f32[128,128], index: 6, kind: output, shape index: {1}]  }
   0x1   :  { %724 = vset.pattern.permute.xlu1 %v725_v0  ;;  %723 = vset.pattern.permute.xlu0 %v725_v0  ;;  %v109_v1 = vld [vmem:[%s1085_s1 + $0x78] sm:$0xff]  ;;  %v107_v2 = vld [vmem:[%s1085_s1 + $0x68] sm:$0xff]  ;;  %v108_v3 = vld [vmem:[%s1085_s1 + $0x70] sm:$0xff] }
   0x2   :  { %187 = vperm.xlu0 %723, %v109_v1   ;;  %177 = vperm.xlu1 %724, %v107_v2   ;;  %v106_v4 = vld [vmem:[%s1085_s1 + $0x60] sm:$0xff]  ;;  %v105_v5 = vld [vmem:[%s1085_s1 + $0x58] sm:$0xff]  ;;  %v104_v6 = vld [vmem:[%s1085_s1 + $0x50] sm:$0xff] }
   0x3   :  { %v103_v7 = vld [vmem:[%s1085_s1 + $0x48] sm:$0xff]  ;;  %v102_v8 = vld [vmem:[%s1085_s1 + $0x40] sm:$0xff]  ;;  %v101_v9 = vld [vmem:[%s1085_s1 + $0x38] sm:$0xff] }
   0x4   :  { %v100_v10 = vld [vmem:[%s1085_s1 + $0x30] sm:$0xff]  ;;  %v99_v11 = vld [vmem:[%s1085_s1 + $0x28] sm:$0xff]  ;;  %v98_v12 = vld [vmem:[%s1085_s1 + $0x20] sm:$0xff] }
   0x5   :  { %v97_v13 = vld [vmem:[%s1085_s1 + $0x18] sm:$0xff]  ;;  %v96_v14 = vld [vmem:[%s1085_s1 + $0x10] sm:$0xff]  ;;  %v95_v15 = vld [vmem:[%s1085_s1 + $0x8] sm:$0xff] }
   0x6   :  { %182 = vperm.xlu0 %723, %v108_v3   ;;  %172 = vperm.xlu1 %724, %v106_v4   ;;  %v94_v16 = vld [vmem:[%s1085_s1] sm:$0xff]  ;;  %v817_v18 = vld [vmem:[%s1086_s0 + $0x10] sm:$0xff]  ;;  %v419_v22 = vld [vmem:[%s1087_s2 + $0x8] sm:$0xff] }
   0x7   :  { %v812_v17 = vld [vmem:[%s1086_s0] sm:$0xff]  ;;  %v54_v20 = vunpack.c.0.s8 %v817_v18  ;;  %v420_v25 = vld [vmem:[%s1087_s2 + $0x10] sm:$0xff]  ;;  %v421_v26 = vld [vmem:[%s1087_s2 + $0x18] sm:$0xff] }
   0x8   :  { %v46_v19 = vunpack.c.0.s8 %v812_v17  ;;  %v418_v21 = vld [vmem:[%s1087_s2] sm:$0xff]  ;;  %v423_v28 = vld [vmem:[%s1087_s2 + $0x28] sm:$0xff]  ;;  %v424_v29 = vld [vmem:[%s1087_s2 + $0x30] sm:$0xff] }
   0x9   :  { %v70_v24 = vcvt.s32.f32 %v54_v20  ;;  %v422_v27 = vld [vmem:[%s1087_s2 + $0x20] sm:$0xff]  ;;  %v425_v30 = vld [vmem:[%s1087_s2 + $0x38] sm:$0xff]  ;;  %v427_v32 = vld [vmem:[%s1087_s2 + $0x48] sm:$0xff]  ;;  %v47_v20 = vunpack.c.1.s8 %v812_v17 }
   0xa   :  { %167 = vperm.xlu0 %723, %v105_v5   ;;  %162 = vperm.xlu1 %724, %v104_v6   ;;  %v62_v23 = vcvt.s32.f32 %v46_v19  ;;  %v426_v31 = vld [vmem:[%s1087_s2 + $0x40] sm:$0xff]  ;;  %v428_v33 = vld [vmem:[%s1087_s2 + $0x50] sm:$0xff]  ;;  %v429_v34 = vld [vmem:[%s1087_s2 + $0x58] sm:$0xff] }
   0xb   :  { %678 = vmatprep.mubr.f32.mxu1 %v70_v24  ;;  %v430_v35 = vld [vmem:[%s1087_s2 + $0x60] sm:$0xff]  ;;  %v431_v36 = vld [vmem:[%s1087_s2 + $0x68] sm:$0xff]  ;;  %v432_v37 = vld [vmem:[%s1087_s2 + $0x70] sm:$0xff] }
   0xc   :  { %666 = vmatprep.mubr.f32.mxu0 %v62_v23  ;;  %v433_v38 = vld [vmem:[%s1087_s2 + $0x78] sm:$0xff]  ;;  %v92_v43 = vld [vmem:[%s1088_s3 + $0x70] sm:$0xff]  ;;  %v91_v44 = vld [vmem:[%s1088_s3 + $0x68] sm:$0xff] }
   0xd   :  { %v93_v39 = vld [vmem:[%s1088_s3 + $0x78] sm:$0xff]  ;;  %v90_v48 = vld [vmem:[%s1088_s3 + $0x60] sm:$0xff]  ;;  %v88_v54 = vld [vmem:[%s1088_s3 + $0x50] sm:$0xff] }
   0xe   :  { %157 = vperm.xlu0 %723, %v103_v7   ;;  %152 = vperm.xlu1 %724, %v102_v8   ;;  %v89_v50 = vld [vmem:[%s1088_s3 + $0x58] sm:$0xff]  ;;  %v87_v56 = vld [vmem:[%s1088_s3 + $0x48] sm:$0xff]  ;;  %v86_v60 = vld [vmem:[%s1088_s3 + $0x40] sm:$0xff] }
   0xf   :  { %v85_v62 = vld [vmem:[%s1088_s3 + $0x38] sm:$0xff]  ;;  %v84_v2 = vld [vmem:[%s1088_s3 + $0x30] sm:$0xff]  ;;  %v83_v4 = vld [vmem:[%s1088_s3 + $0x28] sm:$0xff] }
  0x10   :  { %v82_v8 = vld [vmem:[%s1088_s3 + $0x20] sm:$0xff] }
  0x11   :  { %v78_v23 = vld [vmem:[%s1088_s3] sm:$0xff] }
  0x12   :  { %147 = vperm.xlu0 %723, %v101_v9   ;;  %142 = vperm.xlu1 %724, %v100_v10   ;;  %v81_v10 = vld [vmem:[%s1088_s3 + $0x18] sm:$0xff] }
  0x16   :  { %137 = vperm.xlu0 %723, %v99_v11   ;;  %132 = vperm.xlu1 %724, %v98_v12  }
  0x1a   :  { %127 = vperm.xlu0 %723, %v97_v13   ;;  %122 = vperm.xlu1 %724, %v96_v14   ;;  %v80_v14 = vld [vmem:[%s1088_s3 + $0x10] sm:$0xff] }
  0x1e   :  { %117 = vperm.xlu0 %723, %v95_v15   ;;  %112 = vperm.xlu1 %724, %v94_v16   ;;  %v79_v16 = vld [vmem:[%s1088_s3 + $0x8] sm:$0xff] }
  0x22   :  { %436 = vperm.xlu0 %723, %v418_v21   ;;  %441 = vperm.xlu1 %724, %v419_v22   ;;  %v55_v22 = vunpack.c.1.s8 %v817_v18 }
  0x26   :  { %446 = vperm.xlu0 %723, %v420_v25   ;;  %451 = vperm.xlu1 %724, %v421_v26   ;;  %v48_v25 = vunpack.c.2.s8 %v812_v17  ;;  %v56_v26 = vunpack.c.2.s8 %v817_v18 }
  0x2a   :  { %456 = vperm.xlu0 %723, %v422_v27   ;;  %461 = vperm.xlu1 %724, %v423_v28   ;;  %v43_v28 = vld [vmem:[%s1086_s0 + $0x8] sm:$0xff] }
  0x2e   :  { %466 = vperm.xlu0 %723, %v424_v29   ;;  %471 = vperm.xlu1 %724, %v425_v30   ;;  %v45_v29 = vld [vmem:[%s1086_s0 + $0x18] sm:$0xff]  ;;  %v63_v30 = vcvt.s32.f32 %v47_v20 }
  0x2f   :  { %v557_v20 = vld [vmem:[%s1089_s4 + $0x58] sm:$0xff] }
  0x32   :  { %476 = vperm.xlu0 %723, %v426_v31   ;;  %481 = vperm.xlu1 %724, %v427_v32   ;;  %v71_v32 = vcvt.s32.f32 %v55_v22 }
  0x36   :  { %486 = vperm.xlu0 %723, %v428_v33   ;;  %491 = vperm.xlu1 %724, %v429_v34   ;;  %v49_v33 = vunpack.c.3.s8 %v812_v17  ;;  %v57_v34 = vunpack.c.3.s8 %v817_v18 }
  0x3a   :  { %496 = vperm.xlu0 %723, %v430_v35   ;;  %501 = vperm.xlu1 %724, %v431_v36   ;;  %v64_v35 = vcvt.s32.f32 %v48_v25  ;;  %v72_v36 = vcvt.s32.f32 %v56_v26 }
  0x3e   :  { %506 = vperm.xlu0 %723, %v432_v37   ;;  %511 = vperm.xlu1 %724, %v433_v38   ;;  %v50_v37 = vunpack.c.0.s8 %v43_v28  ;;  %v58_v38 = vunpack.c.0.s8 %v45_v29 }
  0x40   :  { %v66_v17 = vcvt.s32.f32 %v50_v37  ;;  %v74_v18 = vcvt.s32.f32 %v58_v38  ;;  %v559_v38 = vld [vmem:[%s1089_s4 + $0x68] sm:$0xff] }
  0x7d   :  { %v188_v40 = vpop.permute.xlu0 %187  ;;  %v178_v41 = vpop.permute.xlu1 %177 }
  0x7e   :  { %v205_v42 = vmul.f32 %v188_v40, %v93_v39  ;;  %v203_v49 = vmul.f32 %v178_v41, %v91_v44  ;;  %v65_v39 = vcvt.s32.f32 %v49_v33  ;;  %v73_v40 = vcvt.s32.f32 %v57_v34 }
  0x7f   :  { %v51_v41 = vunpack.c.1.s8 %v43_v28  ;;  %v60_v44 = vunpack.c.2.s8 %v45_v29 }
  0x80   :  { %634 = vmatprep.subr.mxu0 %v205_v42  ;;  %690 = vmatprep.subr.mxu1 %v205_v42 }
  0x81   :  { %635 = vmatpush3.msra.mxu0 %v205_v42  ;;  %706 = vmatpush3.msra.mxu1 %v205_v42  ;;  %v183_v45 = vpop.permute.xlu0 %182  ;;  %v173_v46 = vpop.permute.xlu1 %172  ;;  %v59_v42 = vunpack.c.1.s8 %v45_v29 }
  0x82   :  { %v204_v47 = vmul.f32 %v183_v45, %v92_v43  ;;  %v202_v53 = vmul.f32 %v173_v46, %v90_v48  ;;  %v52_v43 = vunpack.c.2.s8 %v43_v28  ;;  %v67_v45 = vcvt.s32.f32 %v51_v41 }
  0x83   :  { %v75_v46 = vcvt.s32.f32 %v59_v42  ;;  %v61_v48 = vunpack.c.3.s8 %v45_v29  ;;  %v556_v29 = vld [vmem:[%s1089_s4 + $0x50] sm:$0xff] }
  0x84   :  { %636 = vmatprep.subr.mxu0 %v204_v47  ;;  %691 = vmatprep.subr.mxu1 %v204_v47 }
  0x85   :  { %637 = vmatpush3.msra.mxu0 %v204_v47  ;;  %707 = vmatpush3.msra.mxu1 %v204_v47  ;;  %v168_v51 = vpop.permute.xlu0 %167  ;;  %v163_v52 = vpop.permute.xlu1 %162  ;;  %v53_v47 = vunpack.c.3.s8 %v43_v28 }
  0x86   :  { %638 = vmatprep.subr.mxu0 %v203_v49  ;;  %692 = vmatprep.subr.mxu1 %v203_v49  ;;  %v201_v55 = vmul.f32 %v168_v51, %v89_v50  ;;  %v200_v59 = vmul.f32 %v163_v52, %v88_v54  ;;  %v76_v50 = vcvt.s32.f32 %v60_v44  ;;  %v77_v52 = vcvt.s32.f32 %v61_v48  ;;  %v558_v44 = vld [vmem:[%s1089_s4 + $0x60] sm:$0xff] }
  0x87   :  { %639 = vmatpush3.msra.mxu0 %v203_v49  ;;  %708 = vmatpush3.msra.mxu1 %v203_v49  ;;  %v68_v49 = vcvt.s32.f32 %v52_v43  ;;  %v69_v51 = vcvt.s32.f32 %v53_v47 }
  0x88   :  { %640 = vmatprep.subr.mxu0 %v202_v53  ;;  %693 = vmatprep.subr.mxu1 %v202_v53 }
  0x89   :  { %641 = vmatpush3.msra.mxu0 %v202_v53  ;;  %709 = vmatpush3.msra.mxu1 %v202_v53  ;;  %v158_v57 = vpop.permute.xlu0 %157  ;;  %v153_v58 = vpop.permute.xlu1 %152 }
  0x8a   :  { %642 = vmatprep.subr.mxu0 %v201_v55  ;;  %694 = vmatprep.subr.mxu1 %v201_v55  ;;  %v199_v61 = vmul.f32 %v158_v57, %v87_v56  ;;  %v198_v1 = vmul.f32 %v153_v58, %v86_v60 }
  0x8b   :  { %643 = vmatpush3.msra.mxu0 %v201_v55  ;;  %710 = vmatpush3.msra.mxu1 %v201_v55 }
  0x8c   :  { %644 = vmatprep.subr.mxu0 %v200_v59  ;;  %695 = vmatprep.subr.mxu1 %v200_v59 }
  0x8d   :  { %645 = vmatpush3.msra.mxu0 %v200_v59  ;;  %711 = vmatpush3.msra.mxu1 %v200_v59  ;;  %v148_v63 = vpop.permute.xlu0 %147  ;;  %v143_v0 = vpop.permute.xlu1 %142 }
  0x8e   :  { %646 = vmatprep.subr.mxu0 %v199_v61  ;;  %696 = vmatprep.subr.mxu1 %v199_v61  ;;  %v197_v3 = vmul.f32 %v148_v63, %v85_v62  ;;  %v196_v7 = vmul.f32 %v143_v0, %v84_v2 }
  0x8f   :  { %647 = vmatpush3.msra.mxu0 %v199_v61  ;;  %712 = vmatpush3.msra.mxu1 %v199_v61 }
  0x90   :  { %648 = vmatprep.subr.mxu0 %v198_v1  ;;  %697 = vmatprep.subr.mxu1 %v198_v1 }
  0x91   :  { %649 = vmatpush3.msra.mxu0 %v198_v1  ;;  %713 = vmatpush3.msra.mxu1 %v198_v1  ;;  %v138_v5 = vpop.permute.xlu0 %137  ;;  %v133_v6 = vpop.permute.xlu1 %132  ;;  %v547_v1 = vld [vmem:[%s1089_s4 + $0x8] sm:$0xff] }
  0x92   :  { %650 = vmatprep.subr.mxu0 %v197_v3  ;;  %698 = vmatprep.subr.mxu1 %v197_v3  ;;  %v195_v9 = vmul.f32 %v138_v5, %v83_v4  ;;  %v194_v13 = vmul.f32 %v133_v6, %v82_v8  ;;  %v546_v8 = vld [vmem:[%s1089_s4] sm:$0xff] }
  0x93   :  { %651 = vmatpush3.msra.mxu0 %v197_v3  ;;  %714 = vmatpush3.msra.mxu1 %v197_v3  ;;  %v555_v3 = vld [vmem:[%s1089_s4 + $0x48] sm:$0xff] }
  0x94   :  { %652 = vmatprep.subr.mxu0 %v196_v7  ;;  %699 = vmatprep.subr.mxu1 %v196_v7 }
  0x95   :  { %653 = vmatpush3.msra.mxu0 %v196_v7  ;;  %715 = vmatpush3.msra.mxu1 %v196_v7  ;;  %v128_v11 = vpop.permute.xlu0 %127  ;;  %v123_v12 = vpop.permute.xlu1 %122 }
  0x96   :  { %654 = vmatprep.subr.mxu0 %v195_v9  ;;  %700 = vmatprep.subr.mxu1 %v195_v9  ;;  %v193_v15 = vmul.f32 %v128_v11, %v81_v10  ;;  %v192_v21 = vmul.f32 %v123_v12, %v80_v14  ;;  %v554_v10 = vld [vmem:[%s1089_s4 + $0x40] sm:$0xff] }
  0x97   :  { %655 = vmatpush3.msra.mxu0 %v195_v9  ;;  %716 = vmatpush3.msra.mxu1 %v195_v9 }
  0x98   :  { %656 = vmatprep.subr.mxu0 %v194_v13  ;;  %701 = vmatprep.subr.mxu1 %v194_v13 }
  0x99   :  { %657 = vmatpush3.msra.mxu0 %v194_v13  ;;  %717 = vmatpush3.msra.mxu1 %v194_v13  ;;  %v118_v19 = vpop.permute.xlu0 %117  ;;  %v113_v24 = vpop.permute.xlu1 %112 }
  0x9a   :  { %658 = vmatprep.subr.mxu0 %v193_v15  ;;  %702 = vmatprep.subr.mxu1 %v193_v15  ;;  %v191_v27 = vmul.f32 %v118_v19, %v79_v16  ;;  %v190_v31 = vmul.f32 %v113_v24, %v78_v23  ;;  %v549_v16 = vld [vmem:[%s1089_s4 + $0x18] sm:$0xff] }
  0x9b   :  { %659 = vmatpush3.msra.mxu0 %v193_v15  ;;  %718 = vmatpush3.msra.mxu1 %v193_v15 }
  0x9c   :  { %660 = vmatprep.subr.mxu0 %v192_v21  ;;  %703 = vmatprep.subr.mxu1 %v192_v21 }
  0x9d   :  { %661 = vmatpush3.msra.mxu0 %v192_v21  ;;  %719 = vmatpush3.msra.mxu1 %v192_v21  ;;  %v442_v53 = vpop.permute.xlu1 %441  ;;  %v437_v54 = vpop.permute.xlu0 %436 }
  0x9e   :  { %662 = vmatprep.subr.mxu0 %v191_v27  ;;  %704 = vmatprep.subr.mxu1 %v191_v27 }
  0x9f   :  { %663 = vmatpush3.msra.mxu0 %v191_v27  ;;  %720 = vmatpush3.msra.mxu1 %v191_v27  ;;  %v548_v27 = vld [vmem:[%s1089_s4 + $0x10] sm:$0xff] }
  0xa0   :  { %664 = vmatprep.subr.mxu0 %v190_v31  ;;  %705 = vmatprep.subr.mxu1 %v190_v31 }
  0xa1   :  { %665 = vmatpush3.msra.mxu0 %v190_v31  ;;  %721 = vmatpush3.msra.mxu1 %v190_v31  ;;  %v452_v55 = vpop.permute.xlu1 %451  ;;  %v447_v56 = vpop.permute.xlu0 %446 }
  0xa2   :  { %667 = vmatmul.mubr.f32.vlgmr.msra.gmra.mxu0 %v63_v30  ;;  %679 = vmatmul.mubr.f32.vlgmr.msra.gmra.mxu1 %v71_v32 }
  0xa3   :  { %669 = vmatprep.mubr.f32.mxu0 %v64_v35  ;;  %681 = vmatprep.mubr.f32.mxu1 %v72_v36  ;;  %v551_v36 = vld [vmem:[%s1089_s4 + $0x28] sm:$0xff] }
  0xa5   :  { %v929_v57 = vpop.permute.xlu1 %461  ;;  %v931_v58 = vpop.permute.xlu0 %456 }
  0xa6   :  { %670 = vmatmul.mubr.f32.gmra.mxu0 %v65_v39  ;;  %682 = vmatmul.mubr.f32.gmra.mxu1 %v73_v40 }
  0xa7   :  { %672 = vmatprep.mubr.f32.mxu0 %v66_v17  ;;  %684 = vmatprep.mubr.f32.mxu1 %v74_v18  ;;  %v550_v18 = vld [vmem:[%s1089_s4 + $0x20] sm:$0xff] }
  0xa9   :  { %v933_v59 = vpop.permute.xlu1 %471  ;;  %v935_v60 = vpop.permute.xlu0 %466 }
  0xaa   :  { %673 = vmatmul.mubr.f32.gmra.mxu0 %v67_v45  ;;  %685 = vmatmul.mubr.f32.gmra.mxu1 %v75_v46 }
  0xab   :  { %675 = vmatprep.mubr.f32.mxu0 %v68_v49  ;;  %687 = vmatprep.mubr.f32.mxu1 %v76_v50 }
  0xad   :  { %v482_v61 = vpop.permute.xlu1 %481  ;;  %v477_v62 = vpop.permute.xlu0 %476 }
  0xae   :  { %676 = vmatmul.mubr.f32.gmra.mxu0 %v69_v51  ;;  %688 = vmatmul.mubr.f32.gmra.mxu1 %v77_v52  ;;  %v553_v51 = vld [vmem:[%s1089_s4 + $0x38] sm:$0xff] }
  0xb1   :  { %v492_v63 = vpop.permute.xlu1 %491  ;;  %v487_v4 = vpop.permute.xlu0 %486 }
  0xb5   :  { %v502_v21 = vpop.permute.xlu1 %501  ;;  %v497_v30 = vpop.permute.xlu0 %496 }
  0xb9   :  { %v512_v45 = vpop.permute.xlu1 %511 }
 0x162   :  { %v668_v0 = vpop.f32.mrf.mxu0  ;;  %v680_v2 = vpop.f32.mrf.mxu1 }
 0x163   :  { %v515_v5 = vmul.f32 %v668_v0, %v442_v53  ;;  %v523_v6 = vmul.f32 %v680_v2, %v482_v61  ;;  %v561_v53 = vld [vmem:[%s1089_s4 + $0x78] sm:$0xff]  ;;  %v560_v0 = vld [vmem:[%s1089_s4 + $0x70] sm:$0xff] }
 0x164   :  { %v288_v7 = vpop.f32.mrf.mxu0  ;;  %v328_v9 = vpop.f32.mrf.mxu1 }
 0x165   :  { %531 = vst [vmem:[%s1090_s5 + $0x8] sm:$0xff] %v515_v5  ;;  %v563_v11 = vadd.f32 %v547_v1, %v515_v5  ;;  %539 = vst [vmem:[%s1090_s5 + $0x48] sm:$0xff] %v523_v6  ;;  %v571_v12 = vadd.f32 %v555_v3, %v523_v6  ;;  %v514_v13 = vmul.f32 %v437_v54, %v288_v7  ;;  %v507_v54 = vpop.permute.xlu0 %506 }
 0x166   :  { %v522_v14 = vmul.f32 %v477_v62, %v328_v9  ;;  %v671_v15 = vpop.f32.mrf.mxu0  ;;  %v683_v19 = vpop.f32.mrf.mxu1  ;;  %v552_v62 = vld [vmem:[%s1089_s4 + $0x30] sm:$0xff] }
 0x167   :  { %579 = vst [vmem:[%s1091_s6 + $0x8] sm:$0xff] %v563_v11  ;;  %587 = vst [vmem:[%s1091_s6 + $0x48] sm:$0xff] %v571_v12  ;;  %v562_v22 = vadd.f32 %v546_v8, %v514_v13  ;;  %v517_v24 = vmul.f32 %v671_v15, %v452_v55  ;;  %v525_v25 = vmul.f32 %v683_v19, %v492_v63 }
 0x168   :  { %530 = vst [vmem:[%s1090_s5] sm:$0xff] %v514_v13  ;;  %538 = vst [vmem:[%s1090_s5 + $0x40] sm:$0xff] %v522_v14  ;;  %v570_v23 = vadd.f32 %v554_v10, %v522_v14  ;;  %v298_v26 = vpop.f32.mrf.mxu0  ;;  %v338_v28 = vpop.f32.mrf.mxu1 }
 0x169   :  { %578 = vst [vmem:[%s1091_s6] sm:$0xff] %v562_v22  ;;  %533 = vst [vmem:[%s1090_s5 + $0x18] sm:$0xff] %v517_v24  ;;  %v565_v31 = vadd.f32 %v549_v16, %v517_v24  ;;  %v573_v32 = vadd.f32 %v557_v20, %v525_v25  ;;  %v516_v33 = vmul.f32 %v447_v56, %v298_v26 }
 0x16a   :  { %586 = vst [vmem:[%s1091_s6 + $0x40] sm:$0xff] %v570_v23  ;;  %541 = vst [vmem:[%s1090_s5 + $0x58] sm:$0xff] %v525_v25  ;;  %v524_v34 = vmul.f32 %v487_v4, %v338_v28  ;;  %v674_v35 = vpop.f32.mrf.mxu0  ;;  %v686_v37 = vpop.f32.mrf.mxu1 }
 0x16b   :  { %581 = vst [vmem:[%s1091_s6 + $0x18] sm:$0xff] %v565_v31  ;;  %589 = vst [vmem:[%s1091_s6 + $0x58] sm:$0xff] %v573_v32  ;;  %v564_v39 = vadd.f32 %v548_v27, %v516_v33  ;;  %v519_v41 = vmul.f32 %v674_v35, %v929_v57  ;;  %v527_v42 = vmul.f32 %v686_v37, %v502_v21 }
 0x16c   :  { %532 = vst [vmem:[%s1090_s5 + $0x10] sm:$0xff] %v516_v33  ;;  %540 = vst [vmem:[%s1090_s5 + $0x50] sm:$0xff] %v524_v34  ;;  %v572_v40 = vadd.f32 %v556_v29, %v524_v34  ;;  %v308_v17 = vpop.f32.mrf.mxu0  ;;  %v348_v43 = vpop.f32.mrf.mxu1 }
 0x16d   :  { %580 = vst [vmem:[%s1091_s6 + $0x10] sm:$0xff] %v564_v39  ;;  %535 = vst [vmem:[%s1090_s5 + $0x28] sm:$0xff] %v519_v41  ;;  %v567_v46 = vadd.f32 %v551_v36, %v519_v41  ;;  %v575_v47 = vadd.f32 %v559_v38, %v527_v42  ;;  %v518_v48 = vmul.f32 %v931_v58, %v308_v17 }
 0x16e   :  { %588 = vst [vmem:[%s1091_s6 + $0x50] sm:$0xff] %v572_v40  ;;  %543 = vst [vmem:[%s1090_s5 + $0x68] sm:$0xff] %v527_v42  ;;  %v526_v49 = vmul.f32 %v497_v30, %v348_v43  ;;  %v677_v50 = vpop.f32.mrf.mxu0  ;;  %v689_v52 = vpop.f32.mrf.mxu1 }
 0x16f   :  { %583 = vst [vmem:[%s1091_s6 + $0x28] sm:$0xff] %v567_v46  ;;  %591 = vst [vmem:[%s1091_s6 + $0x68] sm:$0xff] %v575_v47  ;;  %v566_v55 = vadd.f32 %v550_v18, %v518_v48  ;;  %v521_v57 = vmul.f32 %v677_v50, %v933_v59  ;;  %v529_v58 = vmul.f32 %v689_v52, %v512_v45 }
 0x170   :  { %534 = vst [vmem:[%s1090_s5 + $0x20] sm:$0xff] %v518_v48  ;;  %542 = vst [vmem:[%s1090_s5 + $0x60] sm:$0xff] %v526_v49  ;;  %v574_v56 = vadd.f32 %v558_v44, %v526_v49  ;;  %v318_v61 = vpop.f32.mrf.mxu0  ;;  %v358_v63 = vpop.f32.mrf.mxu1 }
 0x171   :  { %582 = vst [vmem:[%s1091_s6 + $0x20] sm:$0xff] %v566_v55  ;;  %537 = vst [vmem:[%s1090_s5 + $0x38] sm:$0xff] %v521_v57  ;;  %v569_v59 = vadd.f32 %v553_v51, %v521_v57  ;;  %v577_v1 = vadd.f32 %v561_v53, %v529_v58  ;;  %v520_v2 = vmul.f32 %v935_v60, %v318_v61 }
 0x172   :  { %590 = vst [vmem:[%s1091_s6 + $0x60] sm:$0xff] %v574_v56  ;;  %545 = vst [vmem:[%s1090_s5 + $0x78] sm:$0xff] %v529_v58  ;;  %v528_v3 = vmul.f32 %v507_v54, %v358_v63 }
 0x173   :  { %585 = vst [vmem:[%s1091_s6 + $0x38] sm:$0xff] %v569_v59  ;;  %593 = vst [vmem:[%s1091_s6 + $0x78] sm:$0xff] %v577_v1  ;;  %v568_v4 = vadd.f32 %v552_v62, %v520_v2 }
 0x174   :  { %536 = vst [vmem:[%s1090_s5 + $0x30] sm:$0xff] %v520_v2  ;;  %544 = vst [vmem:[%s1090_s5 + $0x70] sm:$0xff] %v528_v3  ;;  %v576_v5 = vadd.f32 %v560_v0, %v528_v3 }
 0x175   :  { %584 = vst [vmem:[%s1091_s6 + $0x30] sm:$0xff] %v568_v4 }
 0x176   :  { %592 = vst [vmem:[%s1091_s6 + $0x70] sm:$0xff] %v576_v5 }

// kernel: grand_forward_eval.12
= control target key start
LH: loop header
LB: loop body
LE: loop exit
PB: predicated region body
PF: predicated region fallthrough
CT: control target
= control target key end

     0   :  { %v763_v2 = vmov 0   ;;  %s1078_s0 = inlined_call_operand.vmem [shape: s8[128,128], index: 0, kind: input, shape index: {}]   ;;  %s1079_s1 = inlined_call_operand.vmem [shape: f32[128,1], index: 1, kind: input, shape index: {}, may-alias: {1,2}]   ;;  %s1080_s2 = inlined_call_operand.vmem [shape: f32[128,1], index: 2, kind: input, shape index: {}, may-alias: {1,2}]   ;;  %s1081_s3 = inlined_call_operand.vmem [shape: f32[128,128], index: 3, kind: input, shape index: {}]   ;;  %s1082_s4 = inlined_call_operand.vmem [shape: f32[128,128], index: 4, kind: input, shape index: {}]   ;;  %s1083_s5 = inlined_call_operand.hbm [shape: f32[128,128], index: 5, kind: output, shape index: {0}]   ;;  %s1084_s6 = inlined_call_operand.vmem [shape: f32[128,128], index: 6, kind: output, shape index: {1}]  }
   0x1   :  { %v110_v0 = vld [vmem:[%s1079_s1 + $0x78] sm:$0xff]  ;;  %v108_v1 = vld [vmem:[%s1079_s1 + $0x68] sm:$0xff]  ;;  %740 = vset.pattern.permute.xlu1 %v763_v2  ;;  %739 = vset.pattern.permute.xlu0 %v763_v2  ;;  %v109_v3 = vld [vmem:[%s1079_s1 + $0x70] sm:$0xff] }
   0x2   :  { %188 = vperm.xlu0 %739, %v110_v0   ;;  %178 = vperm.xlu1 %740, %v108_v1   ;;  %v107_v4 = vld [vmem:[%s1079_s1 + $0x60] sm:$0xff]  ;;  %v106_v5 = vld [vmem:[%s1079_s1 + $0x58] sm:$0xff]  ;;  %v105_v6 = vld [vmem:[%s1079_s1 + $0x50] sm:$0xff] }
   0x3   :  { %v104_v7 = vld [vmem:[%s1079_s1 + $0x48] sm:$0xff]  ;;  %v103_v8 = vld [vmem:[%s1079_s1 + $0x40] sm:$0xff] }
   0x6   :  { %183 = vperm.xlu0 %739, %v109_v3   ;;  %173 = vperm.xlu1 %740, %v107_v4  }
   0xa   :  { %168 = vperm.xlu0 %739, %v106_v5   ;;  %163 = vperm.xlu1 %740, %v105_v6  }
   0xe   :  { %158 = vperm.xlu0 %739, %v104_v7   ;;  %153 = vperm.xlu1 %740, %v103_v8  }
   0xf   :  { %12 = vsyncpa [#allocation4], 0  ;;  %v102_v9 = vld [vmem:[%s1079_s1 + $0x38] sm:$0xff]  ;;  %v101_v10 = vld [vmem:[%s1079_s1 + $0x30] sm:$0xff]  ;;  %s764_s10 = smov [#allocation3]  }
  0x10   :  { %v100_v11 = vld [vmem:[%s1079_s1 + $0x28] sm:$0xff]  ;;  %v99_v12 = vld [vmem:[%s1079_s1 + $0x20] sm:$0xff]  ;;  %v98_v13 = vld [vmem:[%s1079_s1 + $0x18] sm:$0xff] }
  0x11   :  { %v97_v14 = vld [vmem:[%s1079_s1 + $0x10] sm:$0xff]  ;;  %v96_v15 = vld [vmem:[%s1079_s1 + $0x8] sm:$0xff]  ;;  %v95_v16 = vld [vmem:[%s1079_s1] sm:$0xff]  ;;  %s600_s1 = sshll.u32 %s764_s10, 4  ;;  %s601_s1 = int_to_ptr.vmem [resolvable:$true] %s600_s1 }
  0x12   :  { %148 = vperm.xlu0 %739, %v102_v9   ;;  %143 = vperm.xlu1 %740, %v101_v10   ;;  %v853_v17 = vld [vmem:[%s1078_s0] sm:$0xff]  ;;  %v858_v18 = vld [vmem:[%s1078_s0 + $0x10] sm:$0xff]  ;;  %v420_v22 = vld [vmem:[%s1080_s2 + $0x8] sm:$0xff]  ;;  %s741_s27 = scalar_lea.vmem %s601_s1, 2048  ;;  %p746_p1 = scmp.lt.s32.totalorder %s601_s1, %s601_s1 }
  0x13   :  { %v47_v19 = vunpack.c.0.s8 %v853_v17  ;;  %v55_v20 = vunpack.c.0.s8 %v858_v18  ;;  %v419_v21 = vld [vmem:[%s1080_s2] sm:$0xff]  ;;  %v421_v25 = vld [vmem:[%s1080_s2 + $0x10] sm:$0xff]  ;;  %v422_v26 = vld [vmem:[%s1080_s2 + $0x18] sm:$0xff]  ;;  %p742_p0 = scmp.ne.s32.totalorder %s601_s1, %s741_s27  ;;  %p747_p2 = scmp.lt.s32.totalorder %s741_s27, %s741_s27 }
  0x14   :  { %v423_v27 = vld [vmem:[%s1080_s2 + $0x20] sm:$0xff]  ;;  %v424_v28 = vld [vmem:[%s1080_s2 + $0x28] sm:$0xff]  ;;  %v425_v29 = vld [vmem:[%s1080_s2 + $0x30] sm:$0xff] }
  0x15   :  { %v63_v23 = vcvt.s32.f32 %v47_v19  ;;  %v71_v24 = vcvt.s32.f32 %v55_v20  ;;  %v426_v30 = vld [vmem:[%s1080_s2 + $0x38] sm:$0xff]  ;;  %v427_v31 = vld [vmem:[%s1080_s2 + $0x40] sm:$0xff]  ;;  %v428_v32 = vld [vmem:[%s1080_s2 + $0x48] sm:$0xff]  ;;  %v48_v20 = vunpack.c.1.s8 %v853_v17  ;;  %p748_p3 = por %p747_p2, %p746_p1 }
  0x16   :  { %138 = vperm.xlu0 %739, %v100_v11   ;;  %133 = vperm.xlu1 %740, %v99_v12   ;;  %v429_v33 = vld [vmem:[%s1080_s2 + $0x50] sm:$0xff]  ;;  %v430_v34 = vld [vmem:[%s1080_s2 + $0x58] sm:$0xff]  ;;  %v431_v35 = vld [vmem:[%s1080_s2 + $0x60] sm:$0xff] }
  0x17   :  { %679 = vmatprep.mubr.f32.mxu0 %v63_v23  ;;  %691 = vmatprep.mubr.f32.mxu1 %v71_v24  ;;  %v432_v36 = vld [vmem:[%s1080_s2 + $0x68] sm:$0xff]  ;;  %v433_v37 = vld [vmem:[%s1080_s2 + $0x70] sm:$0xff]  ;;  %v434_v38 = vld [vmem:[%s1080_s2 + $0x78] sm:$0xff]  ;;  %p749_p4 = pnand %p748_p3, %p742_p0 }
  0x18   :  { %v94_v39 = vld [vmem:[%s1081_s3 + $0x78] sm:$0xff]  ;;  %v93_v43 = vld [vmem:[%s1081_s3 + $0x70] sm:$0xff]  ;;  %v92_v44 = vld [vmem:[%s1081_s3 + $0x68] sm:$0xff] }
  0x19   :  { %v91_v48 = vld [vmem:[%s1081_s3 + $0x60] sm:$0xff]  ;;  %v90_v51 = vld [vmem:[%s1081_s3 + $0x58] sm:$0xff]  ;;  %v89_v54 = vld [vmem:[%s1081_s3 + $0x50] sm:$0xff] }
  0x1a   :  { %128 = vperm.xlu0 %739, %v98_v13   ;;  %123 = vperm.xlu1 %740, %v97_v14   ;;  %v88_v57 = vld [vmem:[%s1081_s3 + $0x48] sm:$0xff]  ;;  %v87_v60 = vld [vmem:[%s1081_s3 + $0x40] sm:$0xff]  ;;  %v86_v63 = vld [vmem:[%s1081_s3 + $0x38] sm:$0xff] }
  0x1b   :  { %v85_v2 = vld [vmem:[%s1081_s3 + $0x30] sm:$0xff]  ;;  %v84_v5 = vld [vmem:[%s1081_s3 + $0x28] sm:$0xff]  ;;  %v83_v8 = vld [vmem:[%s1081_s3 + $0x20] sm:$0xff] }
  0x1c   :  { %v82_v11 = vld [vmem:[%s1081_s3 + $0x18] sm:$0xff]  ;;  %v81_v14 = vld [vmem:[%s1081_s3 + $0x10] sm:$0xff]  ;;  %v80_v19 = vld [vmem:[%s1081_s3 + $0x8] sm:$0xff] }
  0x1d   :  { %v79_v24 = vld [vmem:[%s1081_s3] sm:$0xff] }
  0x1e   :  { %118 = vperm.xlu0 %739, %v96_v15   ;;  %113 = vperm.xlu1 %740, %v95_v16  }
  0x22   :  { %437 = vperm.xlu0 %739, %v419_v21   ;;  %442 = vperm.xlu1 %740, %v420_v22   ;;  %v56_v22 = vunpack.c.1.s8 %v858_v18 }
  0x26   :  { %447 = vperm.xlu0 %739, %v421_v25   ;;  %452 = vperm.xlu1 %740, %v422_v26   ;;  %v49_v25 = vunpack.c.2.s8 %v853_v17  ;;  %v57_v26 = vunpack.c.2.s8 %v858_v18 }
  0x2a   :  { %457 = vperm.xlu0 %739, %v423_v27   ;;  %462 = vperm.xlu1 %740, %v424_v28   ;;  %v44_v28 = vld [vmem:[%s1078_s0 + $0x8] sm:$0xff] }
  0x2e   :  { %467 = vperm.xlu0 %739, %v425_v29   ;;  %472 = vperm.xlu1 %740, %v426_v30   ;;  %v46_v29 = vld [vmem:[%s1078_s0 + $0x18] sm:$0xff]  ;;  %v64_v30 = vcvt.s32.f32 %v48_v20 }
  0x2f   :  { %v558_v20 = vld [vmem:[%s1082_s4 + $0x58] sm:$0xff] }
  0x32   :  { %477 = vperm.xlu0 %739, %v427_v31   ;;  %482 = vperm.xlu1 %740, %v428_v32   ;;  %v72_v32 = vcvt.s32.f32 %v56_v22 }
  0x36   :  { %487 = vperm.xlu0 %739, %v429_v33   ;;  %492 = vperm.xlu1 %740, %v430_v34   ;;  %v50_v33 = vunpack.c.3.s8 %v853_v17  ;;  %v58_v34 = vunpack.c.3.s8 %v858_v18 }
  0x3a   :  { %497 = vperm.xlu0 %739, %v431_v35   ;;  %502 = vperm.xlu1 %740, %v432_v36   ;;  %v65_v35 = vcvt.s32.f32 %v49_v25  ;;  %v73_v36 = vcvt.s32.f32 %v57_v26 }
  0x3e   :  { %507 = vperm.xlu0 %739, %v433_v37   ;;  %512 = vperm.xlu1 %740, %v434_v38   ;;  %v51_v37 = vunpack.c.0.s8 %v44_v28  ;;  %v59_v38 = vunpack.c.0.s8 %v46_v29 }
  0x40   :  { %v67_v17 = vcvt.s32.f32 %v51_v37  ;;  %v75_v18 = vcvt.s32.f32 %v59_v38  ;;  %v560_v38 = vld [vmem:[%s1082_s4 + $0x68] sm:$0xff] }
  0x7d   :  { %v189_v40 = vpop.permute.xlu0 %188  ;;  %v179_v41 = vpop.permute.xlu1 %178 }
  0x7e   :  { %v206_v42 = vmul.f32 %v189_v40, %v94_v39  ;;  %v204_v49 = vmul.f32 %v179_v41, %v92_v44  ;;  %v66_v39 = vcvt.s32.f32 %v50_v33  ;;  %v74_v40 = vcvt.s32.f32 %v58_v34 }
  0x7f   :  { %v52_v41 = vunpack.c.1.s8 %v44_v28  ;;  %v61_v44 = vunpack.c.2.s8 %v46_v29 }
  0x80   :  { %647 = vmatprep.subr.mxu0 %v206_v42  ;;  %703 = vmatprep.subr.mxu1 %v206_v42 }
  0x81   :  { %v184_v45 = vpop.permute.xlu0 %183  ;;  %v174_v46 = vpop.permute.xlu1 %173  ;;  %648 = vmatpush3.msra.mxu0 %v206_v42  ;;  %719 = vmatpush3.msra.mxu1 %v206_v42  ;;  %v60_v42 = vunpack.c.1.s8 %v46_v29 }
  0x82   :  { %v205_v47 = vmul.f32 %v184_v45, %v93_v43  ;;  %v203_v53 = vmul.f32 %v174_v46, %v91_v48  ;;  %v53_v43 = vunpack.c.2.s8 %v44_v28  ;;  %v68_v45 = vcvt.s32.f32 %v52_v41 }
  0x83   :  { %v76_v46 = vcvt.s32.f32 %v60_v42  ;;  %v62_v48 = vunpack.c.3.s8 %v46_v29  ;;  %v557_v29 = vld [vmem:[%s1082_s4 + $0x50] sm:$0xff] }
  0x84   :  { %649 = vmatprep.subr.mxu0 %v205_v47  ;;  %704 = vmatprep.subr.mxu1 %v205_v47 }
  0x85   :  { %v169_v50 = vpop.permute.xlu0 %168  ;;  %v164_v52 = vpop.permute.xlu1 %163  ;;  %650 = vmatpush3.msra.mxu0 %v205_v47  ;;  %720 = vmatpush3.msra.mxu1 %v205_v47  ;;  %v54_v47 = vunpack.c.3.s8 %v44_v28 }
  0x86   :  { %651 = vmatprep.subr.mxu0 %v204_v49  ;;  %705 = vmatprep.subr.mxu1 %v204_v49  ;;  %v202_v55 = vmul.f32 %v169_v50, %v90_v51  ;;  %v201_v59 = vmul.f32 %v164_v52, %v89_v54  ;;  %v77_v50 = vcvt.s32.f32 %v61_v44  ;;  %v78_v52 = vcvt.s32.f32 %v62_v48  ;;  %v559_v44 = vld [vmem:[%s1082_s4 + $0x60] sm:$0xff] }
  0x87   :  { %652 = vmatpush3.msra.mxu0 %v204_v49  ;;  %721 = vmatpush3.msra.mxu1 %v204_v49  ;;  %v69_v49 = vcvt.s32.f32 %v53_v43  ;;  %v70_v51 = vcvt.s32.f32 %v54_v47 }
  0x88   :  { %653 = vmatprep.subr.mxu0 %v203_v53  ;;  %706 = vmatprep.subr.mxu1 %v203_v53 }
  0x89   :  { %v159_v56 = vpop.permute.xlu0 %158  ;;  %v154_v58 = vpop.permute.xlu1 %153  ;;  %654 = vmatpush3.msra.mxu0 %v203_v53  ;;  %722 = vmatpush3.msra.mxu1 %v203_v53 }
  0x8a   :  { %655 = vmatprep.subr.mxu0 %v202_v55  ;;  %707 = vmatprep.subr.mxu1 %v202_v55  ;;  %v200_v61 = vmul.f32 %v159_v56, %v88_v57  ;;  %v199_v1 = vmul.f32 %v154_v58, %v87_v60 }
  0x8b   :  { %656 = vmatpush3.msra.mxu0 %v202_v55  ;;  %723 = vmatpush3.msra.mxu1 %v202_v55 }
  0x8c   :  { %657 = vmatprep.subr.mxu0 %v201_v59  ;;  %708 = vmatprep.subr.mxu1 %v201_v59 }
  0x8d   :  { %v149_v62 = vpop.permute.xlu0 %148  ;;  %v144_v0 = vpop.permute.xlu1 %143  ;;  %658 = vmatpush3.msra.mxu0 %v201_v59  ;;  %724 = vmatpush3.msra.mxu1 %v201_v59 }
  0x8e   :  { %659 = vmatprep.subr.mxu0 %v200_v61  ;;  %709 = vmatprep.subr.mxu1 %v200_v61  ;;  %v198_v3 = vmul.f32 %v149_v62, %v86_v63  ;;  %v197_v7 = vmul.f32 %v144_v0, %v85_v2 }
  0x8f   :  { %660 = vmatpush3.msra.mxu0 %v200_v61  ;;  %725 = vmatpush3.msra.mxu1 %v200_v61 }
  0x90   :  { %661 = vmatprep.subr.mxu0 %v199_v1  ;;  %710 = vmatprep.subr.mxu1 %v199_v1 }
  0x91   :  { %v139_v4 = vpop.permute.xlu0 %138  ;;  %v134_v6 = vpop.permute.xlu1 %133  ;;  %662 = vmatpush3.msra.mxu0 %v199_v1  ;;  %726 = vmatpush3.msra.mxu1 %v199_v1  ;;  %v548_v1 = vld [vmem:[%s1082_s4 + $0x8] sm:$0xff] }
  0x92   :  { %663 = vmatprep.subr.mxu0 %v198_v3  ;;  %711 = vmatprep.subr.mxu1 %v198_v3  ;;  %v196_v9 = vmul.f32 %v139_v4, %v84_v5  ;;  %v195_v13 = vmul.f32 %v134_v6, %v83_v8  ;;  %v547_v8 = vld [vmem:[%s1082_s4] sm:$0xff] }
  0x93   :  { %664 = vmatpush3.msra.mxu0 %v198_v3  ;;  %727 = vmatpush3.msra.mxu1 %v198_v3  ;;  %v556_v3 = vld [vmem:[%s1082_s4 + $0x48] sm:$0xff] }
  0x94   :  { %665 = vmatprep.subr.mxu0 %v197_v7  ;;  %712 = vmatprep.subr.mxu1 %v197_v7 }
  0x95   :  { %v129_v10 = vpop.permute.xlu0 %128  ;;  %v124_v12 = vpop.permute.xlu1 %123  ;;  %666 = vmatpush3.msra.mxu0 %v197_v7  ;;  %728 = vmatpush3.msra.mxu1 %v197_v7 }
  0x96   :  { %667 = vmatprep.subr.mxu0 %v196_v9  ;;  %713 = vmatprep.subr.mxu1 %v196_v9  ;;  %v194_v15 = vmul.f32 %v129_v10, %v82_v11  ;;  %v193_v21 = vmul.f32 %v124_v12, %v81_v14  ;;  %v555_v10 = vld [vmem:[%s1082_s4 + $0x40] sm:$0xff] }
  0x97   :  { %668 = vmatpush3.msra.mxu0 %v196_v9  ;;  %729 = vmatpush3.msra.mxu1 %v196_v9 }
  0x98   :  { %669 = vmatprep.subr.mxu0 %v195_v13  ;;  %714 = vmatprep.subr.mxu1 %v195_v13 }
  0x99   :  { %v119_v16 = vpop.permute.xlu0 %118  ;;  %670 = vmatpush3.msra.mxu0 %v195_v13  ;;  %730 = vmatpush3.msra.mxu1 %v195_v13  ;;  %v114_v23 = vpop.permute.xlu1 %113 }
  0x9a   :  { %671 = vmatprep.subr.mxu0 %v194_v15  ;;  %715 = vmatprep.subr.mxu1 %v194_v15  ;;  %v192_v27 = vmul.f32 %v119_v16, %v80_v19  ;;  %v191_v31 = vmul.f32 %v114_v23, %v79_v24  ;;  %v550_v16 = vld [vmem:[%s1082_s4 + $0x18] sm:$0xff] }
  0x9b   :  { %672 = vmatpush3.msra.mxu0 %v194_v15  ;;  %731 = vmatpush3.msra.mxu1 %v194_v15 }
  0x9c   :  { %673 = vmatprep.subr.mxu0 %v193_v21  ;;  %716 = vmatprep.subr.mxu1 %v193_v21 }
  0x9d   :  { %674 = vmatpush3.msra.mxu0 %v193_v21  ;;  %732 = vmatpush3.msra.mxu1 %v193_v21  ;;  %v443_v53 = vpop.permute.xlu1 %442  ;;  %v438_v54 = vpop.permute.xlu0 %437 }
  0x9e   :  { %675 = vmatprep.subr.mxu0 %v192_v27  ;;  %717 = vmatprep.subr.mxu1 %v192_v27 }
  0x9f   :  { %676 = vmatpush3.msra.mxu0 %v192_v27  ;;  %733 = vmatpush3.msra.mxu1 %v192_v27  ;;  %v549_v27 = vld [vmem:[%s1082_s4 + $0x10] sm:$0xff] }
  0xa0   :  { %677 = vmatprep.subr.mxu0 %v191_v31  ;;  %718 = vmatprep.subr.mxu1 %v191_v31 }
  0xa1   :  { %678 = vmatpush3.msra.mxu0 %v191_v31  ;;  %734 = vmatpush3.msra.mxu1 %v191_v31  ;;  %v453_v55 = vpop.permute.xlu1 %452  ;;  %v448_v56 = vpop.permute.xlu0 %447 }
  0xa2   :  { %680 = vmatmul.mubr.f32.vlgmr.msra.gmra.mxu0 %v64_v30  ;;  %692 = vmatmul.mubr.f32.vlgmr.msra.gmra.mxu1 %v72_v32 }
  0xa3   :  { %682 = vmatprep.mubr.f32.mxu0 %v65_v35  ;;  %694 = vmatprep.mubr.f32.mxu1 %v73_v36  ;;  %v552_v36 = vld [vmem:[%s1082_s4 + $0x28] sm:$0xff] }
  0xa5   :  { %v463_v57 = vpop.permute.xlu1 %462  ;;  %v970_v58 = vpop.permute.xlu0 %457 }
  0xa6   :  { %683 = vmatmul.mubr.f32.gmra.mxu0 %v66_v39  ;;  %695 = vmatmul.mubr.f32.gmra.mxu1 %v74_v40 }
  0xa7   :  { %685 = vmatprep.mubr.f32.mxu0 %v67_v17  ;;  %697 = vmatprep.mubr.f32.mxu1 %v75_v18  ;;  %v551_v18 = vld [vmem:[%s1082_s4 + $0x20] sm:$0xff] }
  0xa9   :  { %v972_v59 = vpop.permute.xlu1 %472  ;;  %v974_v60 = vpop.permute.xlu0 %467 }
  0xaa   :  { %686 = vmatmul.mubr.f32.gmra.mxu0 %v68_v45  ;;  %698 = vmatmul.mubr.f32.gmra.mxu1 %v76_v46 }
  0xab   :  { %688 = vmatprep.mubr.f32.mxu0 %v69_v49  ;;  %700 = vmatprep.mubr.f32.mxu1 %v77_v50 }
  0xad   :  { %v483_v61 = vpop.permute.xlu1 %482  ;;  %v478_v62 = vpop.permute.xlu0 %477 }
  0xae   :  { %689 = vmatmul.mubr.f32.gmra.mxu0 %v70_v51  ;;  %701 = vmatmul.mubr.f32.gmra.mxu1 %v78_v52  ;;  %v554_v51 = vld [vmem:[%s1082_s4 + $0x38] sm:$0xff] }
  0xb1   :  { %v493_v63 = vpop.permute.xlu1 %492  ;;  %v488_v4 = vpop.permute.xlu0 %487 }
  0xb5   :  { %v503_v21 = vpop.permute.xlu1 %502  ;;  %v498_v30 = vpop.permute.xlu0 %497 }
  0xb9   :  { %v513_v45 = vpop.permute.xlu1 %512 }
 0x162   :  { %v681_v0 = vpop.f32.mrf.mxu0  ;;  %v693_v2 = vpop.f32.mrf.mxu1 }
 0x163   :  { %v516_v5 = vmul.f32 %v681_v0, %v443_v53  ;;  %v524_v6 = vmul.f32 %v693_v2, %v483_v61  ;;  %v562_v53 = vld [vmem:[%s1082_s4 + $0x78] sm:$0xff]  ;;  %v561_v0 = vld [vmem:[%s1082_s4 + $0x70] sm:$0xff] }
 0x164   :  { %v289_v7 = vpop.f32.mrf.mxu0  ;;  %v329_v9 = vpop.f32.mrf.mxu1 }
 0x165   :  { %532 = vst [vmem:[#allocation3 + $0x8] sm:$0xff] %v516_v5  ;;  %v564_v11 = vadd.f32 %v548_v1, %v516_v5  ;;  %540 = vst [vmem:[#allocation3 + $0x48] sm:$0xff] %v524_v6  ;;  %v572_v12 = vadd.f32 %v556_v3, %v524_v6  ;;  %v515_v13 = vmul.f32 %v438_v54, %v289_v7  ;;  %v508_v54 = vpop.permute.xlu0 %507 }
 0x166   :  { %v523_v14 = vmul.f32 %v478_v62, %v329_v9  ;;  %v684_v15 = vpop.f32.mrf.mxu0  ;;  %v696_v19 = vpop.f32.mrf.mxu1  ;;  %v553_v62 = vld [vmem:[%s1082_s4 + $0x30] sm:$0xff] }
 0x167   :  { %580 = vst [vmem:[%s1084_s6 + $0x8] sm:$0xff] %v564_v11  ;;  %588 = vst [vmem:[%s1084_s6 + $0x48] sm:$0xff] %v572_v12  ;;  %v563_v22 = vadd.f32 %v547_v8, %v515_v13  ;;  %v518_v24 = vmul.f32 %v684_v15, %v453_v55  ;;  %v526_v25 = vmul.f32 %v696_v19, %v493_v63 }
 0x168   :  { %531 = vst [vmem:[#allocation3] sm:$0xff] %v515_v13  ;;  %539 = vst [vmem:[#allocation3 + $0x40] sm:$0xff] %v523_v14  ;;  %v571_v23 = vadd.f32 %v555_v10, %v523_v14  ;;  %v299_v26 = vpop.f32.mrf.mxu0  ;;  %v339_v28 = vpop.f32.mrf.mxu1 }
 0x169   :  { %579 = vst [vmem:[%s1084_s6] sm:$0xff] %v563_v22  ;;  %534 = vst [vmem:[#allocation3 + $0x18] sm:$0xff] %v518_v24  ;;  %v566_v31 = vadd.f32 %v550_v16, %v518_v24  ;;  %v574_v32 = vadd.f32 %v558_v20, %v526_v25  ;;  %v517_v33 = vmul.f32 %v448_v56, %v299_v26 }
 0x16a   :  { %587 = vst [vmem:[%s1084_s6 + $0x40] sm:$0xff] %v571_v23  ;;  %542 = vst [vmem:[#allocation3 + $0x58] sm:$0xff] %v526_v25  ;;  %v525_v34 = vmul.f32 %v488_v4, %v339_v28  ;;  %v687_v35 = vpop.f32.mrf.mxu0  ;;  %v699_v37 = vpop.f32.mrf.mxu1 }
 0x16b   :  { %582 = vst [vmem:[%s1084_s6 + $0x18] sm:$0xff] %v566_v31  ;;  %590 = vst [vmem:[%s1084_s6 + $0x58] sm:$0xff] %v574_v32  ;;  %v565_v39 = vadd.f32 %v549_v27, %v517_v33  ;;  %v520_v41 = vmul.f32 %v687_v35, %v463_v57  ;;  %v528_v42 = vmul.f32 %v699_v37, %v503_v21 }
 0x16c   :  { %533 = vst [vmem:[#allocation3 + $0x10] sm:$0xff] %v517_v33  ;;  %541 = vst [vmem:[#allocation3 + $0x50] sm:$0xff] %v525_v34  ;;  %v573_v40 = vadd.f32 %v557_v29, %v525_v34  ;;  %v309_v17 = vpop.f32.mrf.mxu0  ;;  %v349_v43 = vpop.f32.mrf.mxu1 }
 0x16d   :  { %581 = vst [vmem:[%s1084_s6 + $0x10] sm:$0xff] %v565_v39  ;;  %536 = vst [vmem:[#allocation3 + $0x28] sm:$0xff] %v520_v41  ;;  %v568_v46 = vadd.f32 %v552_v36, %v520_v41  ;;  %v576_v47 = vadd.f32 %v560_v38, %v528_v42  ;;  %v519_v48 = vmul.f32 %v970_v58, %v309_v17 }
 0x16e   :  { %589 = vst [vmem:[%s1084_s6 + $0x50] sm:$0xff] %v573_v40  ;;  %544 = vst [vmem:[#allocation3 + $0x68] sm:$0xff] %v528_v42  ;;  %v527_v49 = vmul.f32 %v498_v30, %v349_v43  ;;  %v690_v50 = vpop.f32.mrf.mxu0  ;;  %v702_v52 = vpop.f32.mrf.mxu1 }
 0x16f   :  { %584 = vst [vmem:[%s1084_s6 + $0x28] sm:$0xff] %v568_v46  ;;  %592 = vst [vmem:[%s1084_s6 + $0x68] sm:$0xff] %v576_v47  ;;  %v567_v55 = vadd.f32 %v551_v18, %v519_v48  ;;  %v522_v57 = vmul.f32 %v690_v50, %v972_v59  ;;  %v530_v58 = vmul.f32 %v702_v52, %v513_v45 }
 0x170   :  { %535 = vst [vmem:[#allocation3 + $0x20] sm:$0xff] %v519_v48  ;;  %543 = vst [vmem:[#allocation3 + $0x60] sm:$0xff] %v527_v49  ;;  %v575_v56 = vadd.f32 %v559_v44, %v527_v49  ;;  %v319_v61 = vpop.f32.mrf.mxu0  ;;  %v359_v63 = vpop.f32.mrf.mxu1 }
 0x171   :  { %583 = vst [vmem:[%s1084_s6 + $0x20] sm:$0xff] %v567_v55  ;;  %538 = vst [vmem:[#allocation3 + $0x38] sm:$0xff] %v522_v57  ;;  %v570_v59 = vadd.f32 %v554_v51, %v522_v57  ;;  %v578_v1 = vadd.f32 %v562_v53, %v530_v58  ;;  %v521_v2 = vmul.f32 %v974_v60, %v319_v61 }
 0x172   :  { %591 = vst [vmem:[%s1084_s6 + $0x60] sm:$0xff] %v575_v56  ;;  %546 = vst [vmem:[#allocation3 + $0x78] sm:$0xff] %v530_v58  ;;  %v529_v3 = vmul.f32 %v508_v54, %v359_v63 }
 0x173   :  { %586 = vst [vmem:[%s1084_s6 + $0x38] sm:$0xff] %v570_v59  ;;  %594 = vst [vmem:[%s1084_s6 + $0x78] sm:$0xff] %v578_v1  ;;  %v569_v4 = vadd.f32 %v553_v62, %v521_v2 }
 0x174   :  { %537 = vst [vmem:[#allocation3 + $0x30] sm:$0xff] %v521_v2  ;;  %545 = vst [vmem:[#allocation3 + $0x70] sm:$0xff] %v529_v3  ;;  %v577_v5 = vadd.f32 %v561_v0, %v529_v3 }
 0x175   :  { %752 = shalt.err (!%p749_p4)
}
 0x176   :  { %s765_s28 = smov 128   ;;  %s766_s29 = smov 8   ;;  %585 = vst [vmem:[%s1084_s6 + $0x30] sm:$0xff] %v569_v4  ;;  %593 = vst [vmem:[%s1084_s6 + $0x70] sm:$0xff] %v577_v5 }
 0x177   :  { %606 = dma.vmem_to_hbm [thread:$0]  %s601_s1, 2048, %s1083_s5, [#allocation4], %s765_s28, %s765_s28, %s766_s29  }
 0x178   :  { %761 = dma.done.wait [#allocation4], 2048  }
 0x179   :  { %762 = vsyncadd [#allocation4], 4294965248 }
 0x17a   :  { %614 = vsyncpa [#allocation4], 1 }

// kernel: grand_forward_eval.14
= control target key start
LH: loop header
LB: loop body
LE: loop exit
PB: predicated region body
PF: predicated region fallthrough
CT: control target
= control target key end

     0   :  { %vm188_vm0 = vcmask 261120   ;;  %s504_s1 = inlined_call_operand.vmem [shape: f32[128,32], index: 1, kind: input, shape index: {}]   ;;  %s505_s0 = inlined_call_operand.vmem [shape: f32[128,128], index: 0, kind: input, shape index: {}]   ;;  %s506_s2 = inlined_call_operand.vmem [shape: f32[128,32], index: 2, kind: output, shape index: {}]  }
   0x1   :  { %v42_v0 = vld [vmem:[%s504_s1 + $0x78] sm:$0xff]  ;;  %v41_v1 = vld [vmem:[%s504_s1 + $0x70] sm:$0xff]  ;;  %v40_v2 = vld [vmem:[%s504_s1 + $0x68] sm:$0xff] }
   0x2   :  { %241 = vmatprep.subr.mxu0 %v42_v0  ;;  %297 = vmatprep.subr.mxu1 %v42_v0  ;;  %v39_v3 = vld [vmem:[%s504_s1 + $0x60] sm:$0xff]  ;;  %v38_v4 = vld [vmem:[%s504_s1 + $0x58] sm:$0xff]  ;;  %v37_v5 = vld [vmem:[%s504_s1 + $0x50] sm:$0xff] }
   0x3   :  { %242 = vmatpush3.msra.mxu0 %v42_v0  ;;  %313 = vmatpush3.msra.mxu1 %v42_v0  ;;  %v36_v6 = vld [vmem:[%s504_s1 + $0x48] sm:$0xff]  ;;  %v35_v7 = vld [vmem:[%s504_s1 + $0x40] sm:$0xff]  ;;  %v34_v8 = vld [vmem:[%s504_s1 + $0x38] sm:$0xff] }
   0x4   :  { %243 = vmatprep.subr.mxu0 %v41_v1  ;;  %298 = vmatprep.subr.mxu1 %v41_v1  ;;  %v33_v9 = vld [vmem:[%s504_s1 + $0x30] sm:$0xff]  ;;  %v32_v10 = vld [vmem:[%s504_s1 + $0x28] sm:$0xff]  ;;  %v31_v11 = vld [vmem:[%s504_s1 + $0x20] sm:$0xff] }
   0x5   :  { %244 = vmatpush3.msra.mxu0 %v41_v1  ;;  %314 = vmatpush3.msra.mxu1 %v41_v1  ;;  %v30_v12 = vld [vmem:[%s504_s1 + $0x18] sm:$0xff]  ;;  %v29_v13 = vld [vmem:[%s504_s1 + $0x10] sm:$0xff]  ;;  %v28_v14 = vld [vmem:[%s504_s1 + $0x8] sm:$0xff] }
   0x6   :  { %245 = vmatprep.subr.mxu0 %v40_v2  ;;  %299 = vmatprep.subr.mxu1 %v40_v2  ;;  %v27_v15 = vld [vmem:[%s504_s1] sm:$0xff]  ;;  %v12_v18 = vld [vmem:[%s505_s0 + $0x8] sm:$0xff]  ;;  %v13_v20 = vld [vmem:[%s505_s0 + $0x10] sm:$0xff] }
   0x7   :  { %246 = vmatpush3.msra.mxu0 %v40_v2  ;;  %315 = vmatpush3.msra.mxu1 %v40_v2  ;;  %v11_v16 = vld [vmem:[%s505_s0] sm:$0xff]  ;;  %v20_v19 = vld [vmem:[%s505_s0 + $0x48] sm:$0xff]  ;;  %v21_v21 = vld [vmem:[%s505_s0 + $0x50] sm:$0xff] }
   0x8   :  { %247 = vmatprep.subr.mxu0 %v39_v3  ;;  %300 = vmatprep.subr.mxu1 %v39_v3  ;;  %v19_v17 = vld [vmem:[%s505_s0 + $0x40] sm:$0xff]  ;;  %v14_v22 = vld [vmem:[%s505_s0 + $0x18] sm:$0xff]  ;;  %v16_v26 = vld [vmem:[%s505_s0 + $0x28] sm:$0xff] }
   0x9   :  { %248 = vmatpush3.msra.mxu0 %v39_v3  ;;  %316 = vmatpush3.msra.mxu1 %v39_v3  ;;  %v22_v23 = vld [vmem:[%s505_s0 + $0x58] sm:$0xff]  ;;  %v15_v24 = vld [vmem:[%s505_s0 + $0x20] sm:$0xff]  ;;  %v24_v27 = vld [vmem:[%s505_s0 + $0x68] sm:$0xff] }
   0xa   :  { %249 = vmatprep.subr.mxu0 %v38_v4  ;;  %301 = vmatprep.subr.mxu1 %v38_v4  ;;  %v23_v25 = vld [vmem:[%s505_s0 + $0x60] sm:$0xff]  ;;  %v17_v28 = vld [vmem:[%s505_s0 + $0x30] sm:$0xff]  ;;  %v18_v30 = vld [vmem:[%s505_s0 + $0x38] sm:$0xff] }
   0xb   :  { %250 = vmatpush3.msra.mxu0 %v38_v4  ;;  %317 = vmatpush3.msra.mxu1 %v38_v4  ;;  %v25_v29 = vld [vmem:[%s505_s0 + $0x70] sm:$0xff]  ;;  %v26_v31 = vld [vmem:[%s505_s0 + $0x78] sm:$0xff] }
   0xc   :  { %251 = vmatprep.subr.mxu0 %v37_v5  ;;  %302 = vmatprep.subr.mxu1 %v37_v5 }
   0xd   :  { %252 = vmatpush3.msra.mxu0 %v37_v5  ;;  %318 = vmatpush3.msra.mxu1 %v37_v5 }
   0xe   :  { %253 = vmatprep.subr.mxu0 %v36_v6  ;;  %303 = vmatprep.subr.mxu1 %v36_v6 }
   0xf   :  { %254 = vmatpush3.msra.mxu0 %v36_v6  ;;  %319 = vmatpush3.msra.mxu1 %v36_v6 }
  0x10   :  { %255 = vmatprep.subr.mxu0 %v35_v7  ;;  %304 = vmatprep.subr.mxu1 %v35_v7 }
  0x11   :  { %256 = vmatpush3.msra.mxu0 %v35_v7  ;;  %320 = vmatpush3.msra.mxu1 %v35_v7 }
  0x12   :  { %257 = vmatprep.subr.mxu0 %v34_v8  ;;  %305 = vmatprep.subr.mxu1 %v34_v8 }
  0x13   :  { %258 = vmatpush3.msra.mxu0 %v34_v8  ;;  %321 = vmatpush3.msra.mxu1 %v34_v8 }
  0x14   :  { %259 = vmatprep.subr.mxu0 %v33_v9  ;;  %306 = vmatprep.subr.mxu1 %v33_v9 }
  0x15   :  { %260 = vmatpush3.msra.mxu0 %v33_v9  ;;  %322 = vmatpush3.msra.mxu1 %v33_v9 }
  0x16   :  { %261 = vmatprep.subr.mxu0 %v32_v10  ;;  %307 = vmatprep.subr.mxu1 %v32_v10 }
  0x17   :  { %262 = vmatpush3.msra.mxu0 %v32_v10  ;;  %323 = vmatpush3.msra.mxu1 %v32_v10 }
  0x18   :  { %263 = vmatprep.subr.mxu0 %v31_v11  ;;  %308 = vmatprep.subr.mxu1 %v31_v11 }
  0x19   :  { %264 = vmatpush3.msra.mxu0 %v31_v11  ;;  %324 = vmatpush3.msra.mxu1 %v31_v11 }
  0x1a   :  { %265 = vmatprep.subr.mxu0 %v30_v12  ;;  %309 = vmatprep.subr.mxu1 %v30_v12 }
  0x1b   :  { %266 = vmatpush3.msra.mxu0 %v30_v12  ;;  %325 = vmatpush3.msra.mxu1 %v30_v12 }
  0x1c   :  { %267 = vmatprep.subr.mxu0 %v29_v13  ;;  %310 = vmatprep.subr.mxu1 %v29_v13 }
  0x1d   :  { %268 = vmatpush3.msra.mxu0 %v29_v13  ;;  %326 = vmatpush3.msra.mxu1 %v29_v13 }
  0x1e   :  { %269 = vmatprep.subr.mxu0 %v28_v14  ;;  %311 = vmatprep.subr.mxu1 %v28_v14 }
  0x1f   :  { %270 = vmatpush3.msra.mxu0 %v28_v14  ;;  %327 = vmatpush3.msra.mxu1 %v28_v14 }
  0x20   :  { %271 = vmatprep.subr.mxu0 %v27_v15  ;;  %312 = vmatprep.subr.mxu1 %v27_v15 }
  0x21   :  { %272 = vmatpush3.msra.mxu0 %v27_v15  ;;  %328 = vmatpush3.msra.mxu1 %v27_v15 }
  0x22   :  { %273 = vmatprep.mubr.f32.mxu0 %v11_v16  ;;  %285 = vmatprep.mubr.f32.mxu1 %v19_v17 }
  0x23   :  { %274 = vmatmul.mubr.f32.vlgmr.msra.gmra.mxu0 %v12_v18  ;;  %286 = vmatmul.mubr.f32.vlgmr.msra.gmra.mxu1 %v20_v19 }
  0x24   :  { %276 = vmatprep.mubr.f32.mxu0 %v13_v20  ;;  %288 = vmatprep.mubr.f32.mxu1 %v21_v21 }
  0x27   :  { %277 = vmatmul.mubr.f32.gmra.mxu0 %v14_v22  ;;  %289 = vmatmul.mubr.f32.gmra.mxu1 %v22_v23 }
  0x28   :  { %279 = vmatprep.mubr.f32.mxu0 %v15_v24  ;;  %291 = vmatprep.mubr.f32.mxu1 %v23_v25 }
  0x2b   :  { %280 = vmatmul.mubr.f32.gmra.mxu0 %v16_v26  ;;  %292 = vmatmul.mubr.f32.gmra.mxu1 %v24_v27 }
  0x2c   :  { %282 = vmatprep.mubr.f32.mxu0 %v17_v28  ;;  %294 = vmatprep.mubr.f32.mxu1 %v25_v29 }
  0x2f   :  { %283 = vmatmul.mubr.f32.gmra.mxu0 %v18_v30  ;;  %295 = vmatmul.mubr.f32.gmra.mxu1 %v26_v31 }
  0xe3   :  { %v275_v32 = vpop.f32.mrf.mxu0  ;;  %v287_v33 = vpop.f32.mrf.mxu1 }
  0xe4   :  { %190 = vst.msk [vmem:[%s506_s2 + $0x8] sm:$0xff] %vm188_vm0, %v275_v32  ;;  %198 = vst.msk [vmem:[%s506_s2 + $0x48] sm:$0xff] %vm188_vm0, %v287_v33 }
  0xe5   :  { %v109_v34 = vpop.f32.mrf.mxu0  ;;  %v149_v35 = vpop.f32.mrf.mxu1 }
  0xe6   :  { %189 = vst.msk [vmem:[%s506_s2] sm:$0xff] %vm188_vm0, %v109_v34  ;;  %197 = vst.msk [vmem:[%s506_s2 + $0x40] sm:$0xff] %vm188_vm0, %v149_v35 }
  0xe7   :  { %v278_v36 = vpop.f32.mrf.mxu0  ;;  %v290_v37 = vpop.f32.mrf.mxu1 }
  0xe8   :  { %192 = vst.msk [vmem:[%s506_s2 + $0x18] sm:$0xff] %vm188_vm0, %v278_v36  ;;  %200 = vst.msk [vmem:[%s506_s2 + $0x58] sm:$0xff] %vm188_vm0, %v290_v37 }
  0xe9   :  { %v119_v38 = vpop.f32.mrf.mxu0  ;;  %v159_v39 = vpop.f32.mrf.mxu1 }
  0xea   :  { %191 = vst.msk [vmem:[%s506_s2 + $0x10] sm:$0xff] %vm188_vm0, %v119_v38  ;;  %199 = vst.msk [vmem:[%s506_s2 + $0x50] sm:$0xff] %vm188_vm0, %v159_v39 }
  0xeb   :  { %v281_v40 = vpop.f32.mrf.mxu0  ;;  %v293_v41 = vpop.f32.mrf.mxu1 }
  0xec   :  { %194 = vst.msk [vmem:[%s506_s2 + $0x28] sm:$0xff] %vm188_vm0, %v281_v40  ;;  %202 = vst.msk [vmem:[%s506_s2 + $0x68] sm:$0xff] %vm188_vm0, %v293_v41 }
  0xed   :  { %v129_v42 = vpop.f32.mrf.mxu0  ;;  %v169_v43 = vpop.f32.mrf.mxu1 }
  0xee   :  { %193 = vst.msk [vmem:[%s506_s2 + $0x20] sm:$0xff] %vm188_vm0, %v129_v42  ;;  %201 = vst.msk [vmem:[%s506_s2 + $0x60] sm:$0xff] %vm188_vm0, %v169_v43 }
  0xef   :  { %v284_v44 = vpop.f32.mrf.mxu0  ;;  %v296_v45 = vpop.f32.mrf.mxu1 }
  0xf0   :  { %196 = vst.msk [vmem:[%s506_s2 + $0x38] sm:$0xff] %vm188_vm0, %v284_v44  ;;  %204 = vst.msk [vmem:[%s506_s2 + $0x78] sm:$0xff] %vm188_vm0, %v296_v45 }
  0xf1   :  { %v139_v46 = vpop.f32.mrf.mxu0  ;;  %v179_v47 = vpop.f32.mrf.mxu1 }
  0xf2   :  { %195 = vst.msk [vmem:[%s506_s2 + $0x30] sm:$0xff] %vm188_vm0, %v139_v46  ;;  %203 = vst.msk [vmem:[%s506_s2 + $0x70] sm:$0xff] %vm188_vm0, %v179_v47 }

// kernel: grand_forward_eval.13
= control target key start
LH: loop header
LB: loop body
LE: loop exit
PB: predicated region body
PF: predicated region fallthrough
CT: control target
= control target key end

     0   :  { %vm116_vm0 = vcmask 261120   ;;  %s302_s1 = inlined_call_operand.vmem [shape: f32[128,32], index: 1, kind: input, shape index: {}]   ;;  %s303_s0 = inlined_call_operand.vmem [shape: f32[32,128], index: 0, kind: input, shape index: {}]   ;;  %s304_s2 = inlined_call_operand.vmem [shape: f32[32,32], index: 2, kind: output, shape index: {}]  }
   0x1   :  { %v30_v0 = vld [vmem:[%s302_s1 + $0x78] sm:$0xff]  ;;  %v29_v1 = vld [vmem:[%s302_s1 + $0x70] sm:$0xff]  ;;  %v28_v2 = vld [vmem:[%s302_s1 + $0x68] sm:$0xff] }
   0x2   :  { %145 = vmatprep.subr.mxu0 %v30_v0  ;;  %183 = vmatprep.subr.mxu1 %v30_v0  ;;  %v27_v3 = vld [vmem:[%s302_s1 + $0x60] sm:$0xff]  ;;  %v26_v4 = vld [vmem:[%s302_s1 + $0x58] sm:$0xff]  ;;  %v25_v5 = vld [vmem:[%s302_s1 + $0x50] sm:$0xff] }
   0x3   :  { %146 = vmatpush3.msra.mxu0 %v30_v0  ;;  %199 = vmatpush3.msra.mxu1 %v30_v0  ;;  %v24_v6 = vld [vmem:[%s302_s1 + $0x48] sm:$0xff]  ;;  %v23_v7 = vld [vmem:[%s302_s1 + $0x40] sm:$0xff]  ;;  %v22_v8 = vld [vmem:[%s302_s1 + $0x38] sm:$0xff] }
   0x4   :  { %147 = vmatprep.subr.mxu0 %v29_v1  ;;  %184 = vmatprep.subr.mxu1 %v29_v1  ;;  %v21_v9 = vld [vmem:[%s302_s1 + $0x30] sm:$0xff]  ;;  %v20_v10 = vld [vmem:[%s302_s1 + $0x28] sm:$0xff]  ;;  %v19_v11 = vld [vmem:[%s302_s1 + $0x20] sm:$0xff] }
   0x5   :  { %148 = vmatpush3.msra.mxu0 %v29_v1  ;;  %200 = vmatpush3.msra.mxu1 %v29_v1  ;;  %v18_v12 = vld [vmem:[%s302_s1 + $0x18] sm:$0xff]  ;;  %v17_v13 = vld [vmem:[%s302_s1 + $0x10] sm:$0xff]  ;;  %v16_v14 = vld [vmem:[%s302_s1 + $0x8] sm:$0xff] }
   0x6   :  { %149 = vmatprep.subr.mxu0 %v28_v2  ;;  %185 = vmatprep.subr.mxu1 %v28_v2  ;;  %v15_v15 = vld [vmem:[%s302_s1] sm:$0xff]  ;;  %v13_v17 = vld [vmem:[%s303_s0 + $0x10] sm:$0xff]  ;;  %v12_v18 = vld [vmem:[%s303_s0 + $0x8] sm:$0xff] }
   0x7   :  { %150 = vmatpush3.msra.mxu0 %v28_v2  ;;  %201 = vmatpush3.msra.mxu1 %v28_v2  ;;  %v11_v16 = vld [vmem:[%s303_s0] sm:$0xff]  ;;  %v14_v19 = vld [vmem:[%s303_s0 + $0x18] sm:$0xff] }
   0x8   :  { %151 = vmatprep.subr.mxu0 %v27_v3  ;;  %186 = vmatprep.subr.mxu1 %v27_v3 }
   0x9   :  { %152 = vmatpush3.msra.mxu0 %v27_v3  ;;  %202 = vmatpush3.msra.mxu1 %v27_v3 }
   0xa   :  { %153 = vmatprep.subr.mxu0 %v26_v4  ;;  %187 = vmatprep.subr.mxu1 %v26_v4 }
   0xb   :  { %154 = vmatpush3.msra.mxu0 %v26_v4  ;;  %203 = vmatpush3.msra.mxu1 %v26_v4 }
   0xc   :  { %155 = vmatprep.subr.mxu0 %v25_v5  ;;  %188 = vmatprep.subr.mxu1 %v25_v5 }
   0xd   :  { %156 = vmatpush3.msra.mxu0 %v25_v5  ;;  %204 = vmatpush3.msra.mxu1 %v25_v5 }
   0xe   :  { %157 = vmatprep.subr.mxu0 %v24_v6  ;;  %189 = vmatprep.subr.mxu1 %v24_v6 }
   0xf   :  { %158 = vmatpush3.msra.mxu0 %v24_v6  ;;  %205 = vmatpush3.msra.mxu1 %v24_v6 }
  0x10   :  { %159 = vmatprep.subr.mxu0 %v23_v7  ;;  %190 = vmatprep.subr.mxu1 %v23_v7 }
  0x11   :  { %160 = vmatpush3.msra.mxu0 %v23_v7  ;;  %206 = vmatpush3.msra.mxu1 %v23_v7 }
  0x12   :  { %161 = vmatprep.subr.mxu0 %v22_v8  ;;  %191 = vmatprep.subr.mxu1 %v22_v8 }
  0x13   :  { %162 = vmatpush3.msra.mxu0 %v22_v8  ;;  %207 = vmatpush3.msra.mxu1 %v22_v8 }
  0x14   :  { %163 = vmatprep.subr.mxu0 %v21_v9  ;;  %192 = vmatprep.subr.mxu1 %v21_v9 }
  0x15   :  { %164 = vmatpush3.msra.mxu0 %v21_v9  ;;  %208 = vmatpush3.msra.mxu1 %v21_v9 }
  0x16   :  { %165 = vmatprep.subr.mxu0 %v20_v10  ;;  %193 = vmatprep.subr.mxu1 %v20_v10 }
  0x17   :  { %166 = vmatpush3.msra.mxu0 %v20_v10  ;;  %209 = vmatpush3.msra.mxu1 %v20_v10 }
  0x18   :  { %167 = vmatprep.subr.mxu0 %v19_v11  ;;  %194 = vmatprep.subr.mxu1 %v19_v11 }
  0x19   :  { %168 = vmatpush3.msra.mxu0 %v19_v11  ;;  %210 = vmatpush3.msra.mxu1 %v19_v11 }
  0x1a   :  { %169 = vmatprep.subr.mxu0 %v18_v12  ;;  %195 = vmatprep.subr.mxu1 %v18_v12 }
  0x1b   :  { %170 = vmatpush3.msra.mxu0 %v18_v12  ;;  %211 = vmatpush3.msra.mxu1 %v18_v12 }
  0x1c   :  { %171 = vmatprep.subr.mxu0 %v17_v13  ;;  %196 = vmatprep.subr.mxu1 %v17_v13 }
  0x1d   :  { %172 = vmatpush3.msra.mxu0 %v17_v13  ;;  %212 = vmatpush3.msra.mxu1 %v17_v13 }
  0x1e   :  { %173 = vmatprep.subr.mxu0 %v16_v14  ;;  %197 = vmatprep.subr.mxu1 %v16_v14 }
  0x1f   :  { %174 = vmatpush3.msra.mxu0 %v16_v14  ;;  %213 = vmatpush3.msra.mxu1 %v16_v14 }
  0x20   :  { %175 = vmatprep.subr.mxu0 %v15_v15  ;;  %198 = vmatprep.subr.mxu1 %v15_v15 }
  0x21   :  { %176 = vmatpush3.msra.mxu0 %v15_v15  ;;  %214 = vmatpush3.msra.mxu1 %v15_v15 }
  0x22   :  { %177 = vmatprep.mubr.f32.mxu0 %v11_v16  ;;  %180 = vmatprep.mubr.f32.mxu1 %v13_v17 }
  0x23   :  { %178 = vmatmul.mubr.f32.vlgmr.msra.gmra.mxu0 %v12_v18  ;;  %181 = vmatmul.mubr.f32.vlgmr.msra.gmra.mxu1 %v14_v19 }
  0xe3   :  { %v179_v20 = vpop.f32.mrf.mxu0  ;;  %v182_v21 = vpop.f32.mrf.mxu1 }
  0xe4   :  { %118 = vst.msk [vmem:[%s304_s2 + $0x8] sm:$0xff] %vm116_vm0, %v179_v20  ;;  %120 = vst.msk [vmem:[%s304_s2 + $0x18] sm:$0xff] %vm116_vm0, %v182_v21 }
  0xe5   :  { %v97_v22 = vpop.f32.mrf.mxu0  ;;  %v107_v23 = vpop.f32.mrf.mxu1 }
  0xe6   :  { %117 = vst.msk [vmem:[%s304_s2] sm:$0xff] %vm116_vm0, %v97_v22  ;;  %119 = vst.msk [vmem:[%s304_s2 + $0x10] sm:$0xff] %vm116_vm0, %v107_v23 }

// kernel: grand_forward_eval.15
= control target key start
LH: loop header
LB: loop body
LE: loop exit
PB: predicated region body
PF: predicated region fallthrough
CT: control target
= control target key end

     0   :  { %v4616_v0 = vmov 0   ;;  %vm202_vm0 = vcmask 261120   ;;  %v4617_v10 = vmov 1   ;;  %v4618_v12 = vmov 2   ;;  %s5540_s2 = inlined_call_operand.vmem [shape: f32[1,32,32], index: 2, kind: input, shape index: {}]   ;;  %s5541_s5 = inlined_call_operand.vmem [shape: f32[16,1], index: 5, kind: input, shape index: {}]   ;;  %s5542_s6 = inlined_call_operand.vmem [shape: f32[16,1], index: 6, kind: input, shape index: {}]   ;;  %s5543_s4 = inlined_call_operand.vmem [shape: f32[16,32], index: 4, kind: input, shape index: {}]   ;;  %s5544_s1 = inlined_call_operand.vmem [shape: f32[128,128], index: 1, kind: input, shape index: {}]   ;;  %s5545_s0 = inlined_call_operand.vmem [shape: f32[32,128], index: 0, kind: input, shape index: {}]   ;;  %s5546_s7 = inlined_call_operand.vmem [shape: f32[1,128], index: 7, kind: input, shape index: {}]   ;;  %s5547_s3 = inlined_call_operand.vmem [shape: f32[32,128], index: 3, kind: input, shape index: {}]   ;;  %s5548_s8 = inlined_call_operand.<no memory space> [shape: f32[1,1], index: 8, kind: input, shape index: {}]   ;;  %s5549_s9 = inlined_call_operand.vmem [shape: f32[32,128], index: 9, kind: output, shape index: {}]  }
   0x1   :  { %4505 = vset.pattern.permute.xlu1 %v4616_v0  ;;  %4504 = vset.pattern.permute.xlu0 %v4616_v0  ;;  %v4703_v1 = vld [vmem:[%s5540_s2 + $0x10] sm:$0xff]  ;;  %v4708_v2 = vld [vmem:[%s5540_s2] sm:$0xff]  ;;  %v4715_v3 = vld [vmem:[%s5540_s2 + $0x18] sm:$0xff]  ;;  %v4619_v15 = vmov 3   ;;  %v4620_v20 = vmov 4   ;;  %v4621_v24 = vmov 5  }
   0x2   :  { %176 = vperm.xlu1 %4505, %v4703_v1   ;;  %166 = vperm.xlu0 %4504, %v4708_v2   ;;  %v4720_v4 = vld [vmem:[%s5540_s2 + $0x8] sm:$0xff]  ;;  %v44_v6 = vld [vmem:[%s5541_s5] sm:$0xff]  ;;  %v78_v11 = vld [vmem:[%s5544_s1 + $0x78] sm:$0xff]  ;;  %v4622_v31 = vmov 6   ;;  %v4623_v40 = vmov 7   ;;  %v4624_v42 = vmov 8  }
   0x3   :  { %v45_v5 = vld [vmem:[%s5541_s5 + $0x8] sm:$0xff]  ;;  %v46_v8 = vld [vmem:[%s5542_s6] sm:$0xff]  ;;  %4082 = vmatprep.subr.mxu0 %v78_v11  ;;  %v77_v13 = vld [vmem:[%s5544_s1 + $0x70] sm:$0xff]  ;;  %v4625_v43 = vmov 9   ;;  %v4626_v44 = vmov 11   ;;  %v4627_v45 = vmov 10  }
   0x4   :  { %v47_v7 = vld [vmem:[%s5542_s6 + $0x8] sm:$0xff]  ;;  %v4739_v9 = vld [vmem:[%s5543_s4] sm:$0xff]  ;;  %4083 = vmatpush3.msra.mxu0 %v78_v11  ;;  %v74_v17 = vld [vmem:[%s5544_s1 + $0x58] sm:$0xff]  ;;  %v4628_v46 = vmov 12   ;;  %v4629_v47 = vmov 13   ;;  %v4630_v48 = vmov 14  }
   0x5   :  { %4128 = vmatprep.mubr.msk.f32.mxu1 %vm202_vm0, %v4739_v9  ;;  %4084 = vmatprep.subr.mxu0 %v77_v13  ;;  %v76_v14 = vld [vmem:[%s5544_s1 + $0x68] sm:$0xff]  ;;  %v75_v16 = vld [vmem:[%s5544_s1 + $0x60] sm:$0xff]  ;;  %v73_v18 = vld [vmem:[%s5544_s1 + $0x50] sm:$0xff]  ;;  %v4631_v49 = vmov 15   ;;  %v4632_v50 = vmov 17   ;;  %v4633_v51 = vmov 16  }
   0x6   :  { %181 = vperm.xlu1 %4505, %v4715_v3   ;;  %171 = vperm.xlu0 %4504, %v4720_v4   ;;  %v72_v19 = vld [vmem:[%s5544_s1 + $0x48] sm:$0xff]  ;;  %v71_v21 = vld [vmem:[%s5544_s1 + $0x40] sm:$0xff]  ;;  %v70_v22 = vld [vmem:[%s5544_s1 + $0x38] sm:$0xff]  ;;  %v4634_v63 = vmov 18   ;;  %vm3715_vm1 = vcmask 1040384   ;;  %vm3717_vm2 = vcmask 1041408  }
   0x7   :  { %4085 = vmatpush3.msra.mxu0 %v77_v13  ;;  %v69_v23 = vld [vmem:[%s5544_s1 + $0x30] sm:$0xff]  ;;  %v68_v25 = vld [vmem:[%s5544_s1 + $0x28] sm:$0xff]  ;;  %v67_v26 = vld [vmem:[%s5544_s1 + $0x20] sm:$0xff]  ;;  %vm3719_vm3 = vcmask 1042432   ;;  %vm3721_vm4 = vcmask 1043456   ;;  %vm3723_vm5 = vcmask 1044480  }
   0x8   :  { %4086 = vmatprep.subr.mxu0 %v76_v14  ;;  %v66_v27 = vld [vmem:[%s5544_s1 + $0x18] sm:$0xff]  ;;  %v65_v28 = vld [vmem:[%s5544_s1 + $0x10] sm:$0xff]  ;;  %v48_v29 = vld [vmem:[%s5545_s0] sm:$0xff]  ;;  %vm3725_vm6 = vcmask 1045504   ;;  %vm3727_vm7 = vcmask 1046528  }
   0x9   :  { %4087 = vmatpush3.msra.mxu0 %v76_v14  ;;  %v3800_v30 = vld [vmem:[%s5546_s7] ss:$0 sm:$0xff]  ;;  %v64_v32 = vld [vmem:[%s5544_s1 + $0x8] sm:$0xff]  ;;  %v50_v37 = vld [vmem:[%s5545_s0 + $0x10] sm:$0xff] }
   0xa   :  { %199 = vperm.xlu1 %4505, %v45_v5   ;;  %194 = vperm.xlu0 %4504, %v44_v6   ;;  %v59_v33 = vmul.f32 %v3800_v30, %v48_v29  ;;  %v49_v34 = vld [vmem:[%s5545_s0 + $0x8] sm:$0xff]  ;;  %v63_v35 = vld [vmem:[%s5544_s1] sm:$0xff]  ;;  %v61_v38 = vmul.f32 %v3800_v30, %v50_v37  ;;  %v51_v39 = vld [vmem:[%s5545_s0 + $0x18] sm:$0xff] }
   0xb   :  { %4088 = vmatprep.subr.mxu0 %v75_v16  ;;  %v60_v36 = vmul.f32 %v3800_v30, %v49_v34  ;;  %v62_v41 = vmul.f32 %v3800_v30, %v51_v39  ;;  %v4866_v54 = vld [vmem:[%s5547_s3 + $0x10] sm:$0xff]  ;;  %v4871_v55 = vld [vmem:[%s5547_s3 + $0x18] sm:$0xff]  ;;  %v4876_v56 = vld [vmem:[%s5547_s3 + $0x8] sm:$0xff]  ;;  %v4637_v30 = vmov 21  }
   0xc   :  { %4089 = vmatpush3.msra.mxu0 %v75_v16  ;;  %4114 = vmatprep.mubr.f32.mxu0 %v59_v33  ;;  %v4883_v57 = vld [vmem:[%s5547_s3] sm:$0xff]  ;;  %v4906_v16 = vld [vmem:[%s5543_s4 + $0x8] sm:$0xff] }
   0xd   :  { %4090 = vmatprep.subr.mxu0 %v74_v17 }
   0xe   :  { %293 = vperm.xlu1 %4505, %v47_v7   ;;  %288 = vperm.xlu0 %4504, %v46_v8  }
   0xf   :  { %4091 = vmatpush3.msra.mxu0 %v74_v17 }
  0x10   :  { %4092 = vmatprep.subr.mxu0 %v73_v18 }
  0x11   :  { %4093 = vmatpush3.msra.mxu0 %v73_v18 }
  0x12   :  { %4507 = vset.pattern.permute.xlu1 %v4617_v10  ;;  %4506 = vset.pattern.permute.xlu0 %v4617_v10 }
  0x13   :  { %310 = vperm.xlu1 %4507, %v4720_v4   ;;  %306 = vperm.xlu0 %4506, %v4708_v2  }
  0x14   :  { %4094 = vmatprep.subr.mxu0 %v72_v19 }
  0x15   :  { %4095 = vmatpush3.msra.mxu0 %v72_v19 }
  0x16   :  { %4096 = vmatprep.subr.mxu0 %v71_v21 }
  0x17   :  { %314 = vperm.xlu1 %4507, %v4703_v1   ;;  %318 = vperm.xlu0 %4506, %v4715_v3  }
  0x18   :  { %4097 = vmatpush3.msra.mxu0 %v71_v21 }
  0x19   :  { %4098 = vmatprep.subr.mxu0 %v70_v22 }
  0x1a   :  { %4099 = vmatpush3.msra.mxu0 %v70_v22 }
  0x1b   :  { %4508 = vset.pattern.permute.xlu1 %v4618_v12  ;;  %4509 = vset.pattern.permute.xlu0 %v4618_v12 }
  0x1c   :  { %416 = vperm.xlu1 %4508, %v4708_v2   ;;  %420 = vperm.xlu0 %4509, %v4720_v4  }
  0x1d   :  { %4100 = vmatprep.subr.mxu0 %v69_v23 }
  0x1e   :  { %4101 = vmatpush3.msra.mxu0 %v69_v23  ;;  %v4636_v23 = vmov 20  }
  0x1f   :  { %4102 = vmatprep.subr.mxu0 %v68_v25 }
  0x20   :  { %424 = vperm.xlu1 %4508, %v4703_v1   ;;  %4510 = vset.pattern.permute.xlu0 %v4619_v15 }
  0x21   :  { %526 = vperm.xlu0 %4510, %v4708_v2   ;;  %4103 = vmatpush3.msra.mxu0 %v68_v25 }
  0x22   :  { %4104 = vmatprep.subr.mxu0 %v67_v26 }
  0x23   :  { %4105 = vmatpush3.msra.mxu0 %v67_v26 }
  0x24   :  { %428 = vperm.xlu1 %4508, %v4715_v3   ;;  %4106 = vmatprep.subr.mxu0 %v66_v27 }
  0x25   :  { %538 = vperm.xlu0 %4510, %v4715_v3   ;;  %4107 = vmatpush3.msra.mxu0 %v66_v27 }
  0x26   :  { %4108 = vmatprep.subr.mxu0 %v65_v28 }
  0x27   :  { %4109 = vmatpush3.msra.mxu0 %v65_v28 }
  0x28   :  { %4511 = vset.pattern.permute.xlu1 %v4619_v15  ;;  %4110 = vmatprep.subr.mxu0 %v64_v32  ;;  %v4635_v15 = vmov 19  }
  0x29   :  { %530 = vperm.xlu1 %4511, %v4720_v4   ;;  %4513 = vset.pattern.permute.xlu0 %v4620_v20 }
  0x2a   :  { %640 = vperm.xlu0 %4513, %v4720_v4   ;;  %4111 = vmatpush3.msra.mxu0 %v64_v32 }
  0x2b   :  { %4112 = vmatprep.subr.mxu0 %v63_v35 }
  0x2c   :  { %4113 = vmatpush3.msra.mxu0 %v63_v35  ;;  %v4638_v35 = vmov 23  }
  0x2d   :  { %534 = vperm.xlu1 %4511, %v4703_v1   ;;  %4115 = vmatmul.mubr.f32.vlgmr.msra.gmra.mxu0 %v60_v36 }
  0x2e   :  { %4514 = vset.pattern.permute.xlu0 %v4621_v24  ;;  %4117 = vmatprep.mubr.f32.mxu0 %v61_v38 }
  0x2f   :  { %746 = vperm.xlu0 %4514, %v4708_v2  }
  0x31   :  { %4512 = vset.pattern.permute.xlu1 %v4620_v20  ;;  %4118 = vmatmul.mubr.f32.gmra.mxu0 %v62_v41 }
  0x32   :  { %636 = vperm.xlu1 %4512, %v4708_v2   ;;  %4172 = vmatprep.mubr.msk.f32.mxu0 %vm202_vm0, %v4739_v9 }
  0x33   :  { %754 = vperm.xlu0 %4514, %v4703_v1  }
  0x36   :  { %644 = vperm.xlu1 %4512, %v4703_v1  }
  0x37   :  { %4518 = vset.pattern.permute.xlu0 %v4622_v31 }
  0x38   :  { %860 = vperm.xlu0 %4518, %v4720_v4  }
  0x3a   :  { %648 = vperm.xlu1 %4512, %v4715_v3  }
  0x3c   :  { %4519 = vset.pattern.permute.xlu0 %v4623_v40 }
  0x3d   :  { %978 = vperm.xlu0 %4519, %v4715_v3  }
  0x3e   :  { %4515 = vset.pattern.permute.xlu1 %v4621_v24 }
  0x3f   :  { %750 = vperm.xlu1 %4515, %v4720_v4  }
  0x41   :  { %966 = vperm.xlu0 %4519, %v4708_v2  }
  0x43   :  { %758 = vperm.xlu1 %4515, %v4715_v3  }
  0x45   :  { %4523 = vset.pattern.permute.xlu0 %v4624_v42 }
  0x46   :  { %1084 = vperm.xlu0 %4523, %v4703_v1  }
  0x47   :  { %4516 = vset.pattern.permute.xlu1 %v4622_v31 }
  0x48   :  { %868 = vperm.xlu1 %4516, %v4715_v3  }
  0x4a   :  { %4525 = vset.pattern.permute.xlu0 %v4625_v43 }
  0x4b   :  { %1190 = vperm.xlu0 %4525, %v4720_v4  }
  0x4c   :  { %864 = vperm.xlu1 %4516, %v4703_v1  }
  0x4f   :  { %4529 = vset.pattern.permute.xlu0 %v4626_v44 }
  0x50   :  { %4517 = vset.pattern.permute.xlu1 %v4623_v40  ;;  %1414 = vperm.xlu0 %4529, %v4703_v1  }
  0x51   :  { %974 = vperm.xlu1 %4517, %v4703_v1  }
  0x54   :  { %4530 = vset.pattern.permute.xlu0 %v4627_v45 }
  0x55   :  { %970 = vperm.xlu1 %4517, %v4720_v4   ;;  %1308 = vperm.xlu0 %4530, %v4715_v3  }
  0x59   :  { %4520 = vset.pattern.permute.xlu1 %v4622_v31  ;;  %1296 = vperm.xlu0 %4530, %v4708_v2  }
  0x5a   :  { %856 = vperm.xlu1 %4520, %v4708_v2  }
  0x5d   :  { %4534 = vset.pattern.permute.xlu0 %v4628_v46 }
  0x5e   :  { %4521 = vset.pattern.permute.xlu1 %v4624_v42  ;;  %1520 = vperm.xlu0 %4534, %v4720_v4  }
  0x5f   :  { %1088 = vperm.xlu1 %4521, %v4715_v3  }
  0x62   :  { %4535 = vset.pattern.permute.xlu0 %v4629_v47 }
  0x63   :  { %4522 = vset.pattern.permute.xlu1 %v4625_v43  ;;  %1638 = vperm.xlu0 %4535, %v4715_v3  }
  0x64   :  { %1198 = vperm.xlu1 %4522, %v4715_v3  }
  0x67   :  { %1626 = vperm.xlu0 %4535, %v4708_v2  }
  0x68   :  { %1194 = vperm.xlu1 %4522, %v4703_v1  }
  0x6b   :  { %4539 = vset.pattern.permute.xlu0 %v4630_v48 }
  0x6c   :  { %4524 = vset.pattern.permute.xlu1 %v4624_v42  ;;  %1744 = vperm.xlu0 %4539, %v4703_v1   ;;  %v4639_v42 = vmov 22  }
  0x6d   :  { %1080 = vperm.xlu1 %4524, %v4720_v4  }
  0x70   :  { %4541 = vset.pattern.permute.xlu0 %v4631_v49 }
  0x71   :  { %1076 = vperm.xlu1 %4524, %v4708_v2   ;;  %1850 = vperm.xlu0 %4541, %v4720_v4  }
  0x75   :  { %4526 = vset.pattern.permute.xlu1 %v4625_v43  ;;  %4545 = vset.pattern.permute.xlu0 %v4632_v50 }
  0x76   :  { %1186 = vperm.xlu1 %4526, %v4708_v2   ;;  %2074 = vperm.xlu0 %4545, %v4703_v1  }
  0x7a   :  { %4527 = vset.pattern.permute.xlu1 %v4626_v44  ;;  %4546 = vset.pattern.permute.xlu0 %v4633_v51 }
  0x7b   :  { %1418 = vperm.xlu1 %4527, %v4715_v3   ;;  %1968 = vperm.xlu0 %4546, %v4715_v3  }
  0x7d   :  { %v177_v52 = vpop.permute.xlu1 %176  ;;  %v167_v53 = vpop.permute.xlu0 %166 }
  0x7e   :  { %v186_v60 = vadd.f32 %v177_v52, %v4866_v54  ;;  %v184_v5 = vadd.f32 %v167_v53, %v4883_v57 }
  0x7f   :  { %4528 = vset.pattern.permute.xlu1 %v4627_v45  ;;  %1956 = vperm.xlu0 %4546, %v4708_v2  }
  0x80   :  { %1304 = vperm.xlu1 %4528, %v4703_v1   ;;  %v190_v10 = vmax.f32 %v186_v60, 0.0  ;;  %v188_v12 = vmax.f32 %v184_v5, 0.0  ;;  %v4640_v5 = vmov 24  }
  0x81   :  { %v182_v58 = vpop.permute.xlu1 %181  ;;  %v172_v59 = vpop.permute.xlu0 %171 }
  0x82   :  { %v187_v61 = vadd.f32 %v182_v58, %v4871_v55  ;;  %v185_v62 = vadd.f32 %v172_v59, %v4876_v56 }
  0x83   :  { %4550 = vset.pattern.permute.xlu0 %v4634_v63 }
  0x84   :  { %1300 = vperm.xlu1 %4528, %v4720_v4   ;;  %v191_v6 = vmax.f32 %v187_v61, 0.0  ;;  %2180 = vperm.xlu0 %4550, %v4720_v4   ;;  %v189_v11 = vmax.f32 %v185_v62, 0.0 }
  0x85   :  { %v4892_v7 = vpop.permute.xlu1 %199  ;;  %v4894_v8 = vpop.permute.xlu0 %194 }
  0x86   :  { %4120 = vmatprep.subr.mxu1 %v191_v6 }
  0x87   :  { %4121 = vmatpush3.msra.mxu1 %v191_v6 }
  0x88   :  { %4122 = vmatprep.subr.mxu1 %v190_v10  ;;  %4531 = vset.pattern.permute.xlu1 %v4626_v44 }
  0x89   :  { %4123 = vmatpush3.msra.mxu1 %v190_v10  ;;  %v4897_v13 = vpop.permute.xlu1 %293  ;;  %1410 = vperm.xlu1 %4531, %v4720_v4   ;;  %v4900_v14 = vpop.permute.xlu0 %288 }
  0x8a   :  { %4124 = vmatprep.subr.mxu1 %v189_v11  ;;  %4551 = vset.pattern.permute.xlu0 %v4635_v15 }
  0x8b   :  { %4125 = vmatpush3.msra.mxu1 %v189_v11  ;;  %2298 = vperm.xlu0 %4551, %v4715_v3  }
  0x8c   :  { %4126 = vmatprep.subr.mxu1 %v188_v12 }
  0x8d   :  { %1406 = vperm.xlu1 %4531, %v4708_v2   ;;  %4127 = vmatpush3.msra.mxu1 %v188_v12 }
  0x8e   :  { %v311_v17 = vpop.permute.xlu1 %310  ;;  %4129 = vmatmul.mubr.msk.f32.vlgmr.msra.gmra.mxu1 %vm202_vm0, %v4906_v16  ;;  %v307_v18 = vpop.permute.xlu0 %306 }
  0x8f   :  { %4139 = vmatprep.mubr.msk.f32.mxu1 %vm202_vm0, %v4739_v9  ;;  %2286 = vperm.xlu0 %4551, %v4708_v2   ;;  %v322_v24 = vadd.f32 %v311_v17, %v4876_v56  ;;  %v321_v25 = vadd.f32 %v307_v18, %v4883_v57 }
  0x91   :  { %4532 = vset.pattern.permute.xlu1 %v4628_v46  ;;  %v326_v31 = vmax.f32 %v322_v24, 0.0  ;;  %v325_v32 = vmax.f32 %v321_v25, 0.0 }
  0x92   :  { %v315_v19 = vpop.permute.xlu1 %314  ;;  %1528 = vperm.xlu1 %4532, %v4715_v3   ;;  %v319_v20 = vpop.permute.xlu0 %318 }
  0x93   :  { %v323_v21 = vadd.f32 %v315_v19, %v4866_v54  ;;  %v324_v22 = vadd.f32 %v319_v20, %v4871_v55  ;;  %4555 = vset.pattern.permute.xlu0 %v4636_v23  ;;  %v4641_v19 = vmov 25  }
  0x94   :  { %2404 = vperm.xlu0 %4555, %v4703_v1  }
  0x95   :  { %v328_v26 = vmax.f32 %v324_v22, 0.0  ;;  %v327_v27 = vmax.f32 %v323_v21, 0.0 }
  0x96   :  { %1524 = vperm.xlu1 %4532, %v4703_v1  }
  0x97   :  { %v417_v28 = vpop.permute.xlu1 %416  ;;  %4131 = vmatprep.subr.mxu1 %v328_v26  ;;  %v421_v29 = vpop.permute.xlu0 %420 }
  0x98   :  { %4132 = vmatpush3.msra.mxu1 %v328_v26  ;;  %4557 = vset.pattern.permute.xlu0 %v4637_v30  ;;  %v432_v39 = vadd.f32 %v421_v29, %v4876_v56  ;;  %v431_v43 = vadd.f32 %v417_v28, %v4883_v57 }
  0x99   :  { %4133 = vmatprep.subr.mxu1 %v327_v27  ;;  %2510 = vperm.xlu0 %4557, %v4720_v4  }
  0x9a   :  { %4533 = vset.pattern.permute.xlu1 %v4629_v47  ;;  %4134 = vmatpush3.msra.mxu1 %v327_v27  ;;  %v436_v45 = vmax.f32 %v432_v39, 0.0  ;;  %v435_v53 = vmax.f32 %v431_v43, 0.0 }
  0x9b   :  { %1634 = vperm.xlu1 %4533, %v4703_v1   ;;  %v425_v33 = vpop.permute.xlu1 %424  ;;  %4135 = vmatprep.subr.mxu1 %v326_v31 }
  0x9c   :  { %4136 = vmatpush3.msra.mxu1 %v326_v31  ;;  %v527_v34 = vpop.permute.xlu0 %526  ;;  %v433_v37 = vadd.f32 %v425_v33, %v4866_v54  ;;  %v4642_v33 = vmov 26  }
  0x9d   :  { %4137 = vmatprep.subr.mxu1 %v325_v32  ;;  %4561 = vset.pattern.permute.xlu0 %v4638_v35  ;;  %v541_v60 = vadd.f32 %v527_v34, %v4883_v57 }
  0x9e   :  { %4138 = vmatpush3.msra.mxu1 %v325_v32  ;;  %2734 = vperm.xlu0 %4561, %v4703_v1   ;;  %v437_v44 = vmax.f32 %v433_v37, 0.0 }
  0x9f   :  { %1630 = vperm.xlu1 %4533, %v4720_v4   ;;  %v429_v36 = vpop.permute.xlu1 %428  ;;  %4140 = vmatmul.mubr.msk.f32.vlgmr.msra.gmra.mxu1 %vm202_vm0, %v4906_v16  ;;  %v545_v11 = vmax.f32 %v541_v60, 0.0 }
  0xa0   :  { %v434_v38 = vadd.f32 %v429_v36, %v4871_v55  ;;  %4150 = vmatprep.mubr.msk.f32.mxu1 %vm202_vm0, %v4739_v9  ;;  %v539_v40 = vpop.permute.xlu0 %538 }
  0xa1   :  { %v544_v52 = vadd.f32 %v539_v40, %v4871_v55 }
  0xa2   :  { %v438_v41 = vmax.f32 %v434_v38, 0.0  ;;  %4562 = vset.pattern.permute.xlu0 %v4639_v42 }
  0xa3   :  { %4536 = vset.pattern.permute.xlu1 %v4628_v46  ;;  %2628 = vperm.xlu0 %4562, %v4715_v3   ;;  %v548_v58 = vmax.f32 %v544_v52, 0.0 }
  0xa4   :  { %1516 = vperm.xlu1 %4536, %v4708_v2   ;;  %v531_v47 = vpop.permute.xlu1 %530  ;;  %4142 = vmatprep.subr.mxu1 %v438_v41 }
  0xa5   :  { %4143 = vmatpush3.msra.mxu1 %v438_v41  ;;  %v542_v61 = vadd.f32 %v531_v47, %v4876_v56  ;;  %v641_v6 = vpop.permute.xlu0 %640 }
  0xa6   :  { %4144 = vmatprep.subr.mxu1 %v437_v44  ;;  %v652_v24 = vadd.f32 %v641_v6, %v4876_v56 }
  0xa7   :  { %4145 = vmatpush3.msra.mxu1 %v437_v44  ;;  %2616 = vperm.xlu0 %4562, %v4708_v2   ;;  %v546_v12 = vmax.f32 %v542_v61, 0.0  ;;  %v4643_v44 = vmov 27  }
  0xa8   :  { %4537 = vset.pattern.permute.xlu1 %v4630_v48  ;;  %v535_v46 = vpop.permute.xlu1 %534  ;;  %4146 = vmatprep.subr.mxu1 %v436_v45  ;;  %v656_v29 = vmax.f32 %v652_v24, 0.0 }
  0xa9   :  { %v543_v59 = vadd.f32 %v535_v46, %v4866_v54  ;;  %1748 = vperm.xlu1 %4537, %v4715_v3   ;;  %4147 = vmatpush3.msra.mxu1 %v436_v45 }
  0xaa   :  { %4148 = vmatprep.subr.mxu1 %v435_v53  ;;  %v747_v18 = vpop.permute.xlu0 %746 }
  0xab   :  { %v547_v62 = vmax.f32 %v543_v59, 0.0  ;;  %4149 = vmatpush3.msra.mxu1 %v435_v53  ;;  %4566 = vset.pattern.permute.xlu0 %v4640_v5  ;;  %v761_v38 = vadd.f32 %v747_v18, %v4883_v57 }
  0xac   :  { %4151 = vmatmul.mubr.msk.f32.vlgmr.msra.gmra.mxu1 %vm202_vm0, %v4906_v16  ;;  %4153 = vmatprep.subr.mxu1 %v548_v58 }
  0xad   :  { %4538 = vset.pattern.permute.xlu1 %v4631_v49  ;;  %v637_v10 = vpop.permute.xlu1 %636  ;;  %4154 = vmatpush3.msra.mxu1 %v548_v58  ;;  %v765_v52 = vmax.f32 %v761_v38, 0.0 }
  0xae   :  { %1858 = vperm.xlu1 %4538, %v4715_v3   ;;  %4155 = vmatprep.subr.mxu1 %v547_v62  ;;  %v755_v26 = vpop.permute.xlu0 %754  ;;  %v651_v27 = vadd.f32 %v637_v10, %v4883_v57 }
  0xaf   :  { %4156 = vmatpush3.msra.mxu1 %v547_v62  ;;  %4161 = vmatprep.mubr.msk.f32.mxu1 %vm202_vm0, %v4739_v9 }
  0xb0   :  { %4157 = vmatprep.subr.mxu1 %v546_v12  ;;  %2840 = vperm.xlu0 %4566, %v4720_v4   ;;  %v655_v34 = vmax.f32 %v651_v27, 0.0 }
  0xb1   :  { %v645_v17 = vpop.permute.xlu1 %644  ;;  %4158 = vmatpush3.msra.mxu1 %v546_v12 }
  0xb2   :  { %1854 = vperm.xlu1 %4538, %v4703_v1   ;;  %4159 = vmatprep.subr.mxu1 %v545_v11  ;;  %v653_v21 = vadd.f32 %v645_v17, %v4866_v54 }
  0xb3   :  { %4160 = vmatpush3.msra.mxu1 %v545_v11  ;;  %v861_v32 = vpop.permute.xlu0 %860 }
  0xb4   :  { %4162 = vmatmul.mubr.msk.f32.vlgmr.msra.gmra.mxu1 %vm202_vm0, %v4906_v16  ;;  %4567 = vset.pattern.permute.xlu0 %v4641_v19  ;;  %v657_v28 = vmax.f32 %v653_v21, 0.0  ;;  %v872_v46 = vadd.f32 %v861_v32, %v4876_v56 }
  0xb5   :  { %v649_v20 = vpop.permute.xlu1 %648  ;;  %4183 = vmatprep.mubr.msk.f32.mxu1 %vm202_vm0, %v4739_v9  ;;  %2958 = vperm.xlu0 %4567, %v4715_v3  }
  0xb6   :  { %v654_v22 = vadd.f32 %v649_v20, %v4871_v55  ;;  %4540 = vset.pattern.permute.xlu1 %v4630_v48  ;;  %v763_v48 = vadd.f32 %v755_v26, %v4866_v54  ;;  %v876_v6 = vmax.f32 %v872_v46, 0.0 }
  0xb7   :  { %1740 = vperm.xlu1 %4540, %v4720_v4  }
  0xb8   :  { %v658_v25 = vmax.f32 %v654_v22, 0.0  ;;  %v767_v41 = vmax.f32 %v763_v48, 0.0  ;;  %v979_v43 = vpop.permute.xlu0 %978 }
  0xb9   :  { %2946 = vperm.xlu0 %4567, %v4708_v2   ;;  %v984_v53 = vadd.f32 %v979_v43, %v4871_v55 }
  0xba   :  { %v751_v31 = vpop.permute.xlu1 %750  ;;  %4164 = vmatprep.subr.mxu0 %v658_v25 }
  0xbb   :  { %1736 = vperm.xlu1 %4540, %v4708_v2   ;;  %4165 = vmatpush3.msra.mxu0 %v658_v25  ;;  %v762_v39 = vadd.f32 %v751_v31, %v4876_v56  ;;  %v988_v61 = vmax.f32 %v984_v53, 0.0 }
  0xbc   :  { %4166 = vmatprep.subr.mxu0 %v657_v28  ;;  %v967_v11 = vpop.permute.xlu0 %966 }
  0xbd   :  { %4167 = vmatpush3.msra.mxu0 %v657_v28  ;;  %4571 = vset.pattern.permute.xlu0 %v4642_v33  ;;  %v766_v47 = vmax.f32 %v762_v39, 0.0  ;;  %v981_v17 = vadd.f32 %v967_v11, %v4883_v57  ;;  %v4644_v28 = vmov 29  }
  0xbe   :  { %v759_v36 = vpop.permute.xlu1 %758  ;;  %4168 = vmatprep.subr.mxu0 %v656_v29  ;;  %3064 = vperm.xlu0 %4571, %v4703_v1  }
  0xbf   :  { %v764_v37 = vadd.f32 %v759_v36, %v4871_v55  ;;  %4542 = vset.pattern.permute.xlu1 %v4631_v49  ;;  %4169 = vmatpush3.msra.mxu0 %v656_v29  ;;  %v985_v22 = vmax.f32 %v981_v17, 0.0 }
  0xc0   :  { %1846 = vperm.xlu1 %4542, %v4708_v2   ;;  %4170 = vmatprep.subr.mxu0 %v655_v34 }
  0xc1   :  { %v768_v40 = vmax.f32 %v764_v37, 0.0  ;;  %4171 = vmatpush3.msra.mxu0 %v655_v34  ;;  %v1085_v26 = vpop.permute.xlu0 %1084  ;;  %v4645_v34 = vmov 28  }
  0xc2   :  { %4173 = vmatmul.mubr.msk.f32.vlgmr.msra.gmra.mxu0 %vm202_vm0, %v4906_v16  ;;  %4573 = vset.pattern.permute.xlu0 %v4643_v44 }
  0xc3   :  { %v869_v45 = vpop.permute.xlu1 %868  ;;  %4175 = vmatprep.subr.mxu1 %v768_v40  ;;  %4194 = vmatprep.mubr.msk.f32.mxu0 %vm202_vm0, %v4739_v9 }
  0xc4   :  { %v874_v49 = vadd.f32 %v869_v45, %v4871_v55  ;;  %4543 = vset.pattern.permute.xlu1 %v4632_v50  ;;  %4176 = vmatpush3.msra.mxu1 %v768_v40 }
  0xc5   :  { %2078 = vperm.xlu1 %4543, %v4715_v3   ;;  %4177 = vmatprep.subr.mxu1 %v767_v41 }
  0xc6   :  { %v878_v58 = vmax.f32 %v874_v49, 0.0  ;;  %4178 = vmatpush3.msra.mxu1 %v767_v41  ;;  %3170 = vperm.xlu0 %4573, %v4720_v4   ;;  %v1191_v37 = vpop.permute.xlu0 %1190 }
  0xc7   :  { %v865_v59 = vpop.permute.xlu1 %864  ;;  %4179 = vmatprep.subr.mxu1 %v766_v47  ;;  %v1202_v40 = vadd.f32 %v1191_v37, %v4876_v56 }
  0xc8   :  { %v873_v60 = vadd.f32 %v865_v59, %v4866_v54  ;;  %4180 = vmatpush3.msra.mxu1 %v766_v47  ;;  %4186 = vmatprep.subr.mxu0 %v878_v58 }
  0xc9   :  { %4544 = vset.pattern.permute.xlu1 %v4633_v51  ;;  %4181 = vmatprep.subr.mxu1 %v765_v52  ;;  %v1206_v47 = vmax.f32 %v1202_v40, 0.0 }
  0xca   :  { %v877_v62 = vmax.f32 %v873_v60, 0.0  ;;  %4187 = vmatpush3.msra.mxu0 %v878_v58  ;;  %1964 = vperm.xlu1 %4544, %v4703_v1  }
  0xcb   :  { %4182 = vmatpush3.msra.mxu1 %v765_v52  ;;  %4577 = vset.pattern.permute.xlu0 %v4644_v28  ;;  %v1415_v43 = vpop.permute.xlu0 %1414 }
  0xcc   :  { %4184 = vmatmul.mubr.msk.f32.vlgmr.msra.gmra.mxu1 %vm202_vm0, %v4906_v16  ;;  %v975_v10 = vpop.permute.xlu1 %974  ;;  %4188 = vmatprep.subr.mxu0 %v877_v62 }
  0xcd   :  { %v983_v12 = vadd.f32 %v975_v10, %v4866_v54  ;;  %4189 = vmatpush3.msra.mxu0 %v877_v62  ;;  %4197 = vmatprep.subr.mxu1 %v988_v61 }
  0xce   :  { %1960 = vperm.xlu1 %4544, %v4720_v4   ;;  %4198 = vmatpush3.msra.mxu1 %v988_v61 }
  0xcf   :  { %v987_v51 = vmax.f32 %v983_v12, 0.0  ;;  %4190 = vmatprep.subr.mxu0 %v876_v6  ;;  %4205 = vmatprep.mubr.msk.f32.mxu1 %vm202_vm0, %v4739_v9 }
  0xd0   :  { %v971_v18 = vpop.permute.xlu1 %970  ;;  %4191 = vmatpush3.msra.mxu0 %v876_v6  ;;  %3394 = vperm.xlu0 %4577, %v4703_v1   ;;  %v1309_v58 = vpop.permute.xlu0 %1308 }
  0xd1   :  { %v982_v20 = vadd.f32 %v971_v18, %v4876_v56  ;;  %4199 = vmatprep.subr.mxu1 %v987_v51  ;;  %v4647_v18 = vmov 30  }
  0xd2   :  { %4547 = vset.pattern.permute.xlu1 %v4632_v50  ;;  %4200 = vmatpush3.msra.mxu1 %v987_v51  ;;  %v1093_v50 = vadd.f32 %v1085_v26, %v4866_v54 }
  0xd3   :  { %v986_v21 = vmax.f32 %v982_v20, 0.0  ;;  %2070 = vperm.xlu1 %4547, %v4720_v4  }
  0xd4   :  { %v1097_v48 = vmax.f32 %v1093_v50, 0.0  ;;  %4578 = vset.pattern.permute.xlu0 %v4645_v34  ;;  %v5072_v50 = vld [vmem:[%s5540_s2 + $0x8] sm:$0xff] }
  0xd5   :  { %v857_v24 = vpop.permute.xlu1 %856  ;;  %4201 = vmatprep.subr.mxu1 %v986_v21  ;;  %3288 = vperm.xlu0 %4578, %v4715_v3  }
  0xd6   :  { %v871_v25 = vadd.f32 %v857_v24, %v4883_v57  ;;  %4202 = vmatpush3.msra.mxu1 %v986_v21  ;;  %v1297_v21 = vpop.permute.xlu0 %1296 }
  0xd7   :  { %2066 = vperm.xlu1 %4547, %v4708_v2   ;;  %4203 = vmatprep.subr.mxu1 %v985_v22  ;;  %v1311_v24 = vadd.f32 %v1297_v21, %v4883_v57 }
  0xd8   :  { %v875_v27 = vmax.f32 %v871_v25, 0.0  ;;  %4204 = vmatpush3.msra.mxu1 %v985_v22 }
  0xd9   :  { %4206 = vmatmul.mubr.msk.f32.vlgmr.msra.gmra.mxu1 %vm202_vm0, %v4906_v16  ;;  %3276 = vperm.xlu0 %4578, %v4708_v2  }
  0xda   :  { %v1089_v29 = vpop.permute.xlu1 %1088  ;;  %4192 = vmatprep.subr.mxu0 %v875_v27  ;;  %4227 = vmatprep.mubr.msk.f32.mxu1 %vm202_vm0, %v4739_v9  ;;  %v1521_v26 = vpop.permute.xlu0 %1520 }
  0xdb   :  { %v1094_v31 = vadd.f32 %v1089_v29, %v4871_v55  ;;  %4548 = vset.pattern.permute.xlu1 %v4634_v63  ;;  %4193 = vmatpush3.msra.mxu0 %v875_v27 }
  0xdc   :  { %2188 = vperm.xlu1 %4548, %v4715_v3   ;;  %4195 = vmatmul.mubr.msk.f32.vlgmr.msra.gmra.mxu0 %vm202_vm0, %v4906_v16 }
  0xdd   :  { %v1098_v32 = vmax.f32 %v1094_v31, 0.0  ;;  %4216 = vmatprep.mubr.msk.f32.mxu0 %vm202_vm0, %v4739_v9  ;;  %v1315_v31 = vmax.f32 %v1311_v24, 0.0 }
  0xdf   :  { %v1199_v36 = vpop.permute.xlu1 %1198  ;;  %4208 = vmatprep.subr.mxu0 %v1098_v32 }
  0xe0   :  { %v1204_v38 = vadd.f32 %v1199_v36, %v4871_v55  ;;  %2184 = vperm.xlu1 %4548, %v4703_v1   ;;  %4209 = vmatpush3.msra.mxu0 %v1098_v32  ;;  %v5078_v32 = vld [vmem:[%s5540_s2] sm:$0xff]  ;;  %v1639_v36 = vpop.permute.xlu0 %1638 }
  0xe1   :  { %4210 = vmatprep.subr.mxu0 %v1097_v48 }
  0xe2   :  { %v1208_v39 = vmax.f32 %v1204_v38, 0.0  ;;  %4211 = vmatpush3.msra.mxu0 %v1097_v48 }
  0xe3   :  { %v1195_v41 = vpop.permute.xlu1 %1194 }
  0xe4   :  { %v1203_v45 = vadd.f32 %v1195_v41, %v4866_v54  ;;  %4549 = vset.pattern.permute.xlu1 %v4635_v15  ;;  %4219 = vmatprep.subr.mxu1 %v1208_v39  ;;  %v1314_v15 = vadd.f32 %v1309_v58, %v4871_v55 }
  0xe5   :  { %2294 = vperm.xlu1 %4549, %v4703_v1   ;;  %4220 = vmatpush3.msra.mxu1 %v1208_v39  ;;  %v1644_v39 = vadd.f32 %v1639_v36, %v4871_v55 }
  0xe6   :  { %v1207_v49 = vmax.f32 %v1203_v45, 0.0  ;;  %v1318_v61 = vmax.f32 %v1314_v15, 0.0 }
  0xe7   :  { %v1648_v45 = vmax.f32 %v1644_v39, 0.0 }
  0xe8   :  { %v1081_v52 = vpop.permute.xlu1 %1080  ;;  %4221 = vmatprep.subr.mxu1 %v1207_v49 }
  0xe9   :  { %v1092_v53 = vadd.f32 %v1081_v52, %v4876_v56  ;;  %2290 = vperm.xlu1 %4549, %v4720_v4   ;;  %4222 = vmatpush3.msra.mxu1 %v1207_v49 }
  0xea   :  { %4223 = vmatprep.subr.mxu1 %v1206_v47 }
  0xeb   :  { %v1096_v46 = vmax.f32 %v1092_v53, 0.0  ;;  %4224 = vmatpush3.msra.mxu1 %v1206_v47  ;;  %v1532_v53 = vadd.f32 %v1521_v26, %v4876_v56 }
  0xec   :  { %v1077_v59 = vpop.permute.xlu1 %1076 }
  0xed   :  { %v1091_v60 = vadd.f32 %v1077_v59, %v4883_v57  ;;  %4552 = vset.pattern.permute.xlu1 %v4634_v63  ;;  %4212 = vmatprep.subr.mxu0 %v1096_v46  ;;  %v4646_v63 = vmov 31   ;;  %v1536_v59 = vmax.f32 %v1532_v53, 0.0 }
  0xee   :  { %2176 = vperm.xlu1 %4552, %v4708_v2   ;;  %4213 = vmatpush3.msra.mxu0 %v1096_v46  ;;  %v1423_v2 = vadd.f32 %v1415_v43, %v4866_v54  ;;  %v5093_v43 = vld [vmem:[%s5543_s4] sm:$0xff] }
  0xef   :  { %v1095_v1 = vmax.f32 %v1091_v60, 0.0  ;;  %4581 = vset.pattern.permute.xlu0 %v4646_v63 }
  0xf0   :  { %3618 = vperm.xlu0 %4581, %v4715_v3   ;;  %v1427_v51 = vmax.f32 %v1423_v2, 0.0 }
  0xf1   :  { %v1187_v62 = vpop.permute.xlu1 %1186  ;;  %4214 = vmatprep.subr.mxu0 %v1095_v1 }
  0xf2   :  { %v1201_v6 = vadd.f32 %v1187_v62, %v4883_v57  ;;  %4553 = vset.pattern.permute.xlu1 %v4636_v23  ;;  %4215 = vmatpush3.msra.mxu0 %v1095_v1  ;;  %v1627_v1 = vpop.permute.xlu0 %1626 }
  0xf3   :  { %2408 = vperm.xlu1 %4553, %v4715_v3   ;;  %4217 = vmatmul.mubr.msk.f32.vlgmr.msra.gmra.mxu0 %vm202_vm0, %v4906_v16 }
  0xf4   :  { %v1205_v10 = vmax.f32 %v1201_v6, 0.0  ;;  %4230 = vmatprep.subr.mxu0 %v1318_v61  ;;  %4238 = vmatprep.mubr.msk.f32.mxu0 %vm202_vm0, %v4739_v9  ;;  %v1641_v6 = vadd.f32 %v1627_v1, %v4883_v57 }
  0xf5   :  { %4231 = vmatpush3.msra.mxu0 %v1318_v61  ;;  %4583 = vset.pattern.permute.xlu0 %v4647_v18 }
  0xf6   :  { %v1419_v11 = vpop.permute.xlu1 %1418  ;;  %4225 = vmatprep.subr.mxu1 %v1205_v10  ;;  %3500 = vperm.xlu0 %4583, %v4720_v4   ;;  %v14_v4 = vstv %s5548_s8 }
  0xf7   :  { %v1424_v12 = vadd.f32 %v1419_v11, %v4871_v55  ;;  %4554 = vset.pattern.permute.xlu1 %v4637_v30  ;;  %4226 = vmatpush3.msra.mxu1 %v1205_v10  ;;  %15 = vst [vmem:[#allocation2] sm:$0x1] %v14_v4  ;;  %v1645_v11 = vmax.f32 %v1641_v6, 0.0 }
  0xf8   :  { %2518 = vperm.xlu1 %4554, %v4715_v3   ;;  %4228 = vmatmul.mubr.msk.f32.vlgmr.msra.gmra.mxu1 %vm202_vm0, %v4906_v16  ;;  %v5059_v3 = vld [vmem:[%s5540_s2 + $0x10] sm:$0xff] }
  0xf9   :  { %v1428_v17 = vmax.f32 %v1424_v12, 0.0  ;;  %4249 = vmatprep.mubr.msk.f32.mxu1 %vm202_vm0, %v4739_v9 }
  0xfa   :  { %4585 = vset.pattern.permute.xlu0 %v4646_v63 }
  0xfb   :  { %v1305_v20 = vpop.permute.xlu1 %1304  ;;  %4241 = vmatprep.subr.mxu1 %v1428_v17  ;;  %3606 = vperm.xlu0 %4585, %v5078_v32  }
  0xfc   :  { %v1313_v22 = vadd.f32 %v1305_v20, %v4866_v54  ;;  %2514 = vperm.xlu1 %4554, %v5059_v3   ;;  %4242 = vmatpush3.msra.mxu1 %v1428_v17  ;;  %v1745_v17 = vpop.permute.xlu0 %1744 }
  0xfd   :  { %4243 = vmatprep.subr.mxu1 %v1427_v51 }
  0xfe   :  { %v1317_v9 = vmax.f32 %v1313_v22, 0.0  ;;  %4244 = vmatpush3.msra.mxu1 %v1427_v51 }
  0xff   :  { %v1301_v25 = vpop.permute.xlu1 %1300  ;;  %4587 = vset.pattern.permute.xlu0 %v4616_v0 }
 0x100   :  { %v1312_v27 = vadd.f32 %v1301_v25, %v4876_v56  ;;  %4556 = vset.pattern.permute.xlu1 %v4636_v23  ;;  %4232 = vmatprep.subr.mxu0 %v1317_v9  ;;  %v1851_v26 = vpop.permute.xlu0 %1850 }
 0x101   :  { %2400 = vperm.xlu1 %4556, %v5072_v50   ;;  %4233 = vmatpush3.msra.mxu0 %v1317_v9 }
 0x102   :  { %v1316_v29 = vmax.f32 %v1312_v27, 0.0 }
 0x104   :  { %v1411_v23 = vpop.permute.xlu1 %1410  ;;  %4234 = vmatprep.subr.mxu0 %v1316_v29 }
 0x105   :  { %v1422_v48 = vadd.f32 %v1411_v23, %v4876_v56  ;;  %2396 = vperm.xlu1 %4556, %v5078_v32   ;;  %4235 = vmatpush3.msra.mxu0 %v1316_v29  ;;  %v1862_v29 = vadd.f32 %v1851_v26, %v4876_v56  ;;  %v2075_v23 = vpop.permute.xlu0 %2074 }
 0x106   :  { %4236 = vmatprep.subr.mxu0 %v1315_v31 }
 0x107   :  { %v1426_v37 = vmax.f32 %v1422_v48, 0.0  ;;  %4237 = vmatpush3.msra.mxu0 %v1315_v31 }
 0x108   :  { %v1407_v38 = vpop.permute.xlu1 %1406  ;;  %4239 = vmatmul.mubr.msk.f32.vlgmr.msra.gmra.mxu0 %vm202_vm0, %v4906_v16 }
 0x109   :  { %v1421_v40 = vadd.f32 %v1407_v38, %v4883_v57  ;;  %4558 = vset.pattern.permute.xlu1 %v4637_v30  ;;  %4245 = vmatprep.subr.mxu1 %v1426_v37  ;;  %v5102_v30 = vld [vmem:[%s5540_s2 + $0x18] sm:$0xff] }
 0x10a   :  { %2506 = vperm.xlu1 %4558, %v5078_v32   ;;  %4246 = vmatpush3.msra.mxu1 %v1426_v37  ;;  %v1866_v37 = vmax.f32 %v1862_v29, 0.0 }
 0x10b   :  { %v1425_v41 = vmax.f32 %v1421_v40, 0.0  ;;  %4260 = vmatprep.mubr.msk.f32.mxu0 %vm202_vm0, %v5093_v43  ;;  %v1969_v40 = vpop.permute.xlu0 %1968 }
 0x10d   :  { %v1529_v49 = vpop.permute.xlu1 %1528  ;;  %4247 = vmatprep.subr.mxu1 %v1425_v41 }
 0x10e   :  { %v1534_v47 = vadd.f32 %v1529_v49, %v4871_v55  ;;  %4559 = vset.pattern.permute.xlu1 %v4638_v35  ;;  %4248 = vmatpush3.msra.mxu1 %v1425_v41 }
 0x10f   :  { %2738 = vperm.xlu1 %4559, %v5102_v30   ;;  %4250 = vmatmul.mubr.msk.f32.vlgmr.msra.gmra.mxu1 %vm202_vm0, %v4906_v16 }
 0x110   :  { %v1538_v52 = vmax.f32 %v1534_v47, 0.0  ;;  %4263 = vmatprep.subr.mxu1 %v1648_v45  ;;  %4271 = vmatprep.mubr.msk.f32.mxu1 %vm202_vm0, %v5093_v43 }
 0x111   :  { %v1525_v58 = vpop.permute.xlu1 %1524  ;;  %4264 = vmatpush3.msra.mxu1 %v1648_v45 }
 0x112   :  { %v1533_v46 = vadd.f32 %v1525_v58, %v4866_v54  ;;  %4252 = vmatprep.subr.mxu0 %v1538_v52 }
 0x113   :  { %4560 = vset.pattern.permute.xlu1 %v4639_v42  ;;  %4253 = vmatpush3.msra.mxu0 %v1538_v52 }
 0x114   :  { %v1537_v15 = vmax.f32 %v1533_v46, 0.0  ;;  %2624 = vperm.xlu1 %4560, %v5059_v3  }
 0x116   :  { %v1635_v60 = vpop.permute.xlu1 %1634  ;;  %4254 = vmatprep.subr.mxu0 %v1537_v15 }
 0x117   :  { %v1643_v61 = vadd.f32 %v1635_v60, %v4866_v54  ;;  %4255 = vmatpush3.msra.mxu0 %v1537_v15 }
 0x118   :  { %2620 = vperm.xlu1 %4560, %v5072_v50   ;;  %4256 = vmatprep.subr.mxu0 %v1536_v59 }
 0x119   :  { %v1647_v62 = vmax.f32 %v1643_v61, 0.0  ;;  %4257 = vmatpush3.msra.mxu0 %v1536_v59 }
 0x11a   :  { %v1631_v10 = vpop.permute.xlu1 %1630 }
 0x11b   :  { %v1642_v42 = vadd.f32 %v1631_v10, %v4876_v56  ;;  %4265 = vmatprep.subr.mxu1 %v1647_v62 }
 0x11c   :  { %4563 = vset.pattern.permute.xlu1 %v4638_v35  ;;  %4266 = vmatpush3.msra.mxu1 %v1647_v62  ;;  %v1753_v35 = vadd.f32 %v1745_v17, %v4866_v54  ;;  %v1957_v62 = vpop.permute.xlu0 %1956 }
 0x11d   :  { %v1646_v2 = vmax.f32 %v1642_v42, 0.0  ;;  %2730 = vperm.xlu1 %4563, %v5072_v50   ;;  %v1971_v10 = vadd.f32 %v1957_v62, %v4883_v57 }
 0x11e   :  { %v1757_v24 = vmax.f32 %v1753_v35, 0.0 }
 0x11f   :  { %v1517_v12 = vpop.permute.xlu1 %1516  ;;  %4267 = vmatprep.subr.mxu1 %v1646_v2 }
 0x120   :  { %v1531_v51 = vadd.f32 %v1517_v12, %v4883_v57  ;;  %4268 = vmatpush3.msra.mxu1 %v1646_v2  ;;  %v2181_v2 = vpop.permute.xlu0 %2180 }
 0x121   :  { %2726 = vperm.xlu1 %4563, %v5078_v32   ;;  %4269 = vmatprep.subr.mxu1 %v1645_v11 }
 0x122   :  { %v1535_v20 = vmax.f32 %v1531_v51, 0.0  ;;  %4270 = vmatpush3.msra.mxu1 %v1645_v11 }
 0x123   :  { %4272 = vmatmul.mubr.msk.f32.vlgmr.msra.gmra.mxu1 %vm202_vm0, %v4906_v16 }
 0x124   :  { %v1749_v21 = vpop.permute.xlu1 %1748  ;;  %4258 = vmatprep.subr.mxu0 %v1535_v20  ;;  %4293 = vmatprep.mubr.msk.f32.mxu1 %vm202_vm0, %v5093_v43 }
 0x125   :  { %v1754_v22 = vadd.f32 %v1749_v21, %v4871_v55  ;;  %4564 = vset.pattern.permute.xlu1 %v4640_v5  ;;  %4259 = vmatpush3.msra.mxu0 %v1535_v20 }
 0x126   :  { %2848 = vperm.xlu1 %4564, %v5102_v30   ;;  %4261 = vmatmul.mubr.msk.f32.vlgmr.msra.gmra.mxu0 %vm202_vm0, %v4906_v16 }
 0x127   :  { %v1758_v9 = vmax.f32 %v1754_v22, 0.0  ;;  %4282 = vmatprep.mubr.msk.f32.mxu0 %vm202_vm0, %v5093_v43 }
 0x129   :  { %v1859_v25 = vpop.permute.xlu1 %1858  ;;  %4274 = vmatprep.subr.mxu0 %v1758_v9 }
 0x12a   :  { %v1864_v4 = vadd.f32 %v1859_v25, %v4871_v55  ;;  %2844 = vperm.xlu1 %4564, %v5059_v3   ;;  %4275 = vmatpush3.msra.mxu0 %v1758_v9 }
 0x12b   :  { %4276 = vmatprep.subr.mxu0 %v1757_v24 }
 0x12c   :  { %v1868_v27 = vmax.f32 %v1864_v4, 0.0  ;;  %4277 = vmatpush3.msra.mxu0 %v1757_v24  ;;  %v5194_v4 = vld [vmem:[%s5547_s3 + $0x8] sm:$0xff] }
 0x12d   :  { %v1855_v31 = vpop.permute.xlu1 %1854 }
 0x12e   :  { %v1863_v48 = vadd.f32 %v1855_v31, %v4866_v54  ;;  %4565 = vset.pattern.permute.xlu1 %v4641_v19  ;;  %4285 = vmatprep.subr.mxu1 %v1868_v27  ;;  %v1974_v19 = vadd.f32 %v1969_v40, %v4871_v55  ;;  %v5202_v31 = vld [vmem:[%s5547_s3 + $0x10] sm:$0xff] }
 0x12f   :  { %2954 = vperm.xlu1 %4565, %v5059_v3   ;;  %4286 = vmatpush3.msra.mxu1 %v1868_v27  ;;  %v2192_v27 = vadd.f32 %v5194_v4, %v2181_v2 }
 0x130   :  { %v1867_v36 = vmax.f32 %v1863_v48, 0.0  ;;  %v1978_v52 = vmax.f32 %v1974_v19, 0.0 }
 0x132   :  { %v1741_v38 = vpop.permute.xlu1 %1740  ;;  %4287 = vmatprep.subr.mxu1 %v1867_v36 }
 0x133   :  { %v1752_v39 = vadd.f32 %v1741_v38, %v4876_v56  ;;  %2950 = vperm.xlu1 %4565, %v5072_v50   ;;  %4288 = vmatpush3.msra.mxu1 %v1867_v36 }
 0x134   :  { %4289 = vmatprep.subr.mxu1 %v1866_v37 }
 0x135   :  { %v1756_v41 = vmax.f32 %v1752_v39, 0.0  ;;  %4290 = vmatpush3.msra.mxu1 %v1866_v37 }
 0x136   :  { %v1737_v45 = vpop.permute.xlu1 %1736 }
 0x137   :  { %v1751_v49 = vadd.f32 %v1737_v45, %v4883_v57  ;;  %4568 = vset.pattern.permute.xlu1 %v4640_v5  ;;  %4278 = vmatprep.subr.mxu0 %v1756_v41  ;;  %v2083_v5 = vadd.f32 %v2075_v23, %v4866_v54  ;;  %v2196_v23 = vmax.f32 %v2192_v27, 0.0 }
 0x138   :  { %2836 = vperm.xlu1 %4568, %v5078_v32   ;;  %4279 = vmatpush3.msra.mxu0 %v1756_v41 }
 0x139   :  { %v1755_v47 = vmax.f32 %v1751_v49, 0.0  ;;  %v2087_v60 = vmax.f32 %v2083_v5, 0.0 }
 0x13b   :  { %v1847_v53 = vpop.permute.xlu1 %1846  ;;  %4280 = vmatprep.subr.mxu0 %v1755_v47 }
 0x13c   :  { %v1861_v58 = vadd.f32 %v1847_v53, %v4883_v57  ;;  %4569 = vset.pattern.permute.xlu1 %v4642_v33  ;;  %4281 = vmatpush3.msra.mxu0 %v1755_v47  ;;  %v2299_v57 = vpop.permute.xlu0 %2298 }
 0x13d   :  { %3068 = vperm.xlu1 %4569, %v5102_v30   ;;  %4283 = vmatmul.mubr.msk.f32.vlgmr.msra.gmra.mxu0 %vm202_vm0, %v4906_v16 }
 0x13e   :  { %v1865_v46 = vmax.f32 %v1861_v58, 0.0  ;;  %4296 = vmatprep.subr.mxu0 %v1978_v52  ;;  %4304 = vmatprep.mubr.msk.f32.mxu0 %vm202_vm0, %v5093_v43 }
 0x13f   :  { %4297 = vmatpush3.msra.mxu0 %v1978_v52 }
 0x140   :  { %v2079_v59 = vpop.permute.xlu1 %2078  ;;  %4291 = vmatprep.subr.mxu1 %v1865_v46  ;;  %v2287_v37 = vpop.permute.xlu0 %2286 }
 0x141   :  { %v2084_v15 = vadd.f32 %v2079_v59, %v4871_v55  ;;  %4570 = vset.pattern.permute.xlu1 %v4643_v44  ;;  %4292 = vmatpush3.msra.mxu1 %v1865_v46 }
 0x142   :  { %3178 = vperm.xlu1 %4570, %v5102_v30   ;;  %4294 = vmatmul.mubr.msk.f32.vlgmr.msra.gmra.mxu1 %vm202_vm0, %v4906_v16 }
 0x143   :  { %v2088_v1 = vmax.f32 %v2084_v15, 0.0  ;;  %4315 = vmatprep.mubr.msk.f32.mxu1 %vm202_vm0, %v5093_v43 }
 0x144   :  { %v2405_v52 = vpop.permute.xlu0 %2404 }
 0x145   :  { %v1965_v61 = vpop.permute.xlu1 %1964  ;;  %4307 = vmatprep.subr.mxu1 %v2088_v1  ;;  %v2413_v58 = vadd.f32 %v5202_v31, %v2405_v52 }
 0x146   :  { %v1973_v6 = vadd.f32 %v1965_v61, %v4866_v54  ;;  %3174 = vperm.xlu1 %4570, %v5059_v3   ;;  %4308 = vmatpush3.msra.mxu1 %v2088_v1  ;;  %v1975_v54 = vmax.f32 %v1971_v10, 0.0 }
 0x147   :  { %4309 = vmatprep.subr.mxu1 %v2087_v60  ;;  %v2417_v15 = vmax.f32 %v2413_v58, 0.0 }
 0x148   :  { %v1977_v55 = vmax.f32 %v1973_v6, 0.0  ;;  %4310 = vmatpush3.msra.mxu1 %v2087_v60  ;;  %v2511_v1 = vpop.permute.xlu0 %2510 }
 0x149   :  { %v1961_v42 = vpop.permute.xlu1 %1960 }
 0x14a   :  { %v1972_v11 = vadd.f32 %v1961_v42, %v4876_v56  ;;  %4572 = vset.pattern.permute.xlu1 %v4642_v33  ;;  %4298 = vmatprep.subr.mxu0 %v1977_v55  ;;  %v5173_v33 = vld [vmem:[%s5547_s3 + $0x18] sm:$0xff] }
 0x14b   :  { %3060 = vperm.xlu1 %4572, %v5072_v50   ;;  %4299 = vmatpush3.msra.mxu0 %v1977_v55  ;;  %v2304_v21 = vadd.f32 %v5173_v33, %v2299_v57 }
 0x14c   :  { %v1976_v12 = vmax.f32 %v1972_v11, 0.0  ;;  %v2735_v55 = vpop.permute.xlu0 %2734 }
 0x14d   :  { %v2308_v24 = vmax.f32 %v2304_v21, 0.0 }
 0x14e   :  { %v2071_v51 = vpop.permute.xlu1 %2070  ;;  %4300 = vmatprep.subr.mxu0 %v1976_v12 }
 0x14f   :  { %v2082_v17 = vadd.f32 %v2071_v51, %v4876_v56  ;;  %3056 = vperm.xlu1 %4572, %v5078_v32   ;;  %4301 = vmatpush3.msra.mxu0 %v1976_v12  ;;  %v5179_v56 = vld [vmem:[%s5547_s3] sm:$0xff] }
 0x150   :  { %4302 = vmatprep.subr.mxu0 %v1975_v54  ;;  %v2301_v40 = vadd.f32 %v5179_v56, %v2287_v37 }
 0x151   :  { %v2086_v20 = vmax.f32 %v2082_v17, 0.0  ;;  %4303 = vmatpush3.msra.mxu0 %v1975_v54  ;;  %v2629_v54 = vpop.permute.xlu0 %2628 }
 0x152   :  { %v2067_v35 = vpop.permute.xlu1 %2066  ;;  %4305 = vmatmul.mubr.msk.f32.vlgmr.msra.gmra.mxu0 %vm202_vm0, %v4906_v16  ;;  %v2305_v19 = vmax.f32 %v2301_v40, 0.0 }
 0x153   :  { %v2081_v22 = vadd.f32 %v5179_v56, %v2067_v35  ;;  %4574 = vset.pattern.permute.xlu1 %v4643_v44  ;;  %4311 = vmatprep.subr.mxu1 %v2086_v20 }
 0x154   :  { %3166 = vperm.xlu1 %4574, %v5078_v32   ;;  %4312 = vmatpush3.msra.mxu1 %v2086_v20  ;;  %v3865_v20 = vld [vmem:[#allocation2] ss:$0 sm:$0xff] }
 0x155   :  { %v2085_v9 = vmax.f32 %v2081_v22, 0.0  ;;  %4326 = vmatprep.mubr.msk.f32.mxu0 %vm202_vm0, %v5093_v43 }
 0x157   :  { %v2189_v25 = vpop.permute.xlu1 %2188  ;;  %4313 = vmatprep.subr.mxu1 %v2085_v9 }
 0x158   :  { %v2194_v26 = vadd.f32 %v5173_v33, %v2189_v25  ;;  %4575 = vset.pattern.permute.xlu1 %v4644_v28  ;;  %4314 = vmatpush3.msra.mxu1 %v2085_v9  ;;  %v2617_v25 = vpop.permute.xlu0 %2616 }
 0x159   :  { %3398 = vperm.xlu1 %4575, %v5102_v30   ;;  %4316 = vmatmul.mubr.msk.f32.vlgmr.msra.gmra.mxu1 %vm202_vm0, %v4906_v16 }
 0x15a   :  { %v2198_v44 = vmax.f32 %v2194_v26, 0.0  ;;  %4329 = vmatprep.subr.mxu1 %v2308_v24  ;;  %4337 = vmatprep.mubr.msk.f32.mxu1 %vm202_vm0, %v5093_v43 }
 0x15b   :  { %v2185_v29 = vpop.permute.xlu1 %2184  ;;  %4330 = vmatpush3.msra.mxu1 %v2308_v24 }
 0x15c   :  { %v2193_v16 = vadd.f32 %v5202_v31, %v2185_v29  ;;  %4318 = vmatprep.subr.mxu0 %v2198_v44  ;;  %v2631_v29 = vadd.f32 %v5179_v56, %v2617_v25 }
 0x15d   :  { %4576 = vset.pattern.permute.xlu1 %v4645_v34  ;;  %4319 = vmatpush3.msra.mxu0 %v2198_v44 }
 0x15e   :  { %v2197_v48 = vmax.f32 %v2193_v16, 0.0  ;;  %3284 = vperm.xlu1 %4576, %v5059_v3   ;;  %v2841_v16 = vpop.permute.xlu0 %2840  ;;  %v2635_v37 = vmax.f32 %v2631_v29, 0.0 }
 0x160   :  { %v2295_v36 = vpop.permute.xlu1 %2294  ;;  %4320 = vmatprep.subr.mxu0 %v2197_v48 }
 0x161   :  { %v2303_v38 = vadd.f32 %v5202_v31, %v2295_v36  ;;  %4321 = vmatpush3.msra.mxu0 %v2197_v48 }
 0x162   :  { %3280 = vperm.xlu1 %4576, %v5072_v50   ;;  %4322 = vmatprep.subr.mxu0 %v2196_v23 }
 0x163   :  { %v2307_v39 = vmax.f32 %v2303_v38, 0.0  ;;  %4323 = vmatpush3.msra.mxu0 %v2196_v23 }
 0x164   :  { %v2291_v41 = vpop.permute.xlu1 %2290 }
 0x165   :  { %v2302_v34 = vadd.f32 %v5194_v4, %v2291_v41  ;;  %4331 = vmatprep.subr.mxu1 %v2307_v39 }
 0x166   :  { %4579 = vset.pattern.permute.xlu1 %v4644_v28  ;;  %4332 = vmatpush3.msra.mxu1 %v2307_v39  ;;  %v5218_v28 = vld [vmem:[%s5543_s4 + $0x8] sm:$0xff]  ;;  %v2959_v39 = vpop.permute.xlu0 %2958 }
 0x167   :  { %v2306_v45 = vmax.f32 %v2302_v34, 0.0  ;;  %3390 = vperm.xlu1 %4579, %v5072_v50   ;;  %v2964_v34 = vadd.f32 %v5173_v33, %v2959_v39 }
 0x169   :  { %v2177_v49 = vpop.permute.xlu1 %2176  ;;  %4333 = vmatprep.subr.mxu1 %v2306_v45 }
 0x16a   :  { %v2191_v47 = vadd.f32 %v5179_v56, %v2177_v49  ;;  %4334 = vmatpush3.msra.mxu1 %v2306_v45 }
 0x16b   :  { %3386 = vperm.xlu1 %4579, %v5078_v32   ;;  %4335 = vmatprep.subr.mxu1 %v2305_v19 }
 0x16c   :  { %v2195_v53 = vmax.f32 %v2191_v47, 0.0  ;;  %4336 = vmatpush3.msra.mxu1 %v2305_v19  ;;  %v2968_v47 = vmax.f32 %v2964_v34, 0.0 }
 0x16d   :  { %4338 = vmatmul.mubr.msk.f32.vlgmr.msra.gmra.mxu1 %vm202_vm0, %v5218_v28 }
 0x16e   :  { %v2409_v46 = vpop.permute.xlu1 %2408  ;;  %4324 = vmatprep.subr.mxu0 %v2195_v53  ;;  %4359 = vmatprep.mubr.msk.f32.mxu1 %vm202_vm0, %v5093_v43 }
 0x16f   :  { %v2414_v5 = vadd.f32 %v5173_v33, %v2409_v46  ;;  %4580 = vset.pattern.permute.xlu1 %v4647_v18  ;;  %4325 = vmatpush3.msra.mxu0 %v2195_v53  ;;  %v2852_v46 = vadd.f32 %v5194_v4, %v2841_v16 }
 0x170   :  { %3508 = vperm.xlu1 %4580, %v5102_v30   ;;  %4327 = vmatmul.mubr.msk.f32.vlgmr.msra.gmra.mxu0 %vm202_vm0, %v5218_v28  ;;  %v2522_v30 = vadd.f32 %v5194_v4, %v2511_v1  ;;  %v4130_v1 = vpop.f32.mrf.mxu1 }
 0x171   :  { %v2418_v59 = vmax.f32 %v2414_v5, 0.0  ;;  %4348 = vmatprep.mubr.msk.f32.mxu0 %vm202_vm0, %v5093_v43 }
 0x172   :  { %v2526_v2 = vmax.f32 %v2522_v30, 0.0 }
 0x173   :  { %v2519_v60 = vpop.permute.xlu1 %2518  ;;  %4340 = vmatprep.subr.mxu0 %v2418_v59 }
 0x174   :  { %v2524_v61 = vadd.f32 %v5173_v33, %v2519_v60  ;;  %3504 = vperm.xlu1 %4580, %v5059_v3   ;;  %4341 = vmatpush3.msra.mxu0 %v2418_v59 }
 0x175   :  { %4342 = vmatprep.subr.mxu0 %v2417_v15 }
 0x176   :  { %v2528_v62 = vmax.f32 %v2524_v61, 0.0  ;;  %4343 = vmatpush3.msra.mxu0 %v2417_v15  ;;  %v2856_v15 = vmax.f32 %v2852_v46, 0.0 }
 0x177   :  { %v2515_v6 = vpop.permute.xlu1 %2514 }
 0x178   :  { %v2523_v10 = vadd.f32 %v5202_v31, %v2515_v6  ;;  %4582 = vset.pattern.permute.xlu1 %v4646_v63  ;;  %4351 = vmatprep.subr.mxu1 %v2528_v62  ;;  %v2634_v63 = vadd.f32 %v5173_v33, %v2629_v54  ;;  %v275_v6 = vpop.f32.mrf.mxu1 }
 0x179   :  { %3614 = vperm.xlu1 %4582, %v5059_v3   ;;  %4352 = vmatpush3.msra.mxu1 %v2528_v62  ;;  %v2947_v62 = vpop.permute.xlu0 %2946  ;;  %v276_v16 = vadd.f32 %v275_v6, %v4894_v8 }
 0x17a   :  { %v2527_v42 = vmax.f32 %v2523_v10, 0.0  ;;  %v2638_v35 = vmax.f32 %v2634_v63, 0.0  ;;  %v2961_v10 = vadd.f32 %v5179_v56, %v2947_v62  ;;  %v5276_v63 = vpop.f32.mrf.mxu0 }
 0x17c   :  { %v2401_v11 = vpop.permute.xlu1 %2400  ;;  %4353 = vmatprep.subr.mxu1 %v2527_v42  ;;  %v2965_v54 = vmax.f32 %v2961_v10, 0.0 }
 0x17d   :  { %v2412_v12 = vadd.f32 %v5194_v4, %v2401_v11  ;;  %3610 = vperm.xlu1 %4582, %v5072_v50   ;;  %4354 = vmatpush3.msra.mxu1 %v2527_v42 }
 0x17e   :  { %4355 = vmatprep.subr.mxu1 %v2526_v2 }
 0x17f   :  { %v2416_v51 = vmax.f32 %v2412_v12, 0.0  ;;  %4356 = vmatpush3.msra.mxu1 %v2526_v2  ;;  %v4141_v2 = vpop.f32.mrf.mxu1 }
 0x180   :  { %v2397_v17 = vpop.permute.xlu1 %2396 }
 0x181   :  { %v2411_v57 = vadd.f32 %v5179_v56, %v2397_v17  ;;  %4584 = vset.pattern.permute.xlu1 %v4647_v18  ;;  %4344 = vmatprep.subr.mxu0 %v2416_v51  ;;  %v2743_v18 = vadd.f32 %v5202_v31, %v2735_v55 }
 0x182   :  { %3496 = vperm.xlu1 %4584, %v5078_v32   ;;  %4345 = vmatpush3.msra.mxu0 %v2416_v51  ;;  %v395_v51 = vpop.f32.mrf.mxu1 }
 0x183   :  { %v2415_v3 = vmax.f32 %v2411_v57, 0.0 }
 0x185   :  { %v2507_v50 = vpop.permute.xlu1 %2506  ;;  %4346 = vmatprep.subr.mxu0 %v2415_v3 }
 0x186   :  { %v2521_v21 = vadd.f32 %v5179_v56, %v2507_v50  ;;  %4586 = vset.pattern.permute.xlu1 %v4616_v0  ;;  %4347 = vmatpush3.msra.mxu0 %v2415_v3  ;;  %v2747_v0 = vmax.f32 %v2743_v18, 0.0  ;;  %v3065_v3 = vpop.permute.xlu0 %3064 }
 0x187   :  { %3761 = vperm.xlu1 %4586, %v3865_v20   ;;  %4349 = vmatmul.mubr.msk.f32.vlgmr.msra.gmra.mxu0 %vm202_vm0, %v5218_v28  ;;  %v4152_v20 = vpop.f32.mrf.mxu1  ;;  %v3073_v50 = vadd.f32 %v5202_v31, %v3065_v3 }
 0x188   :  { %v2525_v22 = vmax.f32 %v2521_v21, 0.0  ;;  %4362 = vmatprep.subr.mxu0 %v2638_v35  ;;  %4370 = vmatprep.mubr.msk.f32.mxu0 %vm202_vm0, %v5093_v43  ;;  %v5282_v21 = vpop.f32.mrf.mxu0 }
 0x189   :  { %4363 = vmatpush3.msra.mxu0 %v2638_v35  ;;  %v505_v18 = vpop.f32.mrf.mxu1 }
 0x18a   :  { %v2739_v32 = vpop.permute.xlu1 %2738  ;;  %4357 = vmatprep.subr.mxu1 %v2525_v22  ;;  %v5291_v25 = vpop.f32.mrf.mxu0 }
 0x18b   :  { %v2744_v9 = vadd.f32 %v5173_v33, %v2739_v32  ;;  %4358 = vmatpush3.msra.mxu1 %v2525_v22 }
 0x18c   :  { %4360 = vmatmul.mubr.msk.f32.vlgmr.msra.gmra.mxu1 %vm202_vm0, %v5218_v28 }
 0x18d   :  { %v2748_v24 = vmax.f32 %v2744_v9, 0.0  ;;  %4381 = vmatprep.mubr.msk.f32.mxu1 %vm202_vm0, %v5093_v43  ;;  %v4163_v9 = vpop.f32.mrf.mxu1 }
 0x18f   :  { %v2625_v26 = vpop.permute.xlu1 %2624  ;;  %4373 = vmatprep.subr.mxu1 %v2748_v24 }
 0x190   :  { %v2633_v44 = vadd.f32 %v5202_v31, %v2625_v26  ;;  %4374 = vmatpush3.msra.mxu1 %v2748_v24  ;;  %v3077_v24 = vmax.f32 %v3073_v50, 0.0  ;;  %v3171_v26 = vpop.permute.xlu0 %3170 }
 0x191   :  { %4375 = vmatprep.subr.mxu1 %v2747_v0 }
 0x192   :  { %v2637_v27 = vmax.f32 %v2633_v44, 0.0  ;;  %4376 = vmatpush3.msra.mxu1 %v2747_v0 }
 0x193   :  { %v2621_v23 = vpop.permute.xlu1 %2620 }
 0x194   :  { %v2632_v48 = vadd.f32 %v5194_v4, %v2621_v23  ;;  %4364 = vmatprep.subr.mxu0 %v2637_v27  ;;  %v615_v23 = vpop.f32.mrf.mxu1 }
 0x195   :  { %4365 = vmatpush3.msra.mxu0 %v2637_v27  ;;  %v396_v27 = vadd.f32 %v395_v51, %v4894_v8 }
 0x196   :  { %v2636_v36 = vmax.f32 %v2632_v48, 0.0  ;;  %v3182_v48 = vadd.f32 %v5194_v4, %v3171_v26 }
 0x198   :  { %v2731_v38 = vpop.permute.xlu1 %2730  ;;  %4366 = vmatprep.subr.mxu0 %v2636_v36 }
 0x199   :  { %v2742_v40 = vadd.f32 %v5194_v4, %v2731_v38  ;;  %4367 = vmatpush3.msra.mxu0 %v2636_v36  ;;  %v401_v36 = vadd.f32 %v4141_v2, %v4892_v7  ;;  %v5299_v38 = vpop.f32.mrf.mxu0 }
 0x19a   :  { %4368 = vmatprep.subr.mxu0 %v2635_v37 }
 0x19b   :  { %v2746_v41 = vmax.f32 %v2742_v40, 0.0  ;;  %4369 = vmatpush3.msra.mxu0 %v2635_v37  ;;  %v506_v37 = vadd.f32 %v505_v18, %v4894_v8  ;;  %v5301_v40 = vpop.permute.xlu0 %3394 }
 0x19c   :  { %v2727_v45 = vpop.permute.xlu1 %2726  ;;  %4371 = vmatmul.mubr.msk.f32.vlgmr.msra.gmra.mxu0 %vm202_vm0, %v5218_v28 }
 0x19d   :  { %v2741_v19 = vadd.f32 %v5179_v56, %v2727_v45  ;;  %4377 = vmatprep.subr.mxu1 %v2746_v41  ;;  %4392 = vmatprep.mubr.msk.f32.mxu0 %vm202_vm0, %v5093_v43  ;;  %v404_v45 = vmax.f32 %v396_v27, 0.0  ;;  %v514_v46 = vmax.f32 %v506_v37, 0.0 }
 0x19e   :  { %4378 = vmatpush3.msra.mxu1 %v2746_v41  ;;  %v281_v41 = vadd.f32 %v4130_v1, %v4892_v7 }
 0x19f   :  { %v2745_v49 = vmax.f32 %v2741_v19, 0.0  ;;  %v511_v19 = vadd.f32 %v4152_v20, %v4892_v7  ;;  %v406_v1 = vmul.f32 %v404_v45, %v4900_v14  ;;  %v3289_v6 = vpop.permute.xlu0 %3288  ;;  %v516_v2 = vmul.f32 %v514_v46, %v4900_v14 }
 0x1a1   :  { %v2849_v52 = vpop.permute.xlu1 %2848  ;;  %4379 = vmatprep.subr.mxu1 %v2745_v49 }
 0x1a2   :  { %v2854_v53 = vadd.f32 %v5173_v33, %v2849_v52  ;;  %4380 = vmatpush3.msra.mxu1 %v2745_v49  ;;  %v616_v49 = vadd.f32 %v615_v23, %v4894_v8  ;;  %v284_v52 = vmax.f32 %v276_v16, 0.0 }
 0x1a3   :  { %4382 = vmatmul.mubr.msk.f32.vlgmr.msra.gmra.mxu1 %vm202_vm0, %v5218_v28  ;;  %4395 = vmatprep.subr.mxu1 %v2968_v47 }
 0x1a4   :  { %v2858_v58 = vmax.f32 %v2854_v53, 0.0  ;;  %4396 = vmatpush3.msra.mxu1 %v2968_v47  ;;  %4403 = vmatprep.mubr.msk.f32.mxu1 %vm202_vm0, %v5093_v43  ;;  %v3186_v53 = vmax.f32 %v3182_v48, 0.0  ;;  %v624_v62 = vmax.f32 %v616_v49, 0.0  ;;  %v296_v10 = vmul.f32 %v4900_v14, %v284_v52 }
 0x1a5   :  { %v2845_v5 = vpop.permute.xlu1 %2844  ;;  %v3403_v52 = vadd.f32 %v5202_v31, %v5301_v40 }
 0x1a6   :  { %v2853_v59 = vadd.f32 %v5202_v31, %v2845_v5  ;;  %4384 = vmatprep.subr.mxu0 %v2858_v58  ;;  %v621_v5 = vadd.f32 %v4163_v9, %v4892_v7 }
 0x1a7   :  { %4385 = vmatpush3.msra.mxu0 %v2858_v58  ;;  %v405_v58 = vmax.f32 %v401_v36, 0.0 }
 0x1a8   :  { %v2857_v60 = vmax.f32 %v2853_v59, 0.0  ;;  %v4174_v59 = vpop.f32.mrf.mxu0 }
 0x1a9   :  { %v731_v23 = vadd.f32 %v4174_v59, %v4892_v7 }
 0x1aa   :  { %v2955_v61 = vpop.permute.xlu1 %2954  ;;  %4386 = vmatprep.subr.mxu0 %v2857_v60 }
 0x1ab   :  { %v2963_v30 = vadd.f32 %v5202_v31, %v2955_v61  ;;  %4387 = vmatpush3.msra.mxu0 %v2857_v60  ;;  %v285_v60 = vmax.f32 %v281_v41, 0.0  ;;  %v515_v61 = vmax.f32 %v511_v19, 0.0  ;;  %v735_v46 = vmax.f32 %v731_v23, 0.0 }
 0x1ac   :  { %4388 = vmatprep.subr.mxu0 %v2856_v15 }
 0x1ad   :  { %v2967_v55 = vmax.f32 %v2963_v30, 0.0  ;;  %4389 = vmatpush3.msra.mxu0 %v2856_v15  ;;  %v517_v20 = vmul.f32 %v515_v61, %v4897_v13 }
 0x1ae   :  { %v2951_v42 = vpop.permute.xlu1 %2950 }
 0x1af   :  { %v2962_v11 = vadd.f32 %v5194_v4, %v2951_v42  ;;  %4397 = vmatprep.subr.mxu1 %v2967_v55  ;;  %v407_v42 = vmul.f32 %v405_v58, %v4897_v13  ;;  %v518_v9 = vadd.f32 %v517_v20, %v516_v2  ;;  %v737_v2 = vmul.f32 %v735_v46, %v4897_v13 }
 0x1b0   :  { %4398 = vmatpush3.msra.mxu1 %v2967_v55 }
 0x1b1   :  { %v2966_v12 = vmax.f32 %v2962_v11, 0.0  ;;  %v625_v11 = vmax.f32 %v621_v5, 0.0  ;;  %v408_v3 = vadd.f32 %v407_v42, %v406_v1  ;;  %v519_v41 = vrot.slane %v518_v9, 4 }
 0x1b3   :  { %v2837_v17 = vpop.permute.xlu1 %2836  ;;  %4399 = vmatprep.subr.mxu1 %v2966_v12  ;;  %v520_v1 = vadd.f32 %v519_v41, %v518_v9 }
 0x1b4   :  { %v2851_v57 = vadd.f32 %v5179_v56, %v2837_v17  ;;  %4400 = vmatpush3.msra.mxu1 %v2966_v12  ;;  %v725_v12 = vpop.f32.mrf.mxu0  ;;  %v3294_v17 = vadd.f32 %v5173_v33, %v3289_v6 }
 0x1b5   :  { %4401 = vmatprep.subr.mxu1 %v2965_v54  ;;  %v726_v26 = vadd.f32 %v725_v12, %v4894_v8  ;;  %v521_v20 = vrot.slane %v520_v1, 2 }
 0x1b6   :  { %v2855_v35 = vmax.f32 %v2851_v57, 0.0  ;;  %4402 = vmatpush3.msra.mxu1 %v2965_v54  ;;  %v4185_v54 = vpop.f32.mrf.mxu1  ;;  %v297_v57 = vmul.f32 %v4897_v13, %v285_v60  ;;  %v4196_v50 = vpop.f32.mrf.mxu0  ;;  %v3298_v27 = vmax.f32 %v3294_v17, 0.0 }
 0x1b7   :  { %4404 = vmatmul.mubr.msk.f32.vlgmr.msra.gmra.mxu1 %vm202_vm0, %v5218_v28  ;;  %v734_v19 = vmax.f32 %v726_v26, 0.0  ;;  %v841_v49 = vadd.f32 %v4185_v54, %v4892_v7  ;;  %v522_v23 = vadd.f32 %v521_v20, %v520_v1 }
 0x1b8   :  { %v3069_v22 = vpop.permute.xlu1 %3068  ;;  %4390 = vmatprep.subr.mxu0 %v2855_v35  ;;  %4425 = vmatprep.mubr.msk.f32.mxu1 %vm202_vm0, %v5093_v43  ;;  %v945_v48 = vpop.f32.mrf.mxu0 }
 0x1b9   :  { %v3074_v32 = vadd.f32 %v5173_v33, %v3069_v22  ;;  %4391 = vmatpush3.msra.mxu0 %v2855_v35  ;;  %v626_v35 = vmul.f32 %v624_v62, %v4900_v14  ;;  %v845_v40 = vmax.f32 %v841_v49, 0.0 }
 0x1ba   :  { %4393 = vmatmul.mubr.msk.f32.vlgmr.msra.gmra.mxu0 %vm202_vm0, %v5218_v28 }
 0x1bb   :  { %v3078_v0 = vmax.f32 %v3074_v32, 0.0  ;;  %4414 = vmatprep.mubr.msk.f32.mxu0 %vm202_vm0, %v5093_v43  ;;  %v298_v32 = vadd.f32 %v297_v57, %v296_v10  ;;  %v3277_v57 = vpop.permute.xlu0 %3276 }
 0x1bd   :  { %v3179_v44 = vpop.permute.xlu1 %3178  ;;  %4406 = vmatprep.subr.mxu0 %v3078_v0 }
 0x1be   :  { %v3184_v29 = vadd.f32 %v5173_v33, %v3179_v44  ;;  %4407 = vmatpush3.msra.mxu0 %v3078_v0  ;;  %v627_v0 = vmul.f32 %v625_v11, %v4897_v13  ;;  %v3407_v11 = vmax.f32 %v3403_v52, 0.0 }
 0x1bf   :  { %4408 = vmatprep.subr.mxu0 %v3077_v24 }
 0x1c0   :  { %v3188_v39 = vmax.f32 %v3184_v29, 0.0  ;;  %4409 = vmatpush3.msra.mxu0 %v3077_v24  ;;  %v835_v24 = vpop.f32.mrf.mxu1  ;;  %v409_v29 = vrot.slane %v408_v3, 4  ;;  %v628_v16 = vadd.f32 %v627_v0, %v626_v35 }
 0x1c1   :  { %v3175_v34 = vpop.permute.xlu1 %3174  ;;  %v836_v36 = vadd.f32 %v835_v24, %v4894_v8  ;;  %v5344_v24 = vpop.f32.mrf.mxu0 }
 0x1c2   :  { %v3183_v47 = vadd.f32 %v5202_v31, %v3175_v34  ;;  %4417 = vmatprep.subr.mxu1 %v3188_v39  ;;  %v4207_v34 = vpop.f32.mrf.mxu1  ;;  %v629_v58 = vrot.slane %v628_v16, 4 }
 0x1c3   :  { %4418 = vmatpush3.msra.mxu1 %v3188_v39  ;;  %v299_v39 = vrot.slane %v298_v32, 4  ;;  %v844_v59 = vmax.f32 %v836_v36, 0.0  ;;  %v3291_v36 = vadd.f32 %v5179_v56, %v3277_v57  ;;  %v1165_v49 = vpop.f32.mrf.mxu0 }
 0x1c4   :  { %v3187_v15 = vmax.f32 %v3183_v47, 0.0  ;;  %v946_v47 = vadd.f32 %v945_v48, %v4894_v8  ;;  %v1055_v61 = vpop.f32.mrf.mxu1  ;;  %v630_v42 = vadd.f32 %v629_v58, %v628_v16 }
 0x1c5   :  { %v300_v60 = vadd.f32 %v299_v39, %v298_v32  ;;  %v846_v12 = vmul.f32 %v844_v59, %v4900_v14  ;;  %v1056_v54 = vadd.f32 %v1055_v61, %v4894_v8 }
 0x1c6   :  { %v3061_v30 = vpop.permute.xlu1 %3060  ;;  %4419 = vmatprep.subr.mxu1 %v3187_v15  ;;  %v954_v6 = vmax.f32 %v946_v47, 0.0  ;;  %v631_v0 = vrot.slane %v630_v42, 2  ;;  %v4229_v47 = vpop.f32.mrf.mxu1 }
 0x1c7   :  { %v3072_v55 = vadd.f32 %v5194_v4, %v3061_v30  ;;  %4420 = vmatpush3.msra.mxu1 %v3187_v15  ;;  %v951_v15 = vadd.f32 %v4196_v50, %v4892_v7  ;;  %v736_v30 = vmul.f32 %v734_v19, %v4900_v14  ;;  %v847_v50 = vmul.f32 %v845_v40, %v4897_v13 }
 0x1c8   :  { %4421 = vmatprep.subr.mxu1 %v3186_v53  ;;  %v632_v19 = vadd.f32 %v631_v0, %v630_v42  ;;  %v5351_v59 = vpop.f32.mrf.mxu0 }
 0x1c9   :  { %v3076_v51 = vmax.f32 %v3072_v55, 0.0  ;;  %4422 = vmatpush3.msra.mxu1 %v3186_v53  ;;  %v410_v53 = vadd.f32 %v409_v29, %v408_v3  ;;  %v301_v3 = vrot.slane %v300_v60, 2  ;;  %v738_v35 = vadd.f32 %v737_v2, %v736_v30  ;;  %v3619_v29 = vpop.permute.xlu0 %3618 }
 0x1ca   :  { %v3057_v22 = vpop.permute.xlu1 %3056  ;;  %v3624_v57 = vadd.f32 %v5173_v33, %v3619_v29  ;;  %v4614_v29 = vld [vmem:[%s5543_s4] sm:$0xff] }
 0x1cb   :  { %v3071_v18 = vadd.f32 %v5179_v56, %v3057_v22  ;;  %4410 = vmatprep.subr.mxu0 %v3076_v51  ;;  %v411_v10 = vrot.slane %v410_v53, 2  ;;  %v1061_v22 = vadd.f32 %v4207_v34, %v4892_v7  ;;  %v302_v16 = vadd.f32 %v301_v3, %v300_v60 }
 0x1cc   :  { %4411 = vmatpush3.msra.mxu0 %v3076_v51  ;;  %v955_v51 = vmax.f32 %v951_v15, 0.0  ;;  %v3295_v60 = vmax.f32 %v3291_v36, 0.0 }
 0x1cd   :  { %v3075_v44 = vmax.f32 %v3071_v18, 0.0  ;;  %v956_v18 = vmul.f32 %v954_v6, %v4900_v14  ;;  %v412_v9 = vadd.f32 %v411_v10, %v410_v53  ;;  %v1065_v39 = vmax.f32 %v1061_v22, 0.0  ;;  %v3501_v30 = vpop.permute.xlu0 %3500 }
 0x1ce   :  { %v303_v46 = vrot.slane %v302_v16, 1  ;;  %v633_v6 = vrot.slane %v632_v19, 1  ;;  %v5357_v3 = vadd.f32 %v5194_v4, %v3501_v30 }
 0x1cf   :  { %v3167_v37 = vpop.permute.xlu1 %3166  ;;  %4412 = vmatprep.subr.mxu0 %v3075_v44  ;;  %v1067_v61 = vmul.f32 %v1065_v39, %v4897_v13 }
 0x1d0   :  { %v3181_v45 = vadd.f32 %v5179_v56, %v3167_v37  ;;  %4413 = vmatpush3.msra.mxu0 %v3075_v44  ;;  %v848_v44 = vadd.f32 %v847_v50, %v846_v12  ;;  %v739_v37 = vrot.slane %v738_v35, 4  ;;  %v304_v12 = vadd.f32 %v303_v46, %v302_v16 }
 0x1d1   :  { %4415 = vmatmul.mubr.msk.f32.vlgmr.msra.gmra.mxu0 %vm202_vm0, %v5218_v28  ;;  %4428 = vmatprep.subr.mxu0 %v3298_v27  ;;  %v3516_v36 = vmax.f32 %v5357_v3, 0.0 }
 0x1d2   :  { %v3185_v5 = vmax.f32 %v3181_v45, 0.0  ;;  %4429 = vmatpush3.msra.mxu0 %v3298_v27  ;;  %4436 = vmatprep.mubr.msk.f32.mxu0 %vm202_vm0, %v5093_v43  ;;  %v957_v27 = vmul.f32 %v955_v51, %v4897_v13  ;;  %v413_v45 = vrot.slane %v412_v9, 1  ;;  %v849_v53 = vrot.slane %v848_v44, 4  ;;  %v1385_v51 = vpop.f32.mrf.mxu0 }
 0x1d3   :  { %v740_v1 = vadd.f32 %v739_v37, %v738_v35 }
 0x1d4   :  { %v3399_v62 = vpop.permute.xlu1 %3398  ;;  %4423 = vmatprep.subr.mxu1 %v3185_v5  ;;  %v958_v41 = vadd.f32 %v957_v27, %v956_v18  ;;  %v414_v40 = vadd.f32 %v413_v45, %v412_v9  ;;  %v850_v42 = vadd.f32 %v849_v53, %v848_v44  ;;  %v634_v18 = vadd.f32 %v633_v6, %v632_v19  ;;  %v3607_v27 = vpop.permute.xlu0 %3606 }
 0x1d5   :  { %v3404_v55 = vadd.f32 %v5173_v33, %v3399_v62  ;;  %4424 = vmatpush3.msra.mxu1 %v3185_v5  ;;  %v523_v5 = vrot.slane %v522_v23, 1  ;;  %v741_v20 = vrot.slane %v740_v1, 2  ;;  %v1166_v19 = vadd.f32 %v1165_v49, %v4894_v8 }
 0x1d6   :  { %4426 = vmatmul.mubr.msk.f32.vlgmr.msra.gmra.mxu1 %vm202_vm0, %v5218_v28  ;;  %v959_v62 = vrot.slane %v958_v41, 4  ;;  %v3716_v22 = vsel %vm3715_vm1, %v304_v12, %v414_v40  ;;  %v851_v0 = vrot.slane %v850_v42, 2  ;;  %v1391_v49 = vadd.f32 %v5351_v59, %v4892_v7 }
 0x1d7   :  { %v3408_v17 = vmax.f32 %v3404_v55, 0.0  ;;  %4447 = vmatprep.mubr.msk.f32.mxu1 %vm202_vm0, %v5093_v43  ;;  %v1064_v43 = vmax.f32 %v1056_v54, 0.0  ;;  %v1275_v55 = vpop.f32.mrf.mxu1  ;;  %v524_v54 = vadd.f32 %v523_v5, %v522_v23  ;;  %v742_v37 = vadd.f32 %v741_v20, %v740_v1 }
 0x1d8   :  { %v960_v35 = vadd.f32 %v959_v62, %v958_v41  ;;  %v1276_v44 = vadd.f32 %v1275_v55, %v4894_v8  ;;  %v1281_v41 = vadd.f32 %v4229_v47, %v4892_v7  ;;  %v852_v5 = vadd.f32 %v851_v0, %v850_v42 }
 0x1d9   :  { %v3285_v32 = vpop.permute.xlu1 %3284  ;;  %4439 = vmatprep.subr.mxu1 %v3408_v17  ;;  %v1066_v58 = vmul.f32 %v1064_v43, %v4900_v14  ;;  %v3718_v16 = vsel %vm3717_vm2, %v3716_v22, %v524_v54  ;;  %v1171_v47 = vadd.f32 %v5344_v24, %v4892_v7  ;;  %v743_v30 = vrot.slane %v742_v37, 1 }
 0x1da   :  { %v3293_v26 = vadd.f32 %v5202_v31, %v3285_v32  ;;  %4440 = vmatpush3.msra.mxu1 %v3408_v17  ;;  %v4251_v17 = vpop.f32.mrf.mxu1  ;;  %v961_v39 = vrot.slane %v960_v35, 2  ;;  %v5377_v46 = vsel %vm3719_vm3, %v3718_v16, %v634_v18  ;;  %v1285_v6 = vmax.f32 %v1281_v41, 0.0 }
 0x1db   :  { %4441 = vmatprep.subr.mxu1 %v3407_v11  ;;  %v1068_v2 = vadd.f32 %v1067_v61, %v1066_v58  ;;  %v5374_v58 = vadd.f32 %v5179_v56, %v3607_v27  ;;  %v1501_v55 = vadd.f32 %v4251_v17, %v4892_v7  ;;  %v1175_v17 = vmax.f32 %v1171_v47, 0.0 }
 0x1dc   :  { %v3297_v48 = vmax.f32 %v3293_v26, 0.0  ;;  %4442 = vmatpush3.msra.mxu1 %v3407_v11  ;;  %v1495_v23 = vpop.f32.mrf.mxu1  ;;  %v962_v40 = vadd.f32 %v961_v39, %v960_v35  ;;  %v1287_v22 = vmul.f32 %v1285_v6, %v4897_v13 }
 0x1dd   :  { %v3281_v34 = vpop.permute.xlu1 %3280  ;;  %v1069_v26 = vrot.slane %v1068_v2, 4  ;;  %v1496_v1 = vadd.f32 %v1495_v23, %v4894_v8  ;;  %v1505_v18 = vmax.f32 %v1501_v55, 0.0  ;;  %v3625_v3 = vmax.f32 %v5374_v58, 0.0 }
 0x1de   :  { %v3292_v52 = vadd.f32 %v5194_v4, %v3281_v34  ;;  %4430 = vmatprep.subr.mxu0 %v3297_v48 }
 0x1df   :  { %4431 = vmatpush3.msra.mxu0 %v3297_v48  ;;  %v3628_v48 = vmax.f32 %v3624_v57, 0.0  ;;  %v1504_v54 = vmax.f32 %v1496_v1, 0.0  ;;  %v1395_v57 = vmax.f32 %v1391_v49, 0.0 }
 0x1e0   :  { %v3296_v15 = vmax.f32 %v3292_v52, 0.0  ;;  %v1386_v52 = vadd.f32 %v1385_v51, %v4894_v8 }
 0x1e1   :  { %v1397_v39 = vmul.f32 %v1395_v57, %v4897_v13 }
 0x1e2   :  { %v3391_v10 = vpop.permute.xlu1 %3390  ;;  %4432 = vmatprep.subr.mxu0 %v3296_v15  ;;  %v1394_v24 = vmax.f32 %v1386_v52, 0.0 }
 0x1e3   :  { %v3402_v11 = vadd.f32 %v5194_v4, %v3391_v10  ;;  %4433 = vmatpush3.msra.mxu0 %v3296_v15  ;;  %v4273_v53 = vpop.f32.mrf.mxu1  ;;  %v1070_v15 = vadd.f32 %v1069_v26, %v1068_v2  ;;  %v1174_v10 = vmax.f32 %v1166_v19, 0.0  ;;  %v1507_v19 = vmul.f32 %v1505_v18, %v4897_v13 }
 0x1e4   :  { %4434 = vmatprep.subr.mxu0 %v3295_v60  ;;  %v1396_v0 = vmul.f32 %v1394_v24, %v4900_v14  ;;  %v1721_v16 = vadd.f32 %v4273_v53, %v4892_v7 }
 0x1e5   :  { %v3406_v50 = vmax.f32 %v3402_v11, 0.0  ;;  %4435 = vmatpush3.msra.mxu0 %v3295_v60  ;;  %v1284_v60 = vmax.f32 %v1276_v44, 0.0  ;;  %v1715_v42 = vpop.f32.mrf.mxu1  ;;  %v1071_v11 = vrot.slane %v1070_v15, 2 }
 0x1e6   :  { %v3387_v32 = vpop.permute.xlu1 %3386  ;;  %v4262_v9 = vpop.f32.mrf.mxu0  ;;  %4437 = vmatmul.mubr.msk.f32.vlgmr.msra.gmra.mxu0 %vm202_vm0, %v5218_v28  ;;  %v1725_v49 = vmax.f32 %v1721_v16, 0.0 }
 0x1e7   :  { %v3401_v43 = vadd.f32 %v5179_v56, %v3387_v32  ;;  %4443 = vmatprep.subr.mxu1 %v3406_v50  ;;  %4458 = vmatprep.mubr.msk.f32.mxu0 %vm202_vm0, %v4614_v29  ;;  %v1611_v59 = vadd.f32 %v4262_v9, %v4892_v7  ;;  %v1286_v12 = vmul.f32 %v1284_v60, %v4900_v14 }
 0x1e8   :  { %4444 = vmatpush3.msra.mxu1 %v3406_v50  ;;  %v1605_v45 = vpop.f32.mrf.mxu0  ;;  %v963_v50 = vrot.slane %v962_v40, 1  ;;  %v1716_v32 = vadd.f32 %v1715_v42, %v4894_v8  ;;  %v1176_v9 = vmul.f32 %v1174_v10, %v4900_v14  ;;  %v1072_v23 = vadd.f32 %v1071_v11, %v1070_v15 }
 0x1e9   :  { %v3405_v34 = vmax.f32 %v3401_v43, 0.0  ;;  %v1606_v62 = vadd.f32 %v1605_v45, %v4894_v8  ;;  %v1615_v26 = vmax.f32 %v1611_v59, 0.0  ;;  %v744_v43 = vadd.f32 %v743_v30, %v742_v37 }
 0x1ea   :  { %v1288_v27 = vadd.f32 %v1287_v22, %v1286_v12  ;;  %v1724_v52 = vmax.f32 %v1716_v32, 0.0  ;;  %v964_v60 = vadd.f32 %v963_v50, %v962_v40 }
 0x1eb   :  { %v3509_v61 = vpop.permute.xlu1 %3508  ;;  %4445 = vmatprep.subr.mxu1 %v3405_v34  ;;  %v1614_v20 = vmax.f32 %v1606_v62, 0.0  ;;  %v1617_v53 = vmul.f32 %v1615_v26, %v4897_v13 }
 0x1ec   :  { %v3514_v56 = vadd.f32 %v5173_v33, %v3509_v61  ;;  %4446 = vmatpush3.msra.mxu1 %v3405_v34  ;;  %v853_v33 = vrot.slane %v852_v5, 1  ;;  %v1398_v61 = vadd.f32 %v1397_v39, %v1396_v0  ;;  %v1289_v15 = vrot.slane %v1288_v27, 4 }
 0x1ed   :  { %4448 = vmatmul.mubr.msk.f32.vlgmr.msra.gmra.mxu1 %vm202_vm0, %v5218_v28  ;;  %4461 = vmatprep.subr.mxu1 %v3628_v48  ;;  %v1616_v41 = vmul.f32 %v1614_v20, %v4900_v14  ;;  %v1726_v40 = vmul.f32 %v1724_v52, %v4900_v14 }
 0x1ee   :  { %v3518_v2 = vmax.f32 %v3514_v56, 0.0  ;;  %4462 = vmatpush3.msra.mxu1 %v3628_v48  ;;  %4469 = vmatprep.mubr.msk.f32.mxu1 %vm202_vm0, %v4614_v29  ;;  %v1506_v29 = vmul.f32 %v1504_v54, %v4900_v14  ;;  %v1177_v48 = vmul.f32 %v1175_v17, %v4897_v13  ;;  %v854_v45 = vadd.f32 %v853_v33, %v852_v5  ;;  %v4615_v17 = vld [vmem:[%s5547_s3] sm:$0xff] }
 0x1ef   :  { %v3505_v51 = vpop.permute.xlu1 %3504  ;;  %v1073_v5 = vrot.slane %v1072_v23, 1  ;;  %v1618_v56 = vadd.f32 %v1617_v53, %v1616_v41  ;;  %v1399_v24 = vrot.slane %v1398_v61, 4  ;;  %v1290_v42 = vadd.f32 %v1289_v15, %v1288_v27 }
 0x1f0   :  { %v3513_v35 = vadd.f32 %v5202_v31, %v3505_v51  ;;  %4450 = vmatprep.subr.mxu0 %v3518_v2  ;;  %v1178_v1 = vadd.f32 %v1177_v48, %v1176_v9  ;;  %v1508_v47 = vadd.f32 %v1507_v19, %v1506_v29 }
 0x1f1   :  { %4451 = vmatpush3.msra.mxu0 %v3518_v2  ;;  %v1727_v2 = vmul.f32 %v1725_v49, %v4897_v13  ;;  %v1619_v33 = vrot.slane %v1618_v56, 4  ;;  %v1074_v11 = vadd.f32 %v1073_v5, %v1072_v23  ;;  %v1400_v51 = vadd.f32 %v1399_v24, %v1398_v61 }
 0x1f2   :  { %v3517_v44 = vmax.f32 %v3513_v35, 0.0  ;;  %v1179_v10 = vrot.slane %v1178_v1, 4  ;;  %v1509_v59 = vrot.slane %v1508_v47, 4  ;;  %v1291_v50 = vrot.slane %v1290_v42, 2 }
 0x1f3   :  { %v1728_v12 = vadd.f32 %v1727_v2, %v1726_v40  ;;  %v1620_v32 = vadd.f32 %v1619_v33, %v1618_v56  ;;  %v1401_v27 = vrot.slane %v1400_v51, 2 }
 0x1f4   :  { %v3615_v34 = vpop.permute.xlu1 %3614  ;;  %4452 = vmatprep.subr.mxu0 %v3517_v44  ;;  %v1180_v35 = vadd.f32 %v1179_v10, %v1178_v1  ;;  %v1510_v22 = vadd.f32 %v1509_v59, %v1508_v47 }
 0x1f5   :  { %v3623_v37 = vadd.f32 %v5202_v31, %v3615_v34  ;;  %4453 = vmatpush3.msra.mxu0 %v3517_v44  ;;  %v3722_v31 = vsel %vm3721_vm4, %v5377_v46, %v744_v43  ;;  %v1729_v44 = vrot.slane %v1728_v12, 4  ;;  %v1621_v19 = vrot.slane %v1620_v32, 2 }
 0x1f6   :  { %4454 = vmatprep.subr.mxu0 %v3516_v36  ;;  %v3724_v55 = vsel %vm3723_vm5, %v3722_v31, %v854_v45  ;;  %v1181_v48 = vrot.slane %v1180_v35, 2  ;;  %v1511_v39 = vrot.slane %v1510_v22, 2  ;;  %v1292_v45 = vadd.f32 %v1291_v50, %v1290_v42 }
 0x1f7   :  { %v3627_v62 = vmax.f32 %v3623_v37, 0.0  ;;  %4455 = vmatpush3.msra.mxu0 %v3516_v36  ;;  %v3726_v36 = vsel %vm3725_vm6, %v3724_v55, %v964_v60  ;;  %v1730_v60 = vadd.f32 %v1729_v44, %v1728_v12  ;;  %v1402_v15 = vadd.f32 %v1401_v27, %v1400_v51 }
 0x1f8   :  { %v3611_v30 = vpop.permute.xlu1 %3610  ;;  %v3728_v20 = vsel %vm3727_vm7, %v3726_v36, %v1074_v11  ;;  %v1182_v49 = vadd.f32 %v1181_v48, %v1180_v35  ;;  %v1622_v56 = vadd.f32 %v1621_v19, %v1620_v32  ;;  %v1293_v31 = vrot.slane %v1292_v45, 1 }
 0x1f9   :  { %v3622_v6 = vadd.f32 %v5194_v4, %v3611_v30  ;;  %4463 = vmatprep.subr.mxu1 %v3627_v62  ;;  %v3750_v43 = vadd.f32 %v3728_v20, %v5282_v21  ;;  %v1731_v40 = vrot.slane %v1730_v60, 2 }
 0x1fa   :  { %4464 = vmatpush3.msra.mxu1 %v3627_v62  ;;  %v1512_v62 = vadd.f32 %v1511_v39, %v1510_v22  ;;  %v1183_v24 = vrot.slane %v1182_v49, 1  ;;  %v1623_v42 = vrot.slane %v1622_v56, 1  ;;  %v1294_v2 = vadd.f32 %v1293_v31, %v1292_v45 }
 0x1fb   :  { %v3626_v46 = vmax.f32 %v3622_v6, 0.0 }
 0x1fd   :  { %v3497_v4 = vpop.permute.xlu1 %3496  ;;  %v4284_v54 = vpop.f32.mrf.mxu0  ;;  %4465 = vmatprep.subr.mxu1 %v3626_v46 }
 0x1fe   :  { %v3511_v57 = vadd.f32 %v4615_v17, %v3497_v4  ;;  %v1831_v58 = vadd.f32 %v4284_v54, %v4892_v7  ;;  %4466 = vmatpush3.msra.mxu1 %v3626_v46  ;;  %v1732_v46 = vadd.f32 %v1731_v40, %v1730_v60  ;;  %v1184_v4 = vadd.f32 %v1183_v24, %v1182_v49 }
 0x1ff   :  { %v1825_v18 = vpop.f32.mrf.mxu0  ;;  %4467 = vmatprep.subr.mxu1 %v3625_v3  ;;  %v1624_v17 = vadd.f32 %v1623_v42, %v1622_v56 }
 0x200   :  { %v3515_v9 = vmax.f32 %v3511_v57, 0.0  ;;  %v1835_v0 = vmax.f32 %v1831_v58, 0.0  ;;  %v1826_v26 = vadd.f32 %v1825_v18, %v4894_v8  ;;  %4468 = vmatpush3.msra.mxu1 %v3625_v3  ;;  %v1513_v3 = vrot.slane %v1512_v62, 1 }
 0x201   :  { %4470 = vmatmul.mubr.msk.f32.vlgmr.msra.gmra.mxu1 %vm202_vm0, %v5218_v28  ;;  %v3729_v58 = vsel %vm3715_vm1, %v1184_v4, %v1294_v2  ;;  %v1733_v20 = vrot.slane %v1732_v46, 1 }
 0x202   :  { %v1834_v29 = vmax.f32 %v1826_v26, 0.0  ;;  %v5426_v16 = vpop.permute.xlu1 %3761  ;;  %v4295_v23 = vpop.f32.mrf.mxu1  ;;  %4456 = vmatprep.subr.mxu0 %v3515_v9  ;;  %v1837_v52 = vmul.f32 %v1835_v0, %v4897_v13  ;;  %v1514_v54 = vadd.f32 %v1513_v3, %v1512_v62 }
 0x203   :  { %v3764_v41 = vadd.f32 %v5426_v16, %v3750_v43  ;;  %v1941_v34 = vadd.f32 %v4295_v23, %v4892_v7  ;;  %4457 = vmatpush3.msra.mxu0 %v3515_v9  ;;  %v1734_v26 = vadd.f32 %v1733_v20, %v1732_v46 }
 0x204   :  { %v1836_v37 = vmul.f32 %v1834_v29, %v4900_v14  ;;  %v1935_v21 = vpop.f32.mrf.mxu1  ;;  %4459 = vmatmul.mubr.msk.f32.vlgmr.msra.gmra.mxu0 %vm202_vm0, %v5218_v28  ;;  %v1403_v28 = vrot.slane %v1402_v15, 1 }
 0x205   :  { %v3866_v1 = vmul.f32 -1.442695, %v3764_v41  ;;  %v1945_v61 = vmax.f32 %v1941_v34, 0.0  ;;  %v1936_v53 = vadd.f32 %v1935_v21, %v4894_v8 }
 0x206   :  { %v1838_v47 = vadd.f32 %v1837_v52, %v1836_v37  ;;  %v1404_v11 = vadd.f32 %v1403_v28, %v1402_v15 }
 0x207   :  { %4588 = vpow2.f32 %v3866_v1  ;;  %v1944_v5 = vmax.f32 %v1936_v53, 0.0  ;;  %v1947_v6 = vmul.f32 %v1945_v61, %v4897_v13 }
 0x208   :  { %v1839_v30 = vrot.slane %v1838_v47, 4  ;;  %v3730_v50 = vsel %vm3717_vm2, %v3729_v58, %v1404_v11 }
 0x209   :  { %v1946_v55 = vmul.f32 %v1944_v5, %v4900_v14  ;;  %v3731_v22 = vsel %vm3719_vm3, %v3730_v50, %v1514_v54 }
 0x20a   :  { %v1840_v10 = vadd.f32 %v1839_v30, %v1838_v47  ;;  %v3732_v9 = vsel %vm3721_vm4, %v3731_v22, %v1624_v17 }
 0x20b   :  { %v1948_v36 = vadd.f32 %v1947_v6, %v1946_v55  ;;  %v3733_v27 = vsel %vm3723_vm5, %v3732_v9, %v1734_v26 }
 0x20c   :  { %v1841_v59 = vrot.slane %v1840_v10, 2 }
 0x20d   :  { %v1949_v33 = vrot.slane %v1948_v36, 4 }
 0x20e   :  { %v1842_v12 = vadd.f32 %v1841_v59, %v1840_v10 }
 0x20f   :  { %v1950_v51 = vadd.f32 %v1949_v33, %v1948_v36 }
 0x210   :  { %v1843_v57 = vrot.slane %v1842_v12, 1 }
 0x211   :  { %v1951_v35 = vrot.slane %v1950_v51, 2 }
 0x212   :  { %v1844_v0 = vadd.f32 %v1843_v57, %v1842_v12  ;;  %v4306_v37 = vpop.f32.mrf.mxu0 }
 0x213   :  { %v1952_v18 = vadd.f32 %v1951_v35, %v1950_v51  ;;  %v2051_v55 = vadd.f32 %v4306_v37, %v4892_v7 }
 0x214   :  { %v4589_v32 = vpop.eup %4588  ;;  %v3734_v23 = vsel %vm3725_vm6, %v3733_v27, %v1844_v0  ;;  %v2045_v60 = vpop.f32.mrf.mxu0 }
 0x215   :  { %v3780_v44 = vadd.f32 1.0, %v4589_v32  ;;  %v1953_v43 = vrot.slane %v1952_v18, 1  ;;  %v2046_v56 = vadd.f32 %v2045_v60, %v4894_v8  ;;  %v2055_v11 = vmax.f32 %v2051_v55, 0.0 }
 0x217   :  { %4590 = vrcp.f32 %v3780_v44  ;;  %v1954_v29 = vadd.f32 %v1953_v43, %v1952_v18  ;;  %v2054_v36 = vmax.f32 %v2046_v56, 0.0  ;;  %v2057_v18 = vmul.f32 %v2055_v11, %v4897_v13 }
 0x219   :  { %v3735_v48 = vsel %vm3727_vm7, %v3734_v23, %v1954_v29  ;;  %v2056_v57 = vmul.f32 %v2054_v36, %v4900_v14 }
 0x21a   :  { %v3751_v39 = vadd.f32 %v5276_v63, %v3735_v48  ;;  %v4317_v63 = vpop.f32.mrf.mxu1 }
 0x21b   :  { %v2161_v30 = vadd.f32 %v4317_v63, %v4892_v7  ;;  %v2058_v43 = vadd.f32 %v2057_v18, %v2056_v57 }
 0x21c   :  { %v3765_v41 = vadd.f32 %v5426_v16, %v3751_v39  ;;  %v2155_v61 = vpop.f32.mrf.mxu1 }
 0x21d   :  { %v2156_v49 = vadd.f32 %v2155_v61, %v4894_v8  ;;  %v2165_v42 = vmax.f32 %v2161_v30, 0.0 }
 0x21e   :  { %v3867_v34 = vmul.f32 -1.442695, %v3765_v41 }
 0x21f   :  { %v2164_v28 = vmax.f32 %v2156_v49, 0.0  ;;  %v2167_v58 = vmul.f32 %v2165_v42, %v4897_v13 }
 0x220   :  { %4592 = vpow2.f32 %v3867_v34 }
 0x221   :  { %v2166_v12 = vmul.f32 %v2164_v28, %v4900_v14 }
 0x223   :  { %v2168_v32 = vadd.f32 %v2167_v58, %v2166_v12 }
 0x224   :  { %v4591_v45 = vpop.eup %4590 }
 0x225   :  { %3792 = vst [vmem:[%s5549_s9] sm:$0xff] %v4591_v45  ;;  %v2169_v48 = vrot.slane %v2168_v32, 4 }
 0x227   :  { %v2170_v63 = vadd.f32 %v2169_v48, %v2168_v32 }
 0x229   :  { %v2171_v30 = vrot.slane %v2170_v63, 2 }
 0x22d   :  { %v4593_v19 = vpop.eup %4592  ;;  %v4339_v53 = vpop.f32.mrf.mxu1 }
 0x22e   :  { %v3781_v52 = vadd.f32 1.0, %v4593_v19  ;;  %v2381_v4 = vadd.f32 %v4339_v53, %v4892_v7  ;;  %v2059_v19 = vrot.slane %v2058_v43, 4 }
 0x22f   :  { %v2375_v62 = vpop.f32.mrf.mxu1 }
 0x230   :  { %4594 = vrcp.f32 %v3781_v52  ;;  %v4328_v1 = vpop.f32.mrf.mxu0  ;;  %v2376_v59 = vadd.f32 %v2375_v62, %v4894_v8  ;;  %v2385_v9 = vmax.f32 %v2381_v4, 0.0  ;;  %v2060_v49 = vadd.f32 %v2059_v19, %v2058_v43 }
 0x231   :  { %v2271_v6 = vadd.f32 %v4328_v1, %v4892_v7 }
 0x232   :  { %v2265_v15 = vpop.f32.mrf.mxu0  ;;  %v2384_v20 = vmax.f32 %v2376_v59, 0.0  ;;  %v2387_v39 = vmul.f32 %v2385_v9, %v4897_v13 }
 0x233   :  { %v2266_v5 = vadd.f32 %v2265_v15, %v4894_v8  ;;  %v2275_v46 = vmax.f32 %v2271_v6, 0.0 }
 0x234   :  { %v2386_v27 = vmul.f32 %v2384_v20, %v4900_v14 }
 0x235   :  { %v2274_v24 = vmax.f32 %v2266_v5, 0.0  ;;  %v2277_v50 = vmul.f32 %v2275_v46, %v4897_v13 }
 0x236   :  { %v2388_v52 = vadd.f32 %v2387_v39, %v2386_v27 }
 0x237   :  { %v2276_v51 = vmul.f32 %v2274_v24, %v4900_v14 }
 0x238   :  { %v2389_v62 = vrot.slane %v2388_v52, 4 }
 0x239   :  { %v2278_v26 = vadd.f32 %v2277_v50, %v2276_v51 }
 0x23a   :  { %v2390_v24 = vadd.f32 %v2389_v62, %v2388_v52 }
 0x23b   :  { %v2279_v34 = vrot.slane %v2278_v26, 4 }
 0x23c   :  { %v2391_v51 = vrot.slane %v2390_v24, 2 }
 0x23d   :  { %v4595_v21 = vpop.eup %4594  ;;  %v2280_v61 = vadd.f32 %v2279_v34, %v2278_v26 }
 0x23e   :  { %3793 = vst [vmem:[%s5549_s9 + $0x8] sm:$0xff] %v4595_v21 }
 0x247   :  { %v4350_v47 = vpop.f32.mrf.mxu0 }
 0x248   :  { %v2491_v33 = vadd.f32 %v4350_v47, %v4892_v7 }
 0x249   :  { %v2485_v31 = vpop.f32.mrf.mxu0 }
 0x24a   :  { %v2486_v3 = vadd.f32 %v2485_v31, %v4894_v8  ;;  %v2495_v22 = vmax.f32 %v2491_v33, 0.0  ;;  %v2281_v31 = vrot.slane %v2280_v61, 2 }
 0x24c   :  { %v4361_v40 = vpop.f32.mrf.mxu1  ;;  %v2494_v17 = vmax.f32 %v2486_v3, 0.0  ;;  %v2497_v23 = vmul.f32 %v2495_v22, %v4897_v13  ;;  %v2282_v11 = vadd.f32 %v2281_v31, %v2280_v61 }
 0x24d   :  { %v2601_v54 = vadd.f32 %v4361_v40, %v4892_v7 }
 0x24e   :  { %v2595_v10 = vpop.f32.mrf.mxu1  ;;  %v2496_v44 = vmul.f32 %v2494_v17, %v4900_v14  ;;  %v2283_v22 = vrot.slane %v2282_v11, 1 }
 0x24f   :  { %v2596_v2 = vadd.f32 %v2595_v10, %v4894_v8  ;;  %v2605_v0 = vmax.f32 %v2601_v54, 0.0  ;;  %v2061_v10 = vrot.slane %v2060_v49, 2 }
 0x250   :  { %v2498_v45 = vadd.f32 %v2497_v23, %v2496_v44  ;;  %v2284_v23 = vadd.f32 %v2283_v22, %v2282_v11 }
 0x251   :  { %v2604_v35 = vmax.f32 %v2596_v2, 0.0  ;;  %v2607_v41 = vmul.f32 %v2605_v0, %v4897_v13  ;;  %v2172_v2 = vadd.f32 %v2171_v30, %v2170_v63  ;;  %v2062_v54 = vadd.f32 %v2061_v10, %v2060_v49 }
 0x252   :  { %v2499_v53 = vrot.slane %v2498_v45, 4  ;;  %v2392_v0 = vadd.f32 %v2391_v51, %v2390_v24 }
 0x253   :  { %v2606_v29 = vmul.f32 %v2604_v35, %v4900_v14  ;;  %v2173_v20 = vrot.slane %v2172_v2, 1  ;;  %v2063_v9 = vrot.slane %v2062_v54, 1 }
 0x254   :  { %v2500_v40 = vadd.f32 %v2499_v53, %v2498_v45 }
 0x255   :  { %v2608_v37 = vadd.f32 %v2607_v41, %v2606_v29  ;;  %v2174_v27 = vadd.f32 %v2173_v20, %v2172_v2  ;;  %v2064_v39 = vadd.f32 %v2063_v9, %v2062_v54  ;;  %v2393_v41 = vrot.slane %v2392_v0, 1 }
 0x256   :  { %v2501_v12 = vrot.slane %v2500_v40, 2 }
 0x257   :  { %v2609_v5 = vrot.slane %v2608_v37, 4  ;;  %v3736_v52 = vsel %vm3715_vm1, %v2064_v39, %v2174_v27  ;;  %v2394_v63 = vadd.f32 %v2393_v41, %v2392_v0 }
 0x258   :  { %v2502_v18 = vadd.f32 %v2501_v12, %v2500_v40 }
 0x259   :  { %v2610_v3 = vadd.f32 %v2609_v5, %v2608_v37 }
 0x25a   :  { %v2503_v48 = vrot.slane %v2502_v18, 1 }
 0x25b   :  { %v2611_v17 = vrot.slane %v2610_v3, 2 }
 0x25c   :  { %v4372_v21 = vpop.f32.mrf.mxu0 }
 0x25d   :  { %v2711_v60 = vadd.f32 %v4372_v21, %v4892_v7  ;;  %v2612_v26 = vadd.f32 %v2611_v17, %v2610_v3  ;;  %v3737_v21 = vsel %vm3717_vm2, %v3736_v52, %v2284_v23 }
 0x25e   :  { %v2705_v1 = vpop.f32.mrf.mxu0 }
 0x25f   :  { %v2715_v15 = vmax.f32 %v2711_v60, 0.0  ;;  %v2706_v47 = vadd.f32 %v2705_v1, %v4894_v8  ;;  %v2613_v34 = vrot.slane %v2612_v26, 1  ;;  %v2504_v60 = vadd.f32 %v2503_v48, %v2502_v18 }
 0x261   :  { %v2714_v56 = vmax.f32 %v2706_v47, 0.0  ;;  %v2717_v6 = vmul.f32 %v2715_v15, %v4897_v13  ;;  %v2614_v1 = vadd.f32 %v2613_v34, %v2612_v26  ;;  %v3738_v15 = vsel %vm3719_vm3, %v3737_v21, %v2394_v63 }
 0x262   :  { %v3739_v49 = vsel %vm3721_vm4, %v3738_v15, %v2504_v60 }
 0x263   :  { %v2716_v55 = vmul.f32 %v2714_v56, %v4900_v14  ;;  %v4383_v28 = vpop.f32.mrf.mxu1  ;;  %v3740_v62 = vsel %vm3723_vm5, %v3739_v49, %v2614_v1 }
 0x264   :  { %v2821_v36 = vadd.f32 %v4383_v28, %v4892_v7 }
 0x265   :  { %v2718_v42 = vadd.f32 %v2717_v6, %v2716_v55  ;;  %v2815_v59 = vpop.f32.mrf.mxu1 }
 0x266   :  { %v2825_v46 = vmax.f32 %v2821_v36, 0.0  ;;  %v2816_v33 = vadd.f32 %v2815_v59, %v4894_v8 }
 0x267   :  { %v2719_v4 = vrot.slane %v2718_v42, 4 }
 0x268   :  { %v2824_v57 = vmax.f32 %v2816_v33, 0.0  ;;  %v2827_v35 = vmul.f32 %v2825_v46, %v4897_v13 }
 0x269   :  { %v2720_v58 = vadd.f32 %v2719_v4, %v2718_v42 }
 0x26a   :  { %v2826_v50 = vmul.f32 %v2824_v57, %v4900_v14 }
 0x26b   :  { %v2721_v32 = vrot.slane %v2720_v58, 2 }
 0x26c   :  { %v2828_v44 = vadd.f32 %v2827_v35, %v2826_v50 }
 0x26d   :  { %v2722_v43 = vadd.f32 %v2721_v32, %v2720_v58 }
 0x26e   :  { %v2829_v29 = vrot.slane %v2828_v44, 4 }
 0x26f   :  { %v2723_v19 = vrot.slane %v2722_v43, 1 }
 0x270   :  { %v2830_v45 = vadd.f32 %v2829_v29, %v2828_v44 }
 0x271   :  { %v2724_v53 = vadd.f32 %v2723_v19, %v2722_v43 }
 0x272   :  { %v2831_v37 = vrot.slane %v2830_v45, 2 }
 0x273   :  { %v3741_v56 = vsel %vm3725_vm6, %v3740_v62, %v2724_v53 }
 0x274   :  { %v2832_v61 = vadd.f32 %v2831_v37, %v2830_v45 }
 0x276   :  { %v2833_v47 = vrot.slane %v2832_v61, 1 }
 0x277   :  { %v4405_v3 = vpop.f32.mrf.mxu1 }
 0x278   :  { %v2834_v5 = vadd.f32 %v2833_v47, %v2832_v61  ;;  %v3041_v50 = vadd.f32 %v4405_v3, %v4892_v7 }
 0x279   :  { %v3035_v59 = vpop.f32.mrf.mxu1 }
 0x27a   :  { %v3742_v30 = vsel %vm3727_vm7, %v3741_v56, %v2834_v5  ;;  %v4394_v24 = vpop.f32.mrf.mxu0  ;;  %v3036_v17 = vadd.f32 %v3035_v59, %v4894_v8  ;;  %v3045_v48 = vmax.f32 %v3041_v50, 0.0 }
 0x27b   :  { %v3752_v31 = vadd.f32 %v3742_v30, %v5299_v38  ;;  %v2931_v57 = vadd.f32 %v4394_v24, %v4892_v7 }
 0x27c   :  { %v2925_v36 = vpop.f32.mrf.mxu0  ;;  %v3044_v26 = vmax.f32 %v3036_v17, 0.0  ;;  %v3047_v61 = vmul.f32 %v3045_v48, %v4897_v13 }
 0x27d   :  { %v3766_v40 = vadd.f32 %v5426_v16, %v3752_v31  ;;  %v2926_v12 = vadd.f32 %v2925_v36, %v4894_v8  ;;  %v2935_v44 = vmax.f32 %v2931_v57, 0.0 }
 0x27e   :  { %v3046_v52 = vmul.f32 %v3044_v26, %v4900_v14 }
 0x27f   :  { %v3868_v6 = vmul.f32 -1.442695, %v3766_v40  ;;  %v2934_v22 = vmax.f32 %v2926_v12, 0.0  ;;  %v2937_v37 = vmul.f32 %v2935_v44, %v4897_v13 }
 0x280   :  { %v3048_v5 = vadd.f32 %v3047_v61, %v3046_v52 }
 0x281   :  { %4596 = vpow2.f32 %v3868_v6  ;;  %v2936_v39 = vmul.f32 %v2934_v22, %v4900_v14 }
 0x283   :  { %v2938_v53 = vadd.f32 %v2937_v37, %v2936_v39 }
 0x285   :  { %v2939_v40 = vrot.slane %v2938_v53, 4 }
 0x287   :  { %v2940_v36 = vadd.f32 %v2939_v40, %v2938_v53 }
 0x289   :  { %v2941_v17 = vrot.slane %v2940_v36, 2 }
 0x28e   :  { %v4597_v55 = vpop.eup %4596 }
 0x28f   :  { %v3782_v28 = vadd.f32 1.0, %v4597_v55 }
 0x291   :  { %4598 = vrcp.f32 %v3782_v28  ;;  %v4416_v42 = vpop.f32.mrf.mxu0  ;;  %v3049_v28 = vrot.slane %v3048_v5, 4 }
 0x292   :  { %v3151_v20 = vadd.f32 %v4416_v42, %v4892_v7 }
 0x293   :  { %v3145_v46 = vpop.f32.mrf.mxu0 }
 0x294   :  { %v3146_v54 = vadd.f32 %v3145_v46, %v4894_v8  ;;  %v3155_v29 = vmax.f32 %v3151_v20, 0.0 }
 0x296   :  { %v4427_v2 = vpop.f32.mrf.mxu1  ;;  %v3154_v9 = vmax.f32 %v3146_v54, 0.0  ;;  %v3157_v63 = vmul.f32 %v3155_v29, %v4897_v13 }
 0x297   :  { %v3261_v18 = vadd.f32 %v4427_v2, %v4892_v7 }
 0x298   :  { %v3255_v33 = vpop.f32.mrf.mxu1  ;;  %v3156_v45 = vmul.f32 %v3154_v9, %v4900_v14 }
 0x299   :  { %v3256_v58 = vadd.f32 %v3255_v33, %v4894_v8  ;;  %v3265_v41 = vmax.f32 %v3261_v18, 0.0 }
 0x29a   :  { %v3158_v49 = vadd.f32 %v3157_v63, %v3156_v45 }
 0x29b   :  { %v3264_v43 = vmax.f32 %v3256_v58, 0.0  ;;  %v3267_v15 = vmul.f32 %v3265_v41, %v4897_v13 }
 0x29c   :  { %v3159_v55 = vrot.slane %v3158_v49, 4 }
 0x29d   :  { %v3266_v21 = vmul.f32 %v3264_v43, %v4900_v14  ;;  %v2942_v43 = vadd.f32 %v2941_v17, %v2940_v36 }
 0x29e   :  { %v4599_v10 = vpop.eup %4598  ;;  %v3160_v2 = vadd.f32 %v3159_v55, %v3158_v49 }
 0x29f   :  { %3794 = vst [vmem:[%s5549_s9 + $0x10] sm:$0xff] %v4599_v10  ;;  %v3268_v56 = vadd.f32 %v3267_v15, %v3266_v21 }
 0x2a1   :  { %v3269_v10 = vrot.slane %v3268_v56, 4 }
 0x2a3   :  { %v3270_v33 = vadd.f32 %v3269_v10, %v3268_v56 }
 0x2a6   :  { %v4438_v38 = vpop.f32.mrf.mxu0 }
 0x2a7   :  { %v3371_v0 = vadd.f32 %v4438_v38, %v4892_v7  ;;  %v3050_v38 = vadd.f32 %v3049_v28, %v3048_v5 }
 0x2a8   :  { %v3365_v4 = vpop.f32.mrf.mxu0 }
 0x2a9   :  { %v3366_v35 = vadd.f32 %v3365_v4, %v4894_v8  ;;  %v3375_v19 = vmax.f32 %v3371_v0, 0.0  ;;  %v3051_v18 = vrot.slane %v3050_v38, 2 }
 0x2ab   :  { %v3374_v23 = vmax.f32 %v3366_v35, 0.0  ;;  %v3377_v62 = vmul.f32 %v3375_v19, %v4897_v13  ;;  %v3161_v35 = vrot.slane %v3160_v2, 2  ;;  %v3052_v39 = vadd.f32 %v3051_v18, %v3050_v38 }
 0x2ac   :  { %v2943_v19 = vrot.slane %v2942_v43, 1 }
 0x2ad   :  { %v4449_v11 = vpop.f32.mrf.mxu1  ;;  %v3376_v1 = vmul.f32 %v3374_v23, %v4900_v14  ;;  %v3053_v63 = vrot.slane %v3052_v39, 1 }
 0x2ae   :  { %v3481_v27 = vadd.f32 %v4449_v11, %v4892_v7 }
 0x2af   :  { %v3475_v51 = vpop.f32.mrf.mxu1  ;;  %v3378_v31 = vadd.f32 %v3377_v62, %v3376_v1  ;;  %v3054_v5 = vadd.f32 %v3053_v63, %v3052_v39 }
 0x2b0   :  { %v3476_v32 = vadd.f32 %v3475_v51, %v4894_v8  ;;  %v3485_v60 = vmax.f32 %v3481_v27, 0.0 }
 0x2b1   :  { %v3379_v24 = vrot.slane %v3378_v31, 4 }
 0x2b2   :  { %v3484_v34 = vmax.f32 %v3476_v32, 0.0  ;;  %v3487_v30 = vmul.f32 %v3485_v60, %v4897_v13  ;;  %v3271_v32 = vrot.slane %v3270_v33, 2 }
 0x2b3   :  { %v3380_v54 = vadd.f32 %v3379_v24, %v3378_v31 }
 0x2b4   :  { %v3486_v47 = vmul.f32 %v3484_v34, %v4900_v14  ;;  %v3272_v41 = vadd.f32 %v3271_v32, %v3270_v33 }
 0x2b5   :  { %v3381_v26 = vrot.slane %v3380_v54, 2 }
 0x2b6   :  { %v3488_v6 = vadd.f32 %v3487_v30, %v3486_v47  ;;  %v3273_v1 = vrot.slane %v3272_v41, 1  ;;  %v2944_v47 = vadd.f32 %v2943_v19, %v2942_v43 }
 0x2b8   :  { %v3489_v42 = vrot.slane %v3488_v6, 4  ;;  %v3274_v56 = vadd.f32 %v3273_v1, %v3272_v41  ;;  %v3743_v40 = vsel %vm3715_vm1, %v2944_v47, %v3054_v5 }
 0x2ba   :  { %v3490_v57 = vadd.f32 %v3489_v42, %v3488_v6 }
 0x2bc   :  { %v3491_v27 = vrot.slane %v3490_v57, 2 }
 0x2be   :  { %v3492_v52 = vadd.f32 %v3491_v27, %v3490_v57 }
 0x2c0   :  { %v3493_v49 = vrot.slane %v3492_v52, 1 }
 0x2c1   :  { %v4471_v3 = vpop.f32.mrf.mxu1 }
 0x2c2   :  { %v3701_v59 = vadd.f32 %v4471_v3, %v4892_v7  ;;  %v3494_v6 = vadd.f32 %v3493_v49, %v3492_v52 }
 0x2c3   :  { %v3695_v46 = vpop.f32.mrf.mxu1 }
 0x2c4   :  { %v3705_v11 = vmax.f32 %v3701_v59, 0.0  ;;  %v3696_v12 = vadd.f32 %v3695_v46, %v4894_v8  ;;  %v4460_v4 = vpop.f32.mrf.mxu0 }
 0x2c5   :  { %v3591_v51 = vadd.f32 %v4460_v4, %v4892_v7  ;;  %v3162_v7 = vadd.f32 %v3161_v35, %v3160_v2 }
 0x2c6   :  { %v3704_v58 = vmax.f32 %v3696_v12, 0.0  ;;  %v3585_v20 = vpop.f32.mrf.mxu0  ;;  %v3707_v9 = vmul.f32 %v3705_v11, %v4897_v13 }
 0x2c7   :  { %v3595_v50 = vmax.f32 %v3591_v51, 0.0  ;;  %v3586_v22 = vadd.f32 %v3585_v20, %v4894_v8  ;;  %v3382_v8 = vadd.f32 %v3381_v26, %v3380_v54  ;;  %v3163_v21 = vrot.slane %v3162_v7, 1 }
 0x2c8   :  { %v3706_v0 = vmul.f32 %v3704_v58, %v4900_v14 }
 0x2c9   :  { %v3594_v44 = vmax.f32 %v3586_v22, 0.0  ;;  %v3597_v23 = vmul.f32 %v3595_v50, %v4897_v13  ;;  %v3383_v53 = vrot.slane %v3382_v8, 1  ;;  %v3164_v62 = vadd.f32 %v3163_v21, %v3162_v7 }
 0x2ca   :  { %v3708_v29 = vadd.f32 %v3707_v9, %v3706_v0 }
 0x2cb   :  { %v3596_v48 = vmul.f32 %v3594_v44, %v4900_v14  ;;  %v3384_v30 = vadd.f32 %v3383_v53, %v3382_v8  ;;  %v3744_v28 = vsel %vm3717_vm2, %v3743_v40, %v3164_v62 }
 0x2cc   :  { %v3709_v34 = vrot.slane %v3708_v29, 4  ;;  %v3745_v24 = vsel %vm3719_vm3, %v3744_v28, %v3274_v56 }
 0x2cd   :  { %v3598_v45 = vadd.f32 %v3597_v23, %v3596_v48  ;;  %v3746_v3 = vsel %vm3721_vm4, %v3745_v24, %v3384_v30 }
 0x2ce   :  { %v3710_v37 = vadd.f32 %v3709_v34, %v3708_v29  ;;  %v3747_v42 = vsel %vm3723_vm5, %v3746_v3, %v3494_v6 }
 0x2cf   :  { %v3599_v60 = vrot.slane %v3598_v45, 4 }
 0x2d0   :  { %v3711_v61 = vrot.slane %v3710_v37, 2 }
 0x2d1   :  { %v3600_v15 = vadd.f32 %v3599_v60, %v3598_v45 }
 0x2d2   :  { %v3712_v13 = vadd.f32 %v3711_v61, %v3710_v37 }
 0x2d3   :  { %v3601_v14 = vrot.slane %v3600_v15, 2 }
 0x2d4   :  { %v3713_v55 = vrot.slane %v3712_v13, 1 }
 0x2d5   :  { %v3602_v31 = vadd.f32 %v3601_v14, %v3600_v15 }
 0x2d6   :  { %v3714_v59 = vadd.f32 %v3713_v55, %v3712_v13 }
 0x2d7   :  { %v3603_v10 = vrot.slane %v3602_v31, 1 }
 0x2d9   :  { %v3604_v36 = vadd.f32 %v3603_v10, %v3602_v31 }
 0x2db   :  { %v3748_v2 = vsel %vm3725_vm6, %v3747_v42, %v3604_v36 }
 0x2dc   :  { %v3749_v46 = vsel %vm3727_vm7, %v3748_v2, %v3714_v59 }
 0x2dd   :  { %v3753_v38 = vadd.f32 %v5291_v25, %v3749_v46 }
 0x2df   :  { %v3767_v33 = vadd.f32 %v5426_v16, %v3753_v38 }
 0x2e1   :  { %v3869_v11 = vmul.f32 -1.442695, %v3767_v33 }
 0x2e3   :  { %4600 = vpow2.f32 %v3869_v11 }
 0x2f0   :  { %v4601_v12 = vpop.eup %4600 }
 0x2f1   :  { %v3783_v4 = vadd.f32 1.0, %v4601_v12 }
 0x2f3   :  { %4602 = vrcp.f32 %v3783_v4 }
 0x300   :  { %v4603_v54 = vpop.eup %4602 }
 0x301   :  { %3795 = vst [vmem:[%s5549_s9 + $0x18] sm:$0xff] %v4603_v54 }

</bundles_post_ra>
